<compile_context>
chip_gen: v7x
topology: tpu7x:2x2x1
jax: 0.10.0
libtpu: 0.0.40
codegen_flags: <defaults>
</compile_context>

<pallas_src>
import jax
import jax.numpy as jnp
from jax.experimental import pallas as pl
from jax.experimental.pallas import tpu as pltpu


# ---------------- Config (mirrors the PyTorch Config) ----------------
VOCAB_SIZE = 30522
EMBED_DIM = 768
NUM_CLASSES = 10


# ---------------- Pallas kernel ----------------
def _make_gather_kernel(tm: int, nsem: int, unroll: int):
    """Gather `tm` pre-projected logits rows per grid step, `nsem` DMAs in flight."""
    assert nsem & (nsem - 1) == 0, "nsem must be a power of two"
    assert nsem <= tm
    assert (tm - nsem) % unroll == 0

    def kernel(n_ref, ids_ref, l_hbm, out_ref, sem):
        # n_ref   : SMEM int32 [1]          (real token count N)
        # ids_ref : SMEM int32 [N_pad]      (token ids; scalar prefetch)
        # l_hbm   : HBM  f32   [V, C_pad]   (pre-projected logits table, manual DMA)
        # out_ref : VMEM f32   [tm, C_pad]  (current output block; DMA destination)
        # sem     : DMA semaphores [nsem]
        base = pl.program_id(0) * tm
        valid = jnp.minimum(tm, n_ref[0] - base)   # real tokens in this block (>= 1)

        def start(row, tok, slot):
            pltpu.make_async_copy(
                l_hbm.at[pl.ds(tok, 1), :],
                out_ref.at[pl.ds(row, 1), :],
                sem.at[slot],
            ).start()

        def wait(slot):
            # All copies have identical (1, C_pad) size; only the semaphore and
            # size matter for wait, so use static src/dst indices -> no SMEM
            # load / address math on the scalar path after the wait.
            pltpu.make_async_copy(
                l_hbm.at[pl.ds(0, 1), :],
                out_ref.at[pl.ds(0, 1), :],
                sem.at[slot],
            ).wait()

        # ---- Fast path: full block of tm real tokens (no per-row guards). ----
        @pl.when(valid == tm)
        def _():
            for j in range(nsem):                       # prime nsem row-DMAs
                start(j, ids_ref[base + j], j)

            @pl.loop(0, (tm - nsem) // unroll)          # steady state, unrolled
            def _(step):
                j0 = step * unroll
                for u in range(unroll):
                    j = j0 + u
                    tok_next = ids_ref[base + j + nsem]  # read id BEFORE the wait
                    slot = j & (nsem - 1)
                    wait(slot)                           # row j done
                    start(j + nsem, tok_next, slot)      # keep nsem in flight

            for j in range(tm - nsem, tm):              # drain
                wait(j & (nsem - 1))

        # ---- Tail path: only `valid` real tokens; padded rows get no DMAs. ----
        @pl.when(valid < tm)
        def _():
            @pl.loop(0, jnp.minimum(nsem, valid))
            def _(j):
                start(j, ids_ref[base + j], j)

            @pl.loop(0, valid)
            def _(j):
                slot = j & (nsem - 1)
                wait(slot)

                @pl.when(j + nsem < valid)
                def _():
                    start(j + nsem, ids_ref[base + j + nsem], slot)

    return kernel


# ---------------- Wrappers ----------------
def fold_projection(emb_table, w_dc, bias):
    """Fold the linear layer into the embedding table.

    Returns L = emb_table @ W + b, padded to a lane-dense 128-wide class dim.
    Call once per weight set; mathematically identical to embed-then-project.
    """
    V, D = emb_table.shape
    C = w_dc.shape[1]
    c_pad = max(128, ((C + 127) // 128) * 128)
    w_pad = jnp.zeros((D, c_pad), jnp.float32).at[:, :C].set(w_dc.astype(jnp.float32))
    b_pad = jnp.zeros((1, c_pad), jnp.float32).at[:, :C].set(bias.astype(jnp.float32))
    logits_table = jnp.dot(emb_table.astype(jnp.float32), w_pad,
                           precision=jax.lax.Precision.HIGHEST) + b_pad
    return logits_table                                   # [V, c_pad] f32


def gather_logits(token_ids, logits_table, num_classes, *, tm=256, nsem=32, unroll=8):
    """token_ids: int32 [B, S]; logits_table: f32 [V, C_pad]. Returns f32 [B,S,C]."""
    B, S = token_ids.shape
    N = B * S
    V, c_pad = logits_table.shape

    n_blocks = (N + tm - 1) // tm
    n_pad = n_blocks * tm

    # NOTE: for very large B*S, feed ids as a per-block SMEM-tiled input instead
    # of whole-array scalar prefetch (SMEM pads a 1-D prefetch array to pow2).
    ids_flat = jnp.zeros((n_pad,), jnp.int32).at[:N].set(
        token_ids.reshape(N).astype(jnp.int32))
    n_arr = jnp.array([N], dtype=jnp.int32)

    grid_spec = pltpu.PrefetchScalarGridSpec(
        num_scalar_prefetch=2,
        grid=(n_blocks,),
        in_specs=[pl.BlockSpec(memory_space=pl.ANY)],     # logits table stays in HBM
        out_specs=pl.BlockSpec((tm, c_pad), lambda i, n, ids: (i, 0)),
        scratch_shapes=[pltpu.SemaphoreType.DMA((nsem,))],
    )

    out = pl.pallas_call(
        _make_gather_kernel(tm, nsem, unroll),
        out_shape=jax.ShapeDtypeStruct((n_pad, c_pad), jnp.float32),
        grid_spec=grid_spec,
        compiler_params=pltpu.CompilerParams(
            dimension_semantics=("parallel",),            # token blocks independent
        ),
    )(n_arr, ids_flat, logits_table)

    return out[:N, :num_classes].reshape(B, S, num_classes)


def embed_then_linear(token_ids, emb_table, w_dc, bias, **kw):
    """Full forward: fold params once, then gather pre-projected rows."""
    logits_table = fold_projection(emb_table, w_dc, bias)
    return gather_logits(token_ids, logits_table, w_dc.shape[1], **kw)


# ---------------- Parameter init (matches _init_weights) ----------------
def init_params(key):
    k_emb, k_lin = jax.random.split(key)
    emb_table = 0.02 * jax.random.normal(k_emb, (VOCAB_SIZE, EMBED_DIM), jnp.float32)
    # PyTorch nn.Linear stores weight as [C, D]; kernel path consumes its transpose [D, C].
    w_cd = 0.02 * jax.random.normal(k_lin, (NUM_CLASSES, EMBED_DIM), jnp.float32)
    bias = jnp.zeros((NUM_CLASSES,), jnp.float32)
    return emb_table, w_cd, bias


if __name__ == "__main__":
    key = jax.random.PRNGKey(0)
    k_params, k_ids = jax.random.split(key)

    emb_table, w_cd, bias = init_params(k_params)

    # Small example input consistent with the module: batch=2, seq=8 token ids.
    B, S = 2, 8
    token_ids = jax.random.randint(k_ids, (B, S), 0, VOCAB_SIZE, dtype=jnp.int32)

    out = embed_then_linear(token_ids, emb_table, w_cd.T, bias)
    out = jax.block_until_ready(out)

    # Pure-JAX reference check (f32, full precision, same as the PyTorch math).
    gathered = jnp.take(emb_table, token_ids.reshape(-1), axis=0)          # [N, D]
    ref = (jnp.dot(gathered, w_cd.T, precision=jax.lax.Precision.HIGHEST)
           + bias).reshape(B, S, NUM_CLASSES)

    assert out.shape == (B, S, NUM_CLASSES), out.shape
    max_err = float(jnp.max(jnp.abs(out - ref)))
    assert jnp.allclose(out, ref, atol=1e-4, rtol=1e-4), max_err

    print("KERNEL_OK")
</pallas_src>

<mosaic_0001>
module attributes {stable_mosaic.version = 11 : i64} {
  func.func @kernel(%arg0: i32, %arg1: memref<1xi32, #tpu.memory_space<smem>>, %arg2: memref<256xi32, #tpu.memory_space<smem>>, %arg3: memref<30522x128xf32, #tpu.memory_space<any>>, %arg4: memref<256x128xf32, #tpu.memory_space<vmem>>, %arg5: memref<32x!tpu.dma_semaphore, #tpu.memory_space<semaphore_mem>>) attributes {dimension_semantics = [#tpu.dimension_semantics<parallel>], iteration_bounds = array<i64: 1>, scalar_prefetch = 2 : i64, scratch_operands = 1 : i64, tpu.core_type = #tpu.core_type<tc>, window_params = [{}, {transform_indices = @transform_1, window_bounds = array<i64: 256, 128>}]} {
    %c256_i32 = arith.constant 256 : i32
    %0 = arith.muli %arg0, %c256_i32 : i32
    %c0 = arith.constant 0 : index
    %1 = memref.load %arg1[%c0] : memref<1xi32, #tpu.memory_space<smem>>
    %2 = arith.subi %1, %0 : i32
    %c256_i32_0 = arith.constant 256 : i32
    %3 = arith.minsi %c256_i32_0, %2 : i32
    %c256_i32_1 = arith.constant 256 : i32
    %4 = arith.cmpi eq, %3, %c256_i32_1 : i32
    %5 = arith.extui %4 : i1 to i32
    %c0_i32 = arith.constant 0 : i32
    %6 = arith.cmpi ne, %5, %c0_i32 : i32
    scf.if %6 {
      %c0_i32_4 = arith.constant 0 : i32
      %10 = arith.addi %0, %c0_i32_4 : i32
      %11 = arith.index_cast %10 : i32 to index
      %12 = memref.load %arg2[%11] : memref<256xi32, #tpu.memory_space<smem>>
      %c0_i32_5 = arith.constant 0 : i32
      %c0_i32_6 = arith.constant 0 : i32
      %13 = tpu.memref_slice %arg3[%12, %c0_i32_6] : memref<30522x128xf32, #tpu.memory_space<any>> -> memref<1x128xf32, #tpu.memory_space<any>>
      %c0_i32_7 = arith.constant 0 : i32
      %c0_i32_8 = arith.constant 0 : i32
      %14 = tpu.memref_slice %arg4[%c0_i32_7, %c0_i32_8] : memref<256x128xf32, #tpu.memory_space<vmem>> -> memref<1x128xf32, #tpu.memory_space<vmem>>
      %15 = tpu.memref_slice %arg5[%c0_i32_5] : memref<32x!tpu.dma_semaphore, #tpu.memory_space<semaphore_mem>> -> memref<1x!tpu.dma_semaphore, #tpu.memory_space<semaphore_mem>>
      %16 = tpu.memref_squeeze %15 : memref<1x!tpu.dma_semaphore, #tpu.memory_space<semaphore_mem>> -> memref<!tpu.dma_semaphore, #tpu.memory_space<semaphore_mem>>
      tpu.enqueue_dma source(%13 : memref<1x128xf32, #tpu.memory_space<any>>) target(%14 : memref<1x128xf32, #tpu.memory_space<vmem>>) target_semaphore(%16 : memref<!tpu.dma_semaphore, #tpu.memory_space<semaphore_mem>>)
      %c1_i32 = arith.constant 1 : i32
      %17 = arith.addi %0, %c1_i32 : i32
      %18 = arith.index_cast %17 : i32 to index
      %19 = memref.load %arg2[%18] : memref<256xi32, #tpu.memory_space<smem>>
      %c1_i32_9 = arith.constant 1 : i32
      %c0_i32_10 = arith.constant 0 : i32
      %20 = tpu.memref_slice %arg3[%19, %c0_i32_10] : memref<30522x128xf32, #tpu.memory_space<any>> -> memref<1x128xf32, #tpu.memory_space<any>>
      %c1_i32_11 = arith.constant 1 : i32
      %c0_i32_12 = arith.constant 0 : i32
      %21 = tpu.memref_slice %arg4[%c1_i32_11, %c0_i32_12] : memref<256x128xf32, #tpu.memory_space<vmem>> -> memref<1x128xf32, #tpu.memory_space<vmem>>
      %22 = tpu.memref_slice %arg5[%c1_i32_9] : memref<32x!tpu.dma_semaphore, #tpu.memory_space<semaphore_mem>> -> memref<1x!tpu.dma_semaphore, #tpu.memory_space<semaphore_mem>>
      %23 = tpu.memref_squeeze %22 : memref<1x!tpu.dma_semaphore, #tpu.memory_space<semaphore_mem>> -> memref<!tpu.dma_semaphore, #tpu.memory_space<semaphore_mem>>
      tpu.enqueue_dma source(%20 : memref<1x128xf32, #tpu.memory_space<any>>) target(%21 : memref<1x128xf32, #tpu.memory_space<vmem>>) target_semaphore(%23 : memref<!tpu.dma_semaphore, #tpu.memory_space<semaphore_mem>>)
      %c2_i32 = arith.constant 2 : i32
      %24 = arith.addi %0, %c2_i32 : i32
      %25 = arith.index_cast %24 : i32 to index
      %26 = memref.load %arg2[%25] : memref<256xi32, #tpu.memory_space<smem>>
      %c2_i32_13 = arith.constant 2 : i32
      %c0_i32_14 = arith.constant 0 : i32
      %27 = tpu.memref_slice %arg3[%26, %c0_i32_14] : memref<30522x128xf32, #tpu.memory_space<any>> -> memref<1x128xf32, #tpu.memory_space<any>>
      %c2_i32_15 = arith.constant 2 : i32
      %c0_i32_16 = arith.constant 0 : i32
      %28 = tpu.memref_slice %arg4[%c2_i32_15, %c0_i32_16] : memref<256x128xf32, #tpu.memory_space<vmem>> -> memref<1x128xf32, #tpu.memory_space<vmem>>
      %29 = tpu.memref_slice %arg5[%c2_i32_13] : memref<32x!tpu.dma_semaphore, #tpu.memory_space<semaphore_mem>> -> memref<1x!tpu.dma_semaphore, #tpu.memory_space<semaphore_mem>>
      %30 = tpu.memref_squeeze %29 : memref<1x!tpu.dma_semaphore, #tpu.memory_space<semaphore_mem>> -> memref<!tpu.dma_semaphore, #tpu.memory_space<semaphore_mem>>
      tpu.enqueue_dma source(%27 : memref<1x128xf32, #tpu.memory_space<any>>) target(%28 : memref<1x128xf32, #tpu.memory_space<vmem>>) target_semaphore(%30 : memref<!tpu.dma_semaphore, #tpu.memory_space<semaphore_mem>>)
      %c3_i32 = arith.constant 3 : i32
      %31 = arith.addi %0, %c3_i32 : i32
      %32 = arith.index_cast %31 : i32 to index
      %33 = memref.load %arg2[%32] : memref<256xi32, #tpu.memory_space<smem>>
      %c3_i32_17 = arith.constant 3 : i32
      %c0_i32_18 = arith.constant 0 : i32
      %34 = tpu.memref_slice %arg3[%33, %c0_i32_18] : memref<30522x128xf32, #tpu.memory_space<any>> -> memref<1x128xf32, #tpu.memory_space<any>>
      %c3_i32_19 = arith.constant 3 : i32
      %c0_i32_20 = arith.constant 0 : i32
      %35 = tpu.memref_slice %arg4[%c3_i32_19, %c0_i32_20] : memref<256x128xf32, #tpu.memory_space<vmem>> -> memref<1x128xf32, #tpu.memory_space<vmem>>
      %36 = tpu.memref_slice %arg5[%c3_i32_17] : memref<32x!tpu.dma_semaphore, #tpu.memory_space<semaphore_mem>> -> memref<1x!tpu.dma_semaphore, #tpu.memory_space<semaphore_mem>>
      %37 = tpu.memref_squeeze %36 : memref<1x!tpu.dma_semaphore, #tpu.memory_space<semaphore_mem>> -> memref<!tpu.dma_semaphore, #tpu.memory_space<semaphore_mem>>
      tpu.enqueue_dma source(%34 : memref<1x128xf32, #tpu.memory_space<any>>) target(%35 : memref<1x128xf32, #tpu.memory_space<vmem>>) target_semaphore(%37 : memref<!tpu.dma_semaphore, #tpu.memory_space<semaphore_mem>>)
      %c4_i32 = arith.constant 4 : i32
      %38 = arith.addi %0, %c4_i32 : i32
      %39 = arith.index_cast %38 : i32 to index
      %40 = memref.load %arg2[%39] : memref<256xi32, #tpu.memory_space<smem>>
      %c4_i32_21 = arith.constant 4 : i32
      %c0_i32_22 = arith.constant 0 : i32
      %41 = tpu.memref_slice %arg3[%40, %c0_i32_22] : memref<30522x128xf32, #tpu.memory_space<any>> -> memref<1x128xf32, #tpu.memory_space<any>>
      %c4_i32_23 = arith.constant 4 : i32
      %c0_i32_24 = arith.constant 0 : i32
      %42 = tpu.memref_slice %arg4[%c4_i32_23, %c0_i32_24] : memref<256x128xf32, #tpu.memory_space<vmem>> -> memref<1x128xf32, #tpu.memory_space<vmem>>
      %43 = tpu.memref_slice %arg5[%c4_i32_21] : memref<32x!tpu.dma_semaphore, #tpu.memory_space<semaphore_mem>> -> memref<1x!tpu.dma_semaphore, #tpu.memory_space<semaphore_mem>>
      %44 = tpu.memref_squeeze %43 : memref<1x!tpu.dma_semaphore, #tpu.memory_space<semaphore_mem>> -> memref<!tpu.dma_semaphore, #tpu.memory_space<semaphore_mem>>
      tpu.enqueue_dma source(%41 : memref<1x128xf32, #tpu.memory_space<any>>) target(%42 : memref<1x128xf32, #tpu.memory_space<vmem>>) target_semaphore(%44 : memref<!tpu.dma_semaphore, #tpu.memory_space<semaphore_mem>>)
      %c5_i32 = arith.constant 5 : i32
      %45 = arith.addi %0, %c5_i32 : i32
      %46 = arith.index_cast %45 : i32 to index
      %47 = memref.load %arg2[%46] : memref<256xi32, #tpu.memory_space<smem>>
      %c5_i32_25 = arith.constant 5 : i32
      %c0_i32_26 = arith.constant 0 : i32
      %48 = tpu.memref_slice %arg3[%47, %c0_i32_26] : memref<30522x128xf32, #tpu.memory_space<any>> -> memref<1x128xf32, #tpu.memory_space<any>>
      %c5_i32_27 = arith.constant 5 : i32
      %c0_i32_28 = arith.constant 0 : i32
      %49 = tpu.memref_slice %arg4[%c5_i32_27, %c0_i32_28] : memref<256x128xf32, #tpu.memory_space<vmem>> -> memref<1x128xf32, #tpu.memory_space<vmem>>
      %50 = tpu.memref_slice %arg5[%c5_i32_25] : memref<32x!tpu.dma_semaphore, #tpu.memory_space<semaphore_mem>> -> memref<1x!tpu.dma_semaphore, #tpu.memory_space<semaphore_mem>>
      %51 = tpu.memref_squeeze %50 : memref<1x!tpu.dma_semaphore, #tpu.memory_space<semaphore_mem>> -> memref<!tpu.dma_semaphore, #tpu.memory_space<semaphore_mem>>
      tpu.enqueue_dma source(%48 : memref<1x128xf32, #tpu.memory_space<any>>) target(%49 : memref<1x128xf32, #tpu.memory_space<vmem>>) target_semaphore(%51 : memref<!tpu.dma_semaphore, #tpu.memory_space<semaphore_mem>>)
      %c6_i32 = arith.constant 6 : i32
      %52 = arith.addi %0, %c6_i32 : i32
      %53 = arith.index_cast %52 : i32 to index
      %54 = memref.load %arg2[%53] : memref<256xi32, #tpu.memory_space<smem>>
      %c6_i32_29 = arith.constant 6 : i32
      %c0_i32_30 = arith.constant 0 : i32
      %55 = tpu.memref_slice %arg3[%54, %c0_i32_30] : memref<30522x128xf32, #tpu.memory_space<any>> -> memref<1x128xf32, #tpu.memory_space<any>>
      %c6_i32_31 = arith.constant 6 : i32
      %c0_i32_32 = arith.constant 0 : i32
      %56 = tpu.memref_slice %arg4[%c6_i32_31, %c0_i32_32] : memref<256x128xf32, #tpu.memory_space<vmem>> -> memref<1x128xf32, #tpu.memory_space<vmem>>
      %57 = tpu.memref_slice %arg5[%c6_i32_29] : memref<32x!tpu.dma_semaphore, #tpu.memory_space<semaphore_mem>> -> memref<1x!tpu.dma_semaphore, #tpu.memory_space<semaphore_mem>>
      %58 = tpu.memref_squeeze %57 : memref<1x!tpu.dma_semaphore, #tpu.memory_space<semaphore_mem>> -> memref<!tpu.dma_semaphore, #tpu.memory_space<semaphore_mem>>
      tpu.enqueue_dma source(%55 : memref<1x128xf32, #tpu.memory_space<any>>) target(%56 : memref<1x128xf32, #tpu.memory_space<vmem>>) target_semaphore(%58 : memref<!tpu.dma_semaphore, #tpu.memory_space<semaphore_mem>>)
      %c7_i32 = arith.constant 7 : i32
      %59 = arith.addi %0, %c7_i32 : i32
      %60 = arith.index_cast %59 : i32 to index
      %61 = memref.load %arg2[%60] : memref<256xi32, #tpu.memory_space<smem>>
      %c7_i32_33 = arith.constant 7 : i32
      %c0_i32_34 = arith.constant 0 : i32
      %62 = tpu.memref_slice %arg3[%61, %c0_i32_34] : memref<30522x128xf32, #tpu.memory_space<any>> -> memref<1x128xf32, #tpu.memory_space<any>>
      %c7_i32_35 = arith.constant 7 : i32
      %c0_i32_36 = arith.constant 0 : i32
      %63 = tpu.memref_slice %arg4[%c7_i32_35, %c0_i32_36] : memref<256x128xf32, #tpu.memory_space<vmem>> -> memref<1x128xf32, #tpu.memory_space<vmem>>
      %64 = tpu.memref_slice %arg5[%c7_i32_33] : memref<32x!tpu.dma_semaphore, #tpu.memory_space<semaphore_mem>> -> memref<1x!tpu.dma_semaphore, #tpu.memory_space<semaphore_mem>>
      %65 = tpu.memref_squeeze %64 : memref<1x!tpu.dma_semaphore, #tpu.memory_space<semaphore_mem>> -> memref<!tpu.dma_semaphore, #tpu.memory_space<semaphore_mem>>
      tpu.enqueue_dma source(%62 : memref<1x128xf32, #tpu.memory_space<any>>) target(%63 : memref<1x128xf32, #tpu.memory_space<vmem>>) target_semaphore(%65 : memref<!tpu.dma_semaphore, #tpu.memory_space<semaphore_mem>>)
      %c8_i32 = arith.constant 8 : i32
      %66 = arith.addi %0, %c8_i32 : i32
      %67 = arith.index_cast %66 : i32 to index
      %68 = memref.load %arg2[%67] : memref<256xi32, #tpu.memory_space<smem>>
      %c8_i32_37 = arith.constant 8 : i32
      %c0_i32_38 = arith.constant 0 : i32
      %69 = tpu.memref_slice %arg3[%68, %c0_i32_38] : memref<30522x128xf32, #tpu.memory_space<any>> -> memref<1x128xf32, #tpu.memory_space<any>>
      %c8_i32_39 = arith.constant 8 : i32
      %c0_i32_40 = arith.constant 0 : i32
      %70 = tpu.memref_slice %arg4[%c8_i32_39, %c0_i32_40] : memref<256x128xf32, #tpu.memory_space<vmem>> -> memref<1x128xf32, #tpu.memory_space<vmem>>
      %71 = tpu.memref_slice %arg5[%c8_i32_37] : memref<32x!tpu.dma_semaphore, #tpu.memory_space<semaphore_mem>> -> memref<1x!tpu.dma_semaphore, #tpu.memory_space<semaphore_mem>>
      %72 = tpu.memref_squeeze %71 : memref<1x!tpu.dma_semaphore, #tpu.memory_space<semaphore_mem>> -> memref<!tpu.dma_semaphore, #tpu.memory_space<semaphore_mem>>
      tpu.enqueue_dma source(%69 : memref<1x128xf32, #tpu.memory_space<any>>) target(%70 : memref<1x128xf32, #tpu.memory_space<vmem>>) target_semaphore(%72 : memref<!tpu.dma_semaphore, #tpu.memory_space<semaphore_mem>>)
      %c9_i32 = arith.constant 9 : i32
      %73 = arith.addi %0, %c9_i32 : i32
      %74 = arith.index_cast %73 : i32 to index
      %75 = memref.load %arg2[%74] : memref<256xi32, #tpu.memory_space<smem>>
      %c9_i32_41 = arith.constant 9 : i32
      %c0_i32_42 = arith.constant 0 : i32
      %76 = tpu.memref_slice %arg3[%75, %c0_i32_42] : memref<30522x128xf32, #tpu.memory_space<any>> -> memref<1x128xf32, #tpu.memory_space<any>>
      %c9_i32_43 = arith.constant 9 : i32
      %c0_i32_44 = arith.constant 0 : i32
      %77 = tpu.memref_slice %arg4[%c9_i32_43, %c0_i32_44] : memref<256x128xf32, #tpu.memory_space<vmem>> -> memref<1x128xf32, #tpu.memory_space<vmem>>
      %78 = tpu.memref_slice %arg5[%c9_i32_41] : memref<32x!tpu.dma_semaphore, #tpu.memory_space<semaphore_mem>> -> memref<1x!tpu.dma_semaphore, #tpu.memory_space<semaphore_mem>>
      %79 = tpu.memref_squeeze %78 : memref<1x!tpu.dma_semaphore, #tpu.memory_space<semaphore_mem>> -> memref<!tpu.dma_semaphore, #tpu.memory_space<semaphore_mem>>
      tpu.enqueue_dma source(%76 : memref<1x128xf32, #tpu.memory_space<any>>) target(%77 : memref<1x128xf32, #tpu.memory_space<vmem>>) target_semaphore(%79 : memref<!tpu.dma_semaphore, #tpu.memory_space<semaphore_mem>>)
      %c10_i32 = arith.constant 10 : i32
      %80 = arith.addi %0, %c10_i32 : i32
      %81 = arith.index_cast %80 : i32 to index
      %82 = memref.load %arg2[%81] : memref<256xi32, #tpu.memory_space<smem>>
      %c10_i32_45 = arith.constant 10 : i32
      %c0_i32_46 = arith.constant 0 : i32
      %83 = tpu.memref_slice %arg3[%82, %c0_i32_46] : memref<30522x128xf32, #tpu.memory_space<any>> -> memref<1x128xf32, #tpu.memory_space<any>>
      %c10_i32_47 = arith.constant 10 : i32
      %c0_i32_48 = arith.constant 0 : i32
      %84 = tpu.memref_slice %arg4[%c10_i32_47, %c0_i32_48] : memref<256x128xf32, #tpu.memory_space<vmem>> -> memref<1x128xf32, #tpu.memory_space<vmem>>
      %85 = tpu.memref_slice %arg5[%c10_i32_45] : memref<32x!tpu.dma_semaphore, #tpu.memory_space<semaphore_mem>> -> memref<1x!tpu.dma_semaphore, #tpu.memory_space<semaphore_mem>>
      %86 = tpu.memref_squeeze %85 : memref<1x!tpu.dma_semaphore, #tpu.memory_space<semaphore_mem>> -> memref<!tpu.dma_semaphore, #tpu.memory_space<semaphore_mem>>
      tpu.enqueue_dma source(%83 : memref<1x128xf32, #tpu.memory_space<any>>) target(%84 : memref<1x128xf32, #tpu.memory_space<vmem>>) target_semaphore(%86 : memref<!tpu.dma_semaphore, #tpu.memory_space<semaphore_mem>>)
      %c11_i32 = arith.constant 11 : i32
      %87 = arith.addi %0, %c11_i32 : i32
      %88 = arith.index_cast %87 : i32 to index
      %89 = memref.load %arg2[%88] : memref<256xi32, #tpu.memory_space<smem>>
      %c11_i32_49 = arith.constant 11 : i32
      %c0_i32_50 = arith.constant 0 : i32
      %90 = tpu.memref_slice %arg3[%89, %c0_i32_50] : memref<30522x128xf32, #tpu.memory_space<any>> -> memref<1x128xf32, #tpu.memory_space<any>>
      %c11_i32_51 = arith.constant 11 : i32
      %c0_i32_52 = arith.constant 0 : i32
      %91 = tpu.memref_slice %arg4[%c11_i32_51, %c0_i32_52] : memref<256x128xf32, #tpu.memory_space<vmem>> -> memref<1x128xf32, #tpu.memory_space<vmem>>
      %92 = tpu.memref_slice %arg5[%c11_i32_49] : memref<32x!tpu.dma_semaphore, #tpu.memory_space<semaphore_mem>> -> memref<1x!tpu.dma_semaphore, #tpu.memory_space<semaphore_mem>>
      %93 = tpu.memref_squeeze %92 : memref<1x!tpu.dma_semaphore, #tpu.memory_space<semaphore_mem>> -> memref<!tpu.dma_semaphore, #tpu.memory_space<semaphore_mem>>
      tpu.enqueue_dma source(%90 : memref<1x128xf32, #tpu.memory_space<any>>) target(%91 : memref<1x128xf32, #tpu.memory_space<vmem>>) target_semaphore(%93 : memref<!tpu.dma_semaphore, #tpu.memory_space<semaphore_mem>>)
      %c12_i32 = arith.constant 12 : i32
      %94 = arith.addi %0, %c12_i32 : i32
      %95 = arith.index_cast %94 : i32 to index
      %96 = memref.load %arg2[%95] : memref<256xi32, #tpu.memory_space<smem>>
      %c12_i32_53 = arith.constant 12 : i32
      %c0_i32_54 = arith.constant 0 : i32
      %97 = tpu.memref_slice %arg3[%96, %c0_i32_54] : memref<30522x128xf32, #tpu.memory_space<any>> -> memref<1x128xf32, #tpu.memory_space<any>>
      %c12_i32_55 = arith.constant 12 : i32
      %c0_i32_56 = arith.constant 0 : i32
      %98 = tpu.memref_slice %arg4[%c12_i32_55, %c0_i32_56] : memref<256x128xf32, #tpu.memory_space<vmem>> -> memref<1x128xf32, #tpu.memory_space<vmem>>
      %99 = tpu.memref_slice %arg5[%c12_i32_53] : memref<32x!tpu.dma_semaphore, #tpu.memory_space<semaphore_mem>> -> memref<1x!tpu.dma_semaphore, #tpu.memory_space<semaphore_mem>>
      %100 = tpu.memref_squeeze %99 : memref<1x!tpu.dma_semaphore, #tpu.memory_space<semaphore_mem>> -> memref<!tpu.dma_semaphore, #tpu.memory_space<semaphore_mem>>
      tpu.enqueue_dma source(%97 : memref<1x128xf32, #tpu.memory_space<any>>) target(%98 : memref<1x128xf32, #tpu.memory_space<vmem>>) target_semaphore(%100 : memref<!tpu.dma_semaphore, #tpu.memory_space<semaphore_mem>>)
      %c13_i32 = arith.constant 13 : i32
      %101 = arith.addi %0, %c13_i32 : i32
      %102 = arith.index_cast %101 : i32 to index
      %103 = memref.load %arg2[%102] : memref<256xi32, #tpu.memory_space<smem>>
      %c13_i32_57 = arith.constant 13 : i32
      %c0_i32_58 = arith.constant 0 : i32
      %104 = tpu.memref_slice %arg3[%103, %c0_i32_58] : memref<30522x128xf32, #tpu.memory_space<any>> -> memref<1x128xf32, #tpu.memory_space<any>>
      %c13_i32_59 = arith.constant 13 : i32
      %c0_i32_60 = arith.constant 0 : i32
      %105 = tpu.memref_slice %arg4[%c13_i32_59, %c0_i32_60] : memref<256x128xf32, #tpu.memory_space<vmem>> -> memref<1x128xf32, #tpu.memory_space<vmem>>
      %106 = tpu.memref_slice %arg5[%c13_i32_57] : memref<32x!tpu.dma_semaphore, #tpu.memory_space<semaphore_mem>> -> memref<1x!tpu.dma_semaphore, #tpu.memory_space<semaphore_mem>>
      %107 = tpu.memref_squeeze %106 : memref<1x!tpu.dma_semaphore, #tpu.memory_space<semaphore_mem>> -> memref<!tpu.dma_semaphore, #tpu.memory_space<semaphore_mem>>
      tpu.enqueue_dma source(%104 : memref<1x128xf32, #tpu.memory_space<any>>) target(%105 : memref<1x128xf32, #tpu.memory_space<vmem>>) target_semaphore(%107 : memref<!tpu.dma_semaphore, #tpu.memory_space<semaphore_mem>>)
      %c14_i32 = arith.constant 14 : i32
      %108 = arith.addi %0, %c14_i32 : i32
      %109 = arith.index_cast %108 : i32 to index
      %110 = memref.load %arg2[%109] : memref<256xi32, #tpu.memory_space<smem>>
      %c14_i32_61 = arith.constant 14 : i32
      %c0_i32_62 = arith.constant 0 : i32
      %111 = tpu.memref_slice %arg3[%110, %c0_i32_62] : memref<30522x128xf32, #tpu.memory_space<any>> -> memref<1x128xf32, #tpu.memory_space<any>>
      %c14_i32_63 = arith.constant 14 : i32
      %c0_i32_64 = arith.constant 0 : i32
      %112 = tpu.memref_slice %arg4[%c14_i32_63, %c0_i32_64] : memref<256x128xf32, #tpu.memory_space<vmem>> -> memref<1x128xf32, #tpu.memory_space<vmem>>
      %113 = tpu.memref_slice %arg5[%c14_i32_61] : memref<32x!tpu.dma_semaphore, #tpu.memory_space<semaphore_mem>> -> memref<1x!tpu.dma_semaphore, #tpu.memory_space<semaphore_mem>>
      %114 = tpu.memref_squeeze %113 : memref<1x!tpu.dma_semaphore, #tpu.memory_space<semaphore_mem>> -> memref<!tpu.dma_semaphore, #tpu.memory_space<semaphore_mem>>
      tpu.enqueue_dma source(%111 : memref<1x128xf32, #tpu.memory_space<any>>) target(%112 : memref<1x128xf32, #tpu.memory_space<vmem>>) target_semaphore(%114 : memref<!tpu.dma_semaphore, #tpu.memory_space<semaphore_mem>>)
      %c15_i32 = arith.constant 15 : i32
      %115 = arith.addi %0, %c15_i32 : i32
      %116 = arith.index_cast %115 : i32 to index
      %117 = memref.load %arg2[%116] : memref<256xi32, #tpu.memory_space<smem>>
      %c15_i32_65 = arith.constant 15 : i32
      %c0_i32_66 = arith.constant 0 : i32
      %118 = tpu.memref_slice %arg3[%117, %c0_i32_66] : memref<30522x128xf32, #tpu.memory_space<any>> -> memref<1x128xf32, #tpu.memory_space<any>>
      %c15_i32_67 = arith.constant 15 : i32
      %c0_i32_68 = arith.constant 0 : i32
      %119 = tpu.memref_slice %arg4[%c15_i32_67, %c0_i32_68] : memref<256x128xf32, #tpu.memory_space<vmem>> -> memref<1x128xf32, #tpu.memory_space<vmem>>
      %120 = tpu.memref_slice %arg5[%c15_i32_65] : memref<32x!tpu.dma_semaphore, #tpu.memory_space<semaphore_mem>> -> memref<1x!tpu.dma_semaphore, #tpu.memory_space<semaphore_mem>>
      %121 = tpu.memref_squeeze %120 : memref<1x!tpu.dma_semaphore, #tpu.memory_space<semaphore_mem>> -> memref<!tpu.dma_semaphore, #tpu.memory_space<semaphore_mem>>
      tpu.enqueue_dma source(%118 : memref<1x128xf32, #tpu.memory_space<any>>) target(%119 : memref<1x128xf32, #tpu.memory_space<vmem>>) target_semaphore(%121 : memref<!tpu.dma_semaphore, #tpu.memory_space<semaphore_mem>>)
      %c16_i32 = arith.constant 16 : i32
      %122 = arith.addi %0, %c16_i32 : i32
      %123 = arith.index_cast %122 : i32 to index
      %124 = memref.load %arg2[%123] : memref<256xi32, #tpu.memory_space<smem>>
      %c16_i32_69 = arith.constant 16 : i32
      %c0_i32_70 = arith.constant 0 : i32
      %125 = tpu.memref_slice %arg3[%124, %c0_i32_70] : memref<30522x128xf32, #tpu.memory_space<any>> -> memref<1x128xf32, #tpu.memory_space<any>>
      %c16_i32_71 = arith.constant 16 : i32
      %c0_i32_72 = arith.constant 0 : i32
      %126 = tpu.memref_slice %arg4[%c16_i32_71, %c0_i32_72] : memref<256x128xf32, #tpu.memory_space<vmem>> -> memref<1x128xf32, #tpu.memory_space<vmem>>
      %127 = tpu.memref_slice %arg5[%c16_i32_69] : memref<32x!tpu.dma_semaphore, #tpu.memory_space<semaphore_mem>> -> memref<1x!tpu.dma_semaphore, #tpu.memory_space<semaphore_mem>>
      %128 = tpu.memref_squeeze %127 : memref<1x!tpu.dma_semaphore, #tpu.memory_space<semaphore_mem>> -> memref<!tpu.dma_semaphore, #tpu.memory_space<semaphore_mem>>
      tpu.enqueue_dma source(%125 : memref<1x128xf32, #tpu.memory_space<any>>) target(%126 : memref<1x128xf32, #tpu.memory_space<vmem>>) target_semaphore(%128 : memref<!tpu.dma_semaphore, #tpu.memory_space<semaphore_mem>>)
      %c17_i32 = arith.constant 17 : i32
      %129 = arith.addi %0, %c17_i32 : i32
      %130 = arith.index_cast %129 : i32 to index
      %131 = memref.load %arg2[%130] : memref<256xi32, #tpu.memory_space<smem>>
      %c17_i32_73 = arith.constant 17 : i32
      %c0_i32_74 = arith.constant 0 : i32
      %132 = tpu.memref_slice %arg3[%131, %c0_i32_74] : memref<30522x128xf32, #tpu.memory_space<any>> -> memref<1x128xf32, #tpu.memory_space<any>>
      %c17_i32_75 = arith.constant 17 : i32
      %c0_i32_76 = arith.constant 0 : i32
      %133 = tpu.memref_slice %arg4[%c17_i32_75, %c0_i32_76] : memref<256x128xf32, #tpu.memory_space<vmem>> -> memref<1x128xf32, #tpu.memory_space<vmem>>
      %134 = tpu.memref_slice %arg5[%c17_i32_73] : memref<32x!tpu.dma_semaphore, #tpu.memory_space<semaphore_mem>> -> memref<1x!tpu.dma_semaphore, #tpu.memory_space<semaphore_mem>>
      %135 = tpu.memref_squeeze %134 : memref<1x!tpu.dma_semaphore, #tpu.memory_space<semaphore_mem>> -> memref<!tpu.dma_semaphore, #tpu.memory_space<semaphore_mem>>
      tpu.enqueue_dma source(%132 : memref<1x128xf32, #tpu.memory_space<any>>) target(%133 : memref<1x128xf32, #tpu.memory_space<vmem>>) target_semaphore(%135 : memref<!tpu.dma_semaphore, #tpu.memory_space<semaphore_mem>>)
      %c18_i32 = arith.constant 18 : i32
      %136 = arith.addi %0, %c18_i32 : i32
      %137 = arith.index_cast %136 : i32 to index
      %138 = memref.load %arg2[%137] : memref<256xi32, #tpu.memory_space<smem>>
      %c18_i32_77 = arith.constant 18 : i32
      %c0_i32_78 = arith.constant 0 : i32
      %139 = tpu.memref_slice %arg3[%138, %c0_i32_78] : memref<30522x128xf32, #tpu.memory_space<any>> -> memref<1x128xf32, #tpu.memory_space<any>>
      %c18_i32_79 = arith.constant 18 : i32
      %c0_i32_80 = arith.constant 0 : i32
      %140 = tpu.memref_slice %arg4[%c18_i32_79, %c0_i32_80] : memref<256x128xf32, #tpu.memory_space<vmem>> -> memref<1x128xf32, #tpu.memory_space<vmem>>
      %141 = tpu.memref_slice %arg5[%c18_i32_77] : memref<32x!tpu.dma_semaphore, #tpu.memory_space<semaphore_mem>> -> memref<1x!tpu.dma_semaphore, #tpu.memory_space<semaphore_mem>>
      %142 = tpu.memref_squeeze %141 : memref<1x!tpu.dma_semaphore, #tpu.memory_space<semaphore_mem>> -> memref<!tpu.dma_semaphore, #tpu.memory_space<semaphore_mem>>
      tpu.enqueue_dma source(%139 : memref<1x128xf32, #tpu.memory_space<any>>) target(%140 : memref<1x128xf32, #tpu.memory_space<vmem>>) target_semaphore(%142 : memref<!tpu.dma_semaphore, #tpu.memory_space<semaphore_mem>>)
      %c19_i32 = arith.constant 19 : i32
      %143 = arith.addi %0, %c19_i32 : i32
      %144 = arith.index_cast %143 : i32 to index
      %145 = memref.load %arg2[%144] : memref<256xi32, #tpu.memory_space<smem>>
      %c19_i32_81 = arith.constant 19 : i32
      %c0_i32_82 = arith.constant 0 : i32
      %146 = tpu.memref_slice %arg3[%145, %c0_i32_82] : memref<30522x128xf32, #tpu.memory_space<any>> -> memref<1x128xf32, #tpu.memory_space<any>>
      %c19_i32_83 = arith.constant 19 : i32
      %c0_i32_84 = arith.constant 0 : i32
      %147 = tpu.memref_slice %arg4[%c19_i32_83, %c0_i32_84] : memref<256x128xf32, #tpu.memory_space<vmem>> -> memref<1x128xf32, #tpu.memory_space<vmem>>
      %148 = tpu.memref_slice %arg5[%c19_i32_81] : memref<32x!tpu.dma_semaphore, #tpu.memory_space<semaphore_mem>> -> memref<1x!tpu.dma_semaphore, #tpu.memory_space<semaphore_mem>>
      %149 = tpu.memref_squeeze %148 : memref<1x!tpu.dma_semaphore, #tpu.memory_space<semaphore_mem>> -> memref<!tpu.dma_semaphore, #tpu.memory_space<semaphore_mem>>
      tpu.enqueue_dma source(%146 : memref<1x128xf32, #tpu.memory_space<any>>) target(%147 : memref<1x128xf32, #tpu.memory_space<vmem>>) target_semaphore(%149 : memref<!tpu.dma_semaphore, #tpu.memory_space<semaphore_mem>>)
      %c20_i32 = arith.constant 20 : i32
      %150 = arith.addi %0, %c20_i32 : i32
      %151 = arith.index_cast %150 : i32 to index
      %152 = memref.load %arg2[%151] : memref<256xi32, #tpu.memory_space<smem>>
      %c20_i32_85 = arith.constant 20 : i32
      %c0_i32_86 = arith.constant 0 : i32
      %153 = tpu.memref_slice %arg3[%152, %c0_i32_86] : memref<30522x128xf32, #tpu.memory_space<any>> -> memref<1x128xf32, #tpu.memory_space<any>>
      %c20_i32_87 = arith.constant 20 : i32
      %c0_i32_88 = arith.constant 0 : i32
      %154 = tpu.memref_slice %arg4[%c20_i32_87, %c0_i32_88] : memref<256x128xf32, #tpu.memory_space<vmem>> -> memref<1x128xf32, #tpu.memory_space<vmem>>
      %155 = tpu.memref_slice %arg5[%c20_i32_85] : memref<32x!tpu.dma_semaphore, #tpu.memory_space<semaphore_mem>> -> memref<1x!tpu.dma_semaphore, #tpu.memory_space<semaphore_mem>>
      %156 = tpu.memref_squeeze %155 : memref<1x!tpu.dma_semaphore, #tpu.memory_space<semaphore_mem>> -> memref<!tpu.dma_semaphore, #tpu.memory_space<semaphore_mem>>
      tpu.enqueue_dma source(%153 : memref<1x128xf32, #tpu.memory_space<any>>) target(%154 : memref<1x128xf32, #tpu.memory_space<vmem>>) target_semaphore(%156 : memref<!tpu.dma_semaphore, #tpu.memory_space<semaphore_mem>>)
      %c21_i32 = arith.constant 21 : i32
      %157 = arith.addi %0, %c21_i32 : i32
      %158 = arith.index_cast %157 : i32 to index
      %159 = memref.load %arg2[%158] : memref<256xi32, #tpu.memory_space<smem>>
      %c21_i32_89 = arith.constant 21 : i32
      %c0_i32_90 = arith.constant 0 : i32
      %160 = tpu.memref_slice %arg3[%159, %c0_i32_90] : memref<30522x128xf32, #tpu.memory_space<any>> -> memref<1x128xf32, #tpu.memory_space<any>>
      %c21_i32_91 = arith.constant 21 : i32
      %c0_i32_92 = arith.constant 0 : i32
      %161 = tpu.memref_slice %arg4[%c21_i32_91, %c0_i32_92] : memref<256x128xf32, #tpu.memory_space<vmem>> -> memref<1x128xf32, #tpu.memory_space<vmem>>
      %162 = tpu.memref_slice %arg5[%c21_i32_89] : memref<32x!tpu.dma_semaphore, #tpu.memory_space<semaphore_mem>> -> memref<1x!tpu.dma_semaphore, #tpu.memory_space<semaphore_mem>>
      %163 = tpu.memref_squeeze %162 : memref<1x!tpu.dma_semaphore, #tpu.memory_space<semaphore_mem>> -> memref<!tpu.dma_semaphore, #tpu.memory_space<semaphore_mem>>
      tpu.enqueue_dma source(%160 : memref<1x128xf32, #tpu.memory_space<any>>) target(%161 : memref<1x128xf32, #tpu.memory_space<vmem>>) target_semaphore(%163 : memref<!tpu.dma_semaphore, #tpu.memory_space<semaphore_mem>>)
      %c22_i32 = arith.constant 22 : i32
      %164 = arith.addi %0, %c22_i32 : i32
      %165 = arith.index_cast %164 : i32 to index
      %166 = memref.load %arg2[%165] : memref<256xi32, #tpu.memory_space<smem>>
      %c22_i32_93 = arith.constant 22 : i32
      %c0_i32_94 = arith.constant 0 : i32
      %167 = tpu.memref_slice %arg3[%166, %c0_i32_94] : memref<30522x128xf32, #tpu.memory_space<any>> -> memref<1x128xf32, #tpu.memory_space<any>>
      %c22_i32_95 = arith.constant 22 : i32
      %c0_i32_96 = arith.constant 0 : i32
      %168 = tpu.memref_slice %arg4[%c22_i32_95, %c0_i32_96] : memref<256x128xf32, #tpu.memory_space<vmem>> -> memref<1x128xf32, #tpu.memory_space<vmem>>
      %169 = tpu.memref_slice %arg5[%c22_i32_93] : memref<32x!tpu.dma_semaphore, #tpu.memory_space<semaphore_mem>> -> memref<1x!tpu.dma_semaphore, #tpu.memory_space<semaphore_mem>>
      %170 = tpu.memref_squeeze %169 : memref<1x!tpu.dma_semaphore, #tpu.memory_space<semaphore_mem>> -> memref<!tpu.dma_semaphore, #tpu.memory_space<semaphore_mem>>
      tpu.enqueue_dma source(%167 : memref<1x128xf32, #tpu.memory_space<any>>) target(%168 : memref<1x128xf32, #tpu.memory_space<vmem>>) target_semaphore(%170 : memref<!tpu.dma_semaphore, #tpu.memory_space<semaphore_mem>>)
      %c23_i32 = arith.constant 23 : i32
      %171 = arith.addi %0, %c23_i32 : i32
      %172 = arith.index_cast %171 : i32 to index
      %173 = memref.load %arg2[%172] : memref<256xi32, #tpu.memory_space<smem>>
      %c23_i32_97 = arith.constant 23 : i32
      %c0_i32_98 = arith.constant 0 : i32
      %174 = tpu.memref_slice %arg3[%173, %c0_i32_98] : memref<30522x128xf32, #tpu.memory_space<any>> -> memref<1x128xf32, #tpu.memory_space<any>>
      %c23_i32_99 = arith.constant 23 : i32
      %c0_i32_100 = arith.constant 0 : i32
      %175 = tpu.memref_slice %arg4[%c23_i32_99, %c0_i32_100] : memref<256x128xf32, #tpu.memory_space<vmem>> -> memref<1x128xf32, #tpu.memory_space<vmem>>
      %176 = tpu.memref_slice %arg5[%c23_i32_97] : memref<32x!tpu.dma_semaphore, #tpu.memory_space<semaphore_mem>> -> memref<1x!tpu.dma_semaphore, #tpu.memory_space<semaphore_mem>>
      %177 = tpu.memref_squeeze %176 : memref<1x!tpu.dma_semaphore, #tpu.memory_space<semaphore_mem>> -> memref<!tpu.dma_semaphore, #tpu.memory_space<semaphore_mem>>
      tpu.enqueue_dma source(%174 : memref<1x128xf32, #tpu.memory_space<any>>) target(%175 : memref<1x128xf32, #tpu.memory_space<vmem>>) target_semaphore(%177 : memref<!tpu.dma_semaphore, #tpu.memory_space<semaphore_mem>>)
      %c24_i32 = arith.constant 24 : i32
      %178 = arith.addi %0, %c24_i32 : i32
      %179 = arith.index_cast %178 : i32 to index
      %180 = memref.load %arg2[%179] : memref<256xi32, #tpu.memory_space<smem>>
      %c24_i32_101 = arith.constant 24 : i32
      %c0_i32_102 = arith.constant 0 : i32
      %181 = tpu.memref_slice %arg3[%180, %c0_i32_102] : memref<30522x128xf32, #tpu.memory_space<any>> -> memref<1x128xf32, #tpu.memory_space<any>>
      %c24_i32_103 = arith.constant 24 : i32
      %c0_i32_104 = arith.constant 0 : i32
      %182 = tpu.memref_slice %arg4[%c24_i32_103, %c0_i32_104] : memref<256x128xf32, #tpu.memory_space<vmem>> -> memref<1x128xf32, #tpu.memory_space<vmem>>
      %183 = tpu.memref_slice %arg5[%c24_i32_101] : memref<32x!tpu.dma_semaphore, #tpu.memory_space<semaphore_mem>> -> memref<1x!tpu.dma_semaphore, #tpu.memory_space<semaphore_mem>>
      %184 = tpu.memref_squeeze %183 : memref<1x!tpu.dma_semaphore, #tpu.memory_space<semaphore_mem>> -> memref<!tpu.dma_semaphore, #tpu.memory_space<semaphore_mem>>
      tpu.enqueue_dma source(%181 : memref<1x128xf32, #tpu.memory_space<any>>) target(%182 : memref<1x128xf32, #tpu.memory_space<vmem>>) target_semaphore(%184 : memref<!tpu.dma_semaphore, #tpu.memory_space<semaphore_mem>>)
      %c25_i32 = arith.constant 25 : i32
      %185 = arith.addi %0, %c25_i32 : i32
      %186 = arith.index_cast %185 : i32 to index
      %187 = memref.load %arg2[%186] : memref<256xi32, #tpu.memory_space<smem>>
      %c25_i32_105 = arith.constant 25 : i32
      %c0_i32_106 = arith.constant 0 : i32
      %188 = tpu.memref_slice %arg3[%187, %c0_i32_106] : memref<30522x128xf32, #tpu.memory_space<any>> -> memref<1x128xf32, #tpu.memory_space<any>>
      %c25_i32_107 = arith.constant 25 : i32
      %c0_i32_108 = arith.constant 0 : i32
      %189 = tpu.memref_slice %arg4[%c25_i32_107, %c0_i32_108] : memref<256x128xf32, #tpu.memory_space<vmem>> -> memref<1x128xf32, #tpu.memory_space<vmem>>
      %190 = tpu.memref_slice %arg5[%c25_i32_105] : memref<32x!tpu.dma_semaphore, #tpu.memory_space<semaphore_mem>> -> memref<1x!tpu.dma_semaphore, #tpu.memory_space<semaphore_mem>>
      %191 = tpu.memref_squeeze %190 : memref<1x!tpu.dma_semaphore, #tpu.memory_space<semaphore_mem>> -> memref<!tpu.dma_semaphore, #tpu.memory_space<semaphore_mem>>
      tpu.enqueue_dma source(%188 : memref<1x128xf32, #tpu.memory_space<any>>) target(%189 : memref<1x128xf32, #tpu.memory_space<vmem>>) target_semaphore(%191 : memref<!tpu.dma_semaphore, #tpu.memory_space<semaphore_mem>>)
      %c26_i32 = arith.constant 26 : i32
      %192 = arith.addi %0, %c26_i32 : i32
      %193 = arith.index_cast %192 : i32 to index
      %194 = memref.load %arg2[%193] : memref<256xi32, #tpu.memory_space<smem>>
      %c26_i32_109 = arith.constant 26 : i32
      %c0_i32_110 = arith.constant 0 : i32
      %195 = tpu.memref_slice %arg3[%194, %c0_i32_110] : memref<30522x128xf32, #tpu.memory_space<any>> -> memref<1x128xf32, #tpu.memory_space<any>>
      %c26_i32_111 = arith.constant 26 : i32
      %c0_i32_112 = arith.constant 0 : i32
      %196 = tpu.memref_slice %arg4[%c26_i32_111, %c0_i32_112] : memref<256x128xf32, #tpu.memory_space<vmem>> -> memref<1x128xf32, #tpu.memory_space<vmem>>
      %197 = tpu.memref_slice %arg5[%c26_i32_109] : memref<32x!tpu.dma_semaphore, #tpu.memory_space<semaphore_mem>> -> memref<1x!tpu.dma_semaphore, #tpu.memory_space<semaphore_mem>>
      %198 = tpu.memref_squeeze %197 : memref<1x!tpu.dma_semaphore, #tpu.memory_space<semaphore_mem>> -> memref<!tpu.dma_semaphore, #tpu.memory_space<semaphore_mem>>
      tpu.enqueue_dma source(%195 : memref<1x128xf32, #tpu.memory_space<any>>) target(%196 : memref<1x128xf32, #tpu.memory_space<vmem>>) target_semaphore(%198 : memref<!tpu.dma_semaphore, #tpu.memory_space<semaphore_mem>>)
      %c27_i32 = arith.constant 27 : i32
      %199 = arith.addi %0, %c27_i32 : i32
      %200 = arith.index_cast %199 : i32 to index
      %201 = memref.load %arg2[%200] : memref<256xi32, #tpu.memory_space<smem>>
      %c27_i32_113 = arith.constant 27 : i32
      %c0_i32_114 = arith.constant 0 : i32
      %202 = tpu.memref_slice %arg3[%201, %c0_i32_114] : memref<30522x128xf32, #tpu.memory_space<any>> -> memref<1x128xf32, #tpu.memory_space<any>>
      %c27_i32_115 = arith.constant 27 : i32
      %c0_i32_116 = arith.constant 0 : i32
      %203 = tpu.memref_slice %arg4[%c27_i32_115, %c0_i32_116] : memref<256x128xf32, #tpu.memory_space<vmem>> -> memref<1x128xf32, #tpu.memory_space<vmem>>
      %204 = tpu.memref_slice %arg5[%c27_i32_113] : memref<32x!tpu.dma_semaphore, #tpu.memory_space<semaphore_mem>> -> memref<1x!tpu.dma_semaphore, #tpu.memory_space<semaphore_mem>>
      %205 = tpu.memref_squeeze %204 : memref<1x!tpu.dma_semaphore, #tpu.memory_space<semaphore_mem>> -> memref<!tpu.dma_semaphore, #tpu.memory_space<semaphore_mem>>
      tpu.enqueue_dma source(%202 : memref<1x128xf32, #tpu.memory_space<any>>) target(%203 : memref<1x128xf32, #tpu.memory_space<vmem>>) target_semaphore(%205 : memref<!tpu.dma_semaphore, #tpu.memory_space<semaphore_mem>>)
      %c28_i32 = arith.constant 28 : i32
      %206 = arith.addi %0, %c28_i32 : i32
      %207 = arith.index_cast %206 : i32 to index
      %208 = memref.load %arg2[%207] : memref<256xi32, #tpu.memory_space<smem>>
      %c28_i32_117 = arith.constant 28 : i32
      %c0_i32_118 = arith.constant 0 : i32
      %209 = tpu.memref_slice %arg3[%208, %c0_i32_118] : memref<30522x128xf32, #tpu.memory_space<any>> -> memref<1x128xf32, #tpu.memory_space<any>>
      %c28_i32_119 = arith.constant 28 : i32
      %c0_i32_120 = arith.constant 0 : i32
      %210 = tpu.memref_slice %arg4[%c28_i32_119, %c0_i32_120] : memref<256x128xf32, #tpu.memory_space<vmem>> -> memref<1x128xf32, #tpu.memory_space<vmem>>
      %211 = tpu.memref_slice %arg5[%c28_i32_117] : memref<32x!tpu.dma_semaphore, #tpu.memory_space<semaphore_mem>> -> memref<1x!tpu.dma_semaphore, #tpu.memory_space<semaphore_mem>>
      %212 = tpu.memref_squeeze %211 : memref<1x!tpu.dma_semaphore, #tpu.memory_space<semaphore_mem>> -> memref<!tpu.dma_semaphore, #tpu.memory_space<semaphore_mem>>
      tpu.enqueue_dma source(%209 : memref<1x128xf32, #tpu.memory_space<any>>) target(%210 : memref<1x128xf32, #tpu.memory_space<vmem>>) target_semaphore(%212 : memref<!tpu.dma_semaphore, #tpu.memory_space<semaphore_mem>>)
      %c29_i32 = arith.constant 29 : i32
      %213 = arith.addi %0, %c29_i32 : i32
      %214 = arith.index_cast %213 : i32 to index
      %215 = memref.load %arg2[%214] : memref<256xi32, #tpu.memory_space<smem>>
      %c29_i32_121 = arith.constant 29 : i32
      %c0_i32_122 = arith.constant 0 : i32
      %216 = tpu.memref_slice %arg3[%215, %c0_i32_122] : memref<30522x128xf32, #tpu.memory_space<any>> -> memref<1x128xf32, #tpu.memory_space<any>>
      %c29_i32_123 = arith.constant 29 : i32
      %c0_i32_124 = arith.constant 0 : i32
      %217 = tpu.memref_slice %arg4[%c29_i32_123, %c0_i32_124] : memref<256x128xf32, #tpu.memory_space<vmem>> -> memref<1x128xf32, #tpu.memory_space<vmem>>
      %218 = tpu.memref_slice %arg5[%c29_i32_121] : memref<32x!tpu.dma_semaphore, #tpu.memory_space<semaphore_mem>> -> memref<1x!tpu.dma_semaphore, #tpu.memory_space<semaphore_mem>>
      %219 = tpu.memref_squeeze %218 : memref<1x!tpu.dma_semaphore, #tpu.memory_space<semaphore_mem>> -> memref<!tpu.dma_semaphore, #tpu.memory_space<semaphore_mem>>
      tpu.enqueue_dma source(%216 : memref<1x128xf32, #tpu.memory_space<any>>) target(%217 : memref<1x128xf32, #tpu.memory_space<vmem>>) target_semaphore(%219 : memref<!tpu.dma_semaphore, #tpu.memory_space<semaphore_mem>>)
      %c30_i32 = arith.constant 30 : i32
      %220 = arith.addi %0, %c30_i32 : i32
      %221 = arith.index_cast %220 : i32 to index
      %222 = memref.load %arg2[%221] : memref<256xi32, #tpu.memory_space<smem>>
      %c30_i32_125 = arith.constant 30 : i32
      %c0_i32_126 = arith.constant 0 : i32
      %223 = tpu.memref_slice %arg3[%222, %c0_i32_126] : memref<30522x128xf32, #tpu.memory_space<any>> -> memref<1x128xf32, #tpu.memory_space<any>>
      %c30_i32_127 = arith.constant 30 : i32
      %c0_i32_128 = arith.constant 0 : i32
      %224 = tpu.memref_slice %arg4[%c30_i32_127, %c0_i32_128] : memref<256x128xf32, #tpu.memory_space<vmem>> -> memref<1x128xf32, #tpu.memory_space<vmem>>
      %225 = tpu.memref_slice %arg5[%c30_i32_125] : memref<32x!tpu.dma_semaphore, #tpu.memory_space<semaphore_mem>> -> memref<1x!tpu.dma_semaphore, #tpu.memory_space<semaphore_mem>>
      %226 = tpu.memref_squeeze %225 : memref<1x!tpu.dma_semaphore, #tpu.memory_space<semaphore_mem>> -> memref<!tpu.dma_semaphore, #tpu.memory_space<semaphore_mem>>
      tpu.enqueue_dma source(%223 : memref<1x128xf32, #tpu.memory_space<any>>) target(%224 : memref<1x128xf32, #tpu.memory_space<vmem>>) target_semaphore(%226 : memref<!tpu.dma_semaphore, #tpu.memory_space<semaphore_mem>>)
      %c31_i32 = arith.constant 31 : i32
      %227 = arith.addi %0, %c31_i32 : i32
      %228 = arith.index_cast %227 : i32 to index
      %229 = memref.load %arg2[%228] : memref<256xi32, #tpu.memory_space<smem>>
      %c31_i32_129 = arith.constant 31 : i32
      %c0_i32_130 = arith.constant 0 : i32
      %230 = tpu.memref_slice %arg3[%229, %c0_i32_130] : memref<30522x128xf32, #tpu.memory_space<any>> -> memref<1x128xf32, #tpu.memory_space<any>>
      %c31_i32_131 = arith.constant 31 : i32
      %c0_i32_132 = arith.constant 0 : i32
      %231 = tpu.memref_slice %arg4[%c31_i32_131, %c0_i32_132] : memref<256x128xf32, #tpu.memory_space<vmem>> -> memref<1x128xf32, #tpu.memory_space<vmem>>
      %232 = tpu.memref_slice %arg5[%c31_i32_129] : memref<32x!tpu.dma_semaphore, #tpu.memory_space<semaphore_mem>> -> memref<1x!tpu.dma_semaphore, #tpu.memory_space<semaphore_mem>>
      %233 = tpu.memref_squeeze %232 : memref<1x!tpu.dma_semaphore, #tpu.memory_space<semaphore_mem>> -> memref<!tpu.dma_semaphore, #tpu.memory_space<semaphore_mem>>
      tpu.enqueue_dma source(%230 : memref<1x128xf32, #tpu.memory_space<any>>) target(%231 : memref<1x128xf32, #tpu.memory_space<vmem>>) target_semaphore(%233 : memref<!tpu.dma_semaphore, #tpu.memory_space<semaphore_mem>>)
      %c0_i32_133 = arith.constant 0 : i32
      %c28_i32_134 = arith.constant 28 : i32
      %234 = arith.addi %c0_i32_133, %c28_i32_134 : i32
      %c1_i32_135 = arith.constant 1 : i32
      scf.for %arg6 = %c0_i32_133 to %234 step %c1_i32_135  : i32 {
        %c1_i32_297 = arith.constant 1 : i32
        %363 = arith.muli %arg6, %c1_i32_297 : i32
        %c0_i32_298 = arith.constant 0 : i32
        %364 = arith.addi %c0_i32_298, %363 : i32
        %c8_i32_299 = arith.constant 8 : i32
        %365 = arith.muli %364, %c8_i32_299 : i32
        %c0_i32_300 = arith.constant 0 : i32
        %366 = arith.addi %365, %c0_i32_300 : i32
        %367 = arith.addi %0, %366 : i32
        %c32_i32 = arith.constant 32 : i32
        %368 = arith.addi %367, %c32_i32 : i32
        %369 = arith.index_cast %368 : i32 to index
        %370 = memref.load %arg2[%369] : memref<256xi32, #tpu.memory_space<smem>>
        %c31_i32_301 = arith.constant 31 : i32
        %371 = arith.andi %366, %c31_i32_301 : i32
        %c0_i32_302 = arith.constant 0 : i32
        %c0_i32_303 = arith.constant 0 : i32
        %372 = tpu.memref_slice %arg3[%c0_i32_302, %c0_i32_303] : memref<30522x128xf32, #tpu.memory_space<any>> -> memref<1x128xf32, #tpu.memory_space<any>>
        %c0_i32_304 = arith.constant 0 : i32
        %c0_i32_305 = arith.constant 0 : i32
        %373 = tpu.memref_slice %arg4[%c0_i32_304, %c0_i32_305] : memref<256x128xf32, #tpu.memory_space<vmem>> -> memref<1x128xf32, #tpu.memory_space<vmem>>
        %374 = tpu.memref_slice %arg5[%371] : memref<32x!tpu.dma_semaphore, #tpu.memory_space<semaphore_mem>> -> memref<1x!tpu.dma_semaphore, #tpu.memory_space<semaphore_mem>>
        %375 = tpu.memref_squeeze %374 : memref<1x!tpu.dma_semaphore, #tpu.memory_space<semaphore_mem>> -> memref<!tpu.dma_semaphore, #tpu.memory_space<semaphore_mem>>
        tpu.wait_dma2 semaphore(%375 : memref<!tpu.dma_semaphore, #tpu.memory_space<semaphore_mem>>) src(%372 : memref<1x128xf32, #tpu.memory_space<any>>) dst(%373 : memref<1x128xf32, #tpu.memory_space<vmem>>)
        %c32_i32_306 = arith.constant 32 : i32
        %376 = arith.addi %366, %c32_i32_306 : i32
        %c0_i32_307 = arith.constant 0 : i32
        %377 = tpu.memref_slice %arg3[%370, %c0_i32_307] : memref<30522x128xf32, #tpu.memory_space<any>> -> memref<1x128xf32, #tpu.memory_space<any>>
        %c0_i32_308 = arith.constant 0 : i32
        %378 = tpu.memref_slice %arg4[%376, %c0_i32_308] : memref<256x128xf32, #tpu.memory_space<vmem>> -> memref<1x128xf32, #tpu.memory_space<vmem>>
        %379 = tpu.memref_slice %arg5[%371] : memref<32x!tpu.dma_semaphore, #tpu.memory_space<semaphore_mem>> -> memref<1x!tpu.dma_semaphore, #tpu.memory_space<semaphore_mem>>
        %380 = tpu.memref_squeeze %379 : memref<1x!tpu.dma_semaphore, #tpu.memory_space<semaphore_mem>> -> memref<!tpu.dma_semaphore, #tpu.memory_space<semaphore_mem>>
        tpu.enqueue_dma source(%377 : memref<1x128xf32, #tpu.memory_space<any>>) target(%378 : memref<1x128xf32, #tpu.memory_space<vmem>>) target_semaphore(%380 : memref<!tpu.dma_semaphore, #tpu.memory_space<semaphore_mem>>)
        %c1_i32_309 = arith.constant 1 : i32
        %381 = arith.addi %365, %c1_i32_309 : i32
        %382 = arith.addi %0, %381 : i32
        %c32_i32_310 = arith.constant 32 : i32
        %383 = arith.addi %382, %c32_i32_310 : i32
        %384 = arith.index_cast %383 : i32 to index
        %385 = memref.load %arg2[%384] : memref<256xi32, #tpu.memory_space<smem>>
        %c31_i32_311 = arith.constant 31 : i32
        %386 = arith.andi %381, %c31_i32_311 : i32
        %c0_i32_312 = arith.constant 0 : i32
        %c0_i32_313 = arith.constant 0 : i32
        %387 = tpu.memref_slice %arg3[%c0_i32_312, %c0_i32_313] : memref<30522x128xf32, #tpu.memory_space<any>> -> memref<1x128xf32, #tpu.memory_space<any>>
        %c0_i32_314 = arith.constant 0 : i32
        %c0_i32_315 = arith.constant 0 : i32
        %388 = tpu.memref_slice %arg4[%c0_i32_314, %c0_i32_315] : memref<256x128xf32, #tpu.memory_space<vmem>> -> memref<1x128xf32, #tpu.memory_space<vmem>>
        %389 = tpu.memref_slice %arg5[%386] : memref<32x!tpu.dma_semaphore, #tpu.memory_space<semaphore_mem>> -> memref<1x!tpu.dma_semaphore, #tpu.memory_space<semaphore_mem>>
        %390 = tpu.memref_squeeze %389 : memref<1x!tpu.dma_semaphore, #tpu.memory_space<semaphore_mem>> -> memref<!tpu.dma_semaphore, #tpu.memory_space<semaphore_mem>>
        tpu.wait_dma2 semaphore(%390 : memref<!tpu.dma_semaphore, #tpu.memory_space<semaphore_mem>>) src(%387 : memref<1x128xf32, #tpu.memory_space<any>>) dst(%388 : memref<1x128xf32, #tpu.memory_space<vmem>>)
        %c32_i32_316 = arith.constant 32 : i32
        %391 = arith.addi %381, %c32_i32_316 : i32
        %c0_i32_317 = arith.constant 0 : i32
        %392 = tpu.memref_slice %arg3[%385, %c0_i32_317] : memref<30522x128xf32, #tpu.memory_space<any>> -> memref<1x128xf32, #tpu.memory_space<any>>
        %c0_i32_318 = arith.constant 0 : i32
        %393 = tpu.memref_slice %arg4[%391, %c0_i32_318] : memref<256x128xf32, #tpu.memory_space<vmem>> -> memref<1x128xf32, #tpu.memory_space<vmem>>
        %394 = tpu.memref_slice %arg5[%386] : memref<32x!tpu.dma_semaphore, #tpu.memory_space<semaphore_mem>> -> memref<1x!tpu.dma_semaphore, #tpu.memory_space<semaphore_mem>>
        %395 = tpu.memref_squeeze %394 : memref<1x!tpu.dma_semaphore, #tpu.memory_space<semaphore_mem>> -> memref<!tpu.dma_semaphore, #tpu.memory_space<semaphore_mem>>
        tpu.enqueue_dma source(%392 : memref<1x128xf32, #tpu.memory_space<any>>) target(%393 : memref<1x128xf32, #tpu.memory_space<vmem>>) target_semaphore(%395 : memref<!tpu.dma_semaphore, #tpu.memory_space<semaphore_mem>>)
        %c2_i32_319 = arith.constant 2 : i32
        %396 = arith.addi %365, %c2_i32_319 : i32
        %397 = arith.addi %0, %396 : i32
        %c32_i32_320 = arith.constant 32 : i32
        %398 = arith.addi %397, %c32_i32_320 : i32
        %399 = arith.index_cast %398 : i32 to index
        %400 = memref.load %arg2[%399] : memref<256xi32, #tpu.memory_space<smem>>
        %c31_i32_321 = arith.constant 31 : i32
        %401 = arith.andi %396, %c31_i32_321 : i32
        %c0_i32_322 = arith.constant 0 : i32
        %c0_i32_323 = arith.constant 0 : i32
        %402 = tpu.memref_slice %arg3[%c0_i32_322, %c0_i32_323] : memref<30522x128xf32, #tpu.memory_space<any>> -> memref<1x128xf32, #tpu.memory_space<any>>
        %c0_i32_324 = arith.constant 0 : i32
        %c0_i32_325 = arith.constant 0 : i32
        %403 = tpu.memref_slice %arg4[%c0_i32_324, %c0_i32_325] : memref<256x128xf32, #tpu.memory_space<vmem>> -> memref<1x128xf32, #tpu.memory_space<vmem>>
        %404 = tpu.memref_slice %arg5[%401] : memref<32x!tpu.dma_semaphore, #tpu.memory_space<semaphore_mem>> -> memref<1x!tpu.dma_semaphore, #tpu.memory_space<semaphore_mem>>
        %405 = tpu.memref_squeeze %404 : memref<1x!tpu.dma_semaphore, #tpu.memory_space<semaphore_mem>> -> memref<!tpu.dma_semaphore, #tpu.memory_space<semaphore_mem>>
        tpu.wait_dma2 semaphore(%405 : memref<!tpu.dma_semaphore, #tpu.memory_space<semaphore_mem>>) src(%402 : memref<1x128xf32, #tpu.memory_space<any>>) dst(%403 : memref<1x128xf32, #tpu.memory_space<vmem>>)
        %c32_i32_326 = arith.constant 32 : i32
        %406 = arith.addi %396, %c32_i32_326 : i32
        %c0_i32_327 = arith.constant 0 : i32
        %407 = tpu.memref_slice %arg3[%400, %c0_i32_327] : memref<30522x128xf32, #tpu.memory_space<any>> -> memref<1x128xf32, #tpu.memory_space<any>>
        %c0_i32_328 = arith.constant 0 : i32
        %408 = tpu.memref_slice %arg4[%406, %c0_i32_328] : memref<256x128xf32, #tpu.memory_space<vmem>> -> memref<1x128xf32, #tpu.memory_space<vmem>>
        %409 = tpu.memref_slice %arg5[%401] : memref<32x!tpu.dma_semaphore, #tpu.memory_space<semaphore_mem>> -> memref<1x!tpu.dma_semaphore, #tpu.memory_space<semaphore_mem>>
        %410 = tpu.memref_squeeze %409 : memref<1x!tpu.dma_semaphore, #tpu.memory_space<semaphore_mem>> -> memref<!tpu.dma_semaphore, #tpu.memory_space<semaphore_mem>>
        tpu.enqueue_dma source(%407 : memref<1x128xf32, #tpu.memory_space<any>>) target(%408 : memref<1x128xf32, #tpu.memory_space<vmem>>) target_semaphore(%410 : memref<!tpu.dma_semaphore, #tpu.memory_space<semaphore_mem>>)
        %c3_i32_329 = arith.constant 3 : i32
        %411 = arith.addi %365, %c3_i32_329 : i32
        %412 = arith.addi %0, %411 : i32
        %c32_i32_330 = arith.constant 32 : i32
        %413 = arith.addi %412, %c32_i32_330 : i32
        %414 = arith.index_cast %413 : i32 to index
        %415 = memref.load %arg2[%414] : memref<256xi32, #tpu.memory_space<smem>>
        %c31_i32_331 = arith.constant 31 : i32
        %416 = arith.andi %411, %c31_i32_331 : i32
        %c0_i32_332 = arith.constant 0 : i32
        %c0_i32_333 = arith.constant 0 : i32
        %417 = tpu.memref_slice %arg3[%c0_i32_332, %c0_i32_333] : memref<30522x128xf32, #tpu.memory_space<any>> -> memref<1x128xf32, #tpu.memory_space<any>>
        %c0_i32_334 = arith.constant 0 : i32
        %c0_i32_335 = arith.constant 0 : i32
        %418 = tpu.memref_slice %arg4[%c0_i32_334, %c0_i32_335] : memref<256x128xf32, #tpu.memory_space<vmem>> -> memref<1x128xf32, #tpu.memory_space<vmem>>
        %419 = tpu.memref_slice %arg5[%416] : memref<32x!tpu.dma_semaphore, #tpu.memory_space<semaphore_mem>> -> memref<1x!tpu.dma_semaphore, #tpu.memory_space<semaphore_mem>>
        %420 = tpu.memref_squeeze %419 : memref<1x!tpu.dma_semaphore, #tpu.memory_space<semaphore_mem>> -> memref<!tpu.dma_semaphore, #tpu.memory_space<semaphore_mem>>
        tpu.wait_dma2 semaphore(%420 : memref<!tpu.dma_semaphore, #tpu.memory_space<semaphore_mem>>) src(%417 : memref<1x128xf32, #tpu.memory_space<any>>) dst(%418 : memref<1x128xf32, #tpu.memory_space<vmem>>)
        %c32_i32_336 = arith.constant 32 : i32
        %421 = arith.addi %411, %c32_i32_336 : i32
        %c0_i32_337 = arith.constant 0 : i32
        %422 = tpu.memref_slice %arg3[%415, %c0_i32_337] : memref<30522x128xf32, #tpu.memory_space<any>> -> memref<1x128xf32, #tpu.memory_space<any>>
        %c0_i32_338 = arith.constant 0 : i32
        %423 = tpu.memref_slice %arg4[%421, %c0_i32_338] : memref<256x128xf32, #tpu.memory_space<vmem>> -> memref<1x128xf32, #tpu.memory_space<vmem>>
        %424 = tpu.memref_slice %arg5[%416] : memref<32x!tpu.dma_semaphore, #tpu.memory_space<semaphore_mem>> -> memref<1x!tpu.dma_semaphore, #tpu.memory_space<semaphore_mem>>
        %425 = tpu.memref_squeeze %424 : memref<1x!tpu.dma_semaphore, #tpu.memory_space<semaphore_mem>> -> memref<!tpu.dma_semaphore, #tpu.memory_space<semaphore_mem>>
        tpu.enqueue_dma source(%422 : memref<1x128xf32, #tpu.memory_space<any>>) target(%423 : memref<1x128xf32, #tpu.memory_space<vmem>>) target_semaphore(%425 : memref<!tpu.dma_semaphore, #tpu.memory_space<semaphore_mem>>)
        %c4_i32_339 = arith.constant 4 : i32
        %426 = arith.addi %365, %c4_i32_339 : i32
        %427 = arith.addi %0, %426 : i32
        %c32_i32_340 = arith.constant 32 : i32
        %428 = arith.addi %427, %c32_i32_340 : i32
        %429 = arith.index_cast %428 : i32 to index
        %430 = memref.load %arg2[%429] : memref<256xi32, #tpu.memory_space<smem>>
        %c31_i32_341 = arith.constant 31 : i32
        %431 = arith.andi %426, %c31_i32_341 : i32
        %c0_i32_342 = arith.constant 0 : i32
        %c0_i32_343 = arith.constant 0 : i32
        %432 = tpu.memref_slice %arg3[%c0_i32_342, %c0_i32_343] : memref<30522x128xf32, #tpu.memory_space<any>> -> memref<1x128xf32, #tpu.memory_space<any>>
        %c0_i32_344 = arith.constant 0 : i32
        %c0_i32_345 = arith.constant 0 : i32
        %433 = tpu.memref_slice %arg4[%c0_i32_344, %c0_i32_345] : memref<256x128xf32, #tpu.memory_space<vmem>> -> memref<1x128xf32, #tpu.memory_space<vmem>>
        %434 = tpu.memref_slice %arg5[%431] : memref<32x!tpu.dma_semaphore, #tpu.memory_space<semaphore_mem>> -> memref<1x!tpu.dma_semaphore, #tpu.memory_space<semaphore_mem>>
        %435 = tpu.memref_squeeze %434 : memref<1x!tpu.dma_semaphore, #tpu.memory_space<semaphore_mem>> -> memref<!tpu.dma_semaphore, #tpu.memory_space<semaphore_mem>>
        tpu.wait_dma2 semaphore(%435 : memref<!tpu.dma_semaphore, #tpu.memory_space<semaphore_mem>>) src(%432 : memref<1x128xf32, #tpu.memory_space<any>>) dst(%433 : memref<1x128xf32, #tpu.memory_space<vmem>>)
        %c32_i32_346 = arith.constant 32 : i32
        %436 = arith.addi %426, %c32_i32_346 : i32
        %c0_i32_347 = arith.constant 0 : i32
        %437 = tpu.memref_slice %arg3[%430, %c0_i32_347] : memref<30522x128xf32, #tpu.memory_space<any>> -> memref<1x128xf32, #tpu.memory_space<any>>
        %c0_i32_348 = arith.constant 0 : i32
        %438 = tpu.memref_slice %arg4[%436, %c0_i32_348] : memref<256x128xf32, #tpu.memory_space<vmem>> -> memref<1x128xf32, #tpu.memory_space<vmem>>
        %439 = tpu.memref_slice %arg5[%431] : memref<32x!tpu.dma_semaphore, #tpu.memory_space<semaphore_mem>> -> memref<1x!tpu.dma_semaphore, #tpu.memory_space<semaphore_mem>>
        %440 = tpu.memref_squeeze %439 : memref<1x!tpu.dma_semaphore, #tpu.memory_space<semaphore_mem>> -> memref<!tpu.dma_semaphore, #tpu.memory_space<semaphore_mem>>
        tpu.enqueue_dma source(%437 : memref<1x128xf32, #tpu.memory_space<any>>) target(%438 : memref<1x128xf32, #tpu.memory_space<vmem>>) target_semaphore(%440 : memref<!tpu.dma_semaphore, #tpu.memory_space<semaphore_mem>>)
        %c5_i32_349 = arith.constant 5 : i32
        %441 = arith.addi %365, %c5_i32_349 : i32
        %442 = arith.addi %0, %441 : i32
        %c32_i32_350 = arith.constant 32 : i32
        %443 = arith.addi %442, %c32_i32_350 : i32
        %444 = arith.index_cast %443 : i32 to index
        %445 = memref.load %arg2[%444] : memref<256xi32, #tpu.memory_space<smem>>
        %c31_i32_351 = arith.constant 31 : i32
        %446 = arith.andi %441, %c31_i32_351 : i32
        %c0_i32_352 = arith.constant 0 : i32
        %c0_i32_353 = arith.constant 0 : i32
        %447 = tpu.memref_slice %arg3[%c0_i32_352, %c0_i32_353] : memref<30522x128xf32, #tpu.memory_space<any>> -> memref<1x128xf32, #tpu.memory_space<any>>
        %c0_i32_354 = arith.constant 0 : i32
        %c0_i32_355 = arith.constant 0 : i32
        %448 = tpu.memref_slice %arg4[%c0_i32_354, %c0_i32_355] : memref<256x128xf32, #tpu.memory_space<vmem>> -> memref<1x128xf32, #tpu.memory_space<vmem>>
        %449 = tpu.memref_slice %arg5[%446] : memref<32x!tpu.dma_semaphore, #tpu.memory_space<semaphore_mem>> -> memref<1x!tpu.dma_semaphore, #tpu.memory_space<semaphore_mem>>
        %450 = tpu.memref_squeeze %449 : memref<1x!tpu.dma_semaphore, #tpu.memory_space<semaphore_mem>> -> memref<!tpu.dma_semaphore, #tpu.memory_space<semaphore_mem>>
        tpu.wait_dma2 semaphore(%450 : memref<!tpu.dma_semaphore, #tpu.memory_space<semaphore_mem>>) src(%447 : memref<1x128xf32, #tpu.memory_space<any>>) dst(%448 : memref<1x128xf32, #tpu.memory_space<vmem>>)
        %c32_i32_356 = arith.constant 32 : i32
        %451 = arith.addi %441, %c32_i32_356 : i32
        %c0_i32_357 = arith.constant 0 : i32
        %452 = tpu.memref_slice %arg3[%445, %c0_i32_357] : memref<30522x128xf32, #tpu.memory_space<any>> -> memref<1x128xf32, #tpu.memory_space<any>>
        %c0_i32_358 = arith.constant 0 : i32
        %453 = tpu.memref_slice %arg4[%451, %c0_i32_358] : memref<256x128xf32, #tpu.memory_space<vmem>> -> memref<1x128xf32, #tpu.memory_space<vmem>>
        %454 = tpu.memref_slice %arg5[%446] : memref<32x!tpu.dma_semaphore, #tpu.memory_space<semaphore_mem>> -> memref<1x!tpu.dma_semaphore, #tpu.memory_space<semaphore_mem>>
        %455 = tpu.memref_squeeze %454 : memref<1x!tpu.dma_semaphore, #tpu.memory_space<semaphore_mem>> -> memref<!tpu.dma_semaphore, #tpu.memory_space<semaphore_mem>>
        tpu.enqueue_dma source(%452 : memref<1x128xf32, #tpu.memory_space<any>>) target(%453 : memref<1x128xf32, #tpu.memory_space<vmem>>) target_semaphore(%455 : memref<!tpu.dma_semaphore, #tpu.memory_space<semaphore_mem>>)
        %c6_i32_359 = arith.constant 6 : i32
        %456 = arith.addi %365, %c6_i32_359 : i32
        %457 = arith.addi %0, %456 : i32
        %c32_i32_360 = arith.constant 32 : i32
        %458 = arith.addi %457, %c32_i32_360 : i32
        %459 = arith.index_cast %458 : i32 to index
        %460 = memref.load %arg2[%459] : memref<256xi32, #tpu.memory_space<smem>>
        %c31_i32_361 = arith.constant 31 : i32
        %461 = arith.andi %456, %c31_i32_361 : i32
        %c0_i32_362 = arith.constant 0 : i32
        %c0_i32_363 = arith.constant 0 : i32
        %462 = tpu.memref_slice %arg3[%c0_i32_362, %c0_i32_363] : memref<30522x128xf32, #tpu.memory_space<any>> -> memref<1x128xf32, #tpu.memory_space<any>>
        %c0_i32_364 = arith.constant 0 : i32
        %c0_i32_365 = arith.constant 0 : i32
        %463 = tpu.memref_slice %arg4[%c0_i32_364, %c0_i32_365] : memref<256x128xf32, #tpu.memory_space<vmem>> -> memref<1x128xf32, #tpu.memory_space<vmem>>
        %464 = tpu.memref_slice %arg5[%461] : memref<32x!tpu.dma_semaphore, #tpu.memory_space<semaphore_mem>> -> memref<1x!tpu.dma_semaphore, #tpu.memory_space<semaphore_mem>>
        %465 = tpu.memref_squeeze %464 : memref<1x!tpu.dma_semaphore, #tpu.memory_space<semaphore_mem>> -> memref<!tpu.dma_semaphore, #tpu.memory_space<semaphore_mem>>
        tpu.wait_dma2 semaphore(%465 : memref<!tpu.dma_semaphore, #tpu.memory_space<semaphore_mem>>) src(%462 : memref<1x128xf32, #tpu.memory_space<any>>) dst(%463 : memref<1x128xf32, #tpu.memory_space<vmem>>)
        %c32_i32_366 = arith.constant 32 : i32
        %466 = arith.addi %456, %c32_i32_366 : i32
        %c0_i32_367 = arith.constant 0 : i32
        %467 = tpu.memref_slice %arg3[%460, %c0_i32_367] : memref<30522x128xf32, #tpu.memory_space<any>> -> memref<1x128xf32, #tpu.memory_space<any>>
        %c0_i32_368 = arith.constant 0 : i32
        %468 = tpu.memref_slice %arg4[%466, %c0_i32_368] : memref<256x128xf32, #tpu.memory_space<vmem>> -> memref<1x128xf32, #tpu.memory_space<vmem>>
        %469 = tpu.memref_slice %arg5[%461] : memref<32x!tpu.dma_semaphore, #tpu.memory_space<semaphore_mem>> -> memref<1x!tpu.dma_semaphore, #tpu.memory_space<semaphore_mem>>
        %470 = tpu.memref_squeeze %469 : memref<1x!tpu.dma_semaphore, #tpu.memory_space<semaphore_mem>> -> memref<!tpu.dma_semaphore, #tpu.memory_space<semaphore_mem>>
        tpu.enqueue_dma source(%467 : memref<1x128xf32, #tpu.memory_space<any>>) target(%468 : memref<1x128xf32, #tpu.memory_space<vmem>>) target_semaphore(%470 : memref<!tpu.dma_semaphore, #tpu.memory_space<semaphore_mem>>)
        %c7_i32_369 = arith.constant 7 : i32
        %471 = arith.addi %365, %c7_i32_369 : i32
        %472 = arith.addi %0, %471 : i32
        %c32_i32_370 = arith.constant 32 : i32
        %473 = arith.addi %472, %c32_i32_370 : i32
        %474 = arith.index_cast %473 : i32 to index
        %475 = memref.load %arg2[%474] : memref<256xi32, #tpu.memory_space<smem>>
        %c31_i32_371 = arith.constant 31 : i32
        %476 = arith.andi %471, %c31_i32_371 : i32
        %c0_i32_372 = arith.constant 0 : i32
        %c0_i32_373 = arith.constant 0 : i32
        %477 = tpu.memref_slice %arg3[%c0_i32_372, %c0_i32_373] : memref<30522x128xf32, #tpu.memory_space<any>> -> memref<1x128xf32, #tpu.memory_space<any>>
        %c0_i32_374 = arith.constant 0 : i32
        %c0_i32_375 = arith.constant 0 : i32
        %478 = tpu.memref_slice %arg4[%c0_i32_374, %c0_i32_375] : memref<256x128xf32, #tpu.memory_space<vmem>> -> memref<1x128xf32, #tpu.memory_space<vmem>>
        %479 = tpu.memref_slice %arg5[%476] : memref<32x!tpu.dma_semaphore, #tpu.memory_space<semaphore_mem>> -> memref<1x!tpu.dma_semaphore, #tpu.memory_space<semaphore_mem>>
        %480 = tpu.memref_squeeze %479 : memref<1x!tpu.dma_semaphore, #tpu.memory_space<semaphore_mem>> -> memref<!tpu.dma_semaphore, #tpu.memory_space<semaphore_mem>>
        tpu.wait_dma2 semaphore(%480 : memref<!tpu.dma_semaphore, #tpu.memory_space<semaphore_mem>>) src(%477 : memref<1x128xf32, #tpu.memory_space<any>>) dst(%478 : memref<1x128xf32, #tpu.memory_space<vmem>>)
        %c32_i32_376 = arith.constant 32 : i32
        %481 = arith.addi %471, %c32_i32_376 : i32
        %c0_i32_377 = arith.constant 0 : i32
        %482 = tpu.memref_slice %arg3[%475, %c0_i32_377] : memref<30522x128xf32, #tpu.memory_space<any>> -> memref<1x128xf32, #tpu.memory_space<any>>
        %c0_i32_378 = arith.constant 0 : i32
        %483 = tpu.memref_slice %arg4[%481, %c0_i32_378] : memref<256x128xf32, #tpu.memory_space<vmem>> -> memref<1x128xf32, #tpu.memory_space<vmem>>
        %484 = tpu.memref_slice %arg5[%476] : memref<32x!tpu.dma_semaphore, #tpu.memory_space<semaphore_mem>> -> memref<1x!tpu.dma_semaphore, #tpu.memory_space<semaphore_mem>>
        %485 = tpu.memref_squeeze %484 : memref<1x!tpu.dma_semaphore, #tpu.memory_space<semaphore_mem>> -> memref<!tpu.dma_semaphore, #tpu.memory_space<semaphore_mem>>
        tpu.enqueue_dma source(%482 : memref<1x128xf32, #tpu.memory_space<any>>) target(%483 : memref<1x128xf32, #tpu.memory_space<vmem>>) target_semaphore(%485 : memref<!tpu.dma_semaphore, #tpu.memory_space<semaphore_mem>>)
      }
      %c28_i32_136 = arith.constant 28 : i32
      %c0_i32_137 = arith.constant 0 : i32
      %c0_i32_138 = arith.constant 0 : i32
      %c0_i32_139 = arith.constant 0 : i32
      %235 = tpu.memref_slice %arg3[%c0_i32_138, %c0_i32_139] : memref<30522x128xf32, #tpu.memory_space<any>> -> memref<1x128xf32, #tpu.memory_space<any>>
      %c0_i32_140 = arith.constant 0 : i32
      %c0_i32_141 = arith.constant 0 : i32
      %236 = tpu.memref_slice %arg4[%c0_i32_140, %c0_i32_141] : memref<256x128xf32, #tpu.memory_space<vmem>> -> memref<1x128xf32, #tpu.memory_space<vmem>>
      %237 = tpu.memref_slice %arg5[%c0_i32_137] : memref<32x!tpu.dma_semaphore, #tpu.memory_space<semaphore_mem>> -> memref<1x!tpu.dma_semaphore, #tpu.memory_space<semaphore_mem>>
      %238 = tpu.memref_squeeze %237 : memref<1x!tpu.dma_semaphore, #tpu.memory_space<semaphore_mem>> -> memref<!tpu.dma_semaphore, #tpu.memory_space<semaphore_mem>>
      tpu.wait_dma2 semaphore(%238 : memref<!tpu.dma_semaphore, #tpu.memory_space<semaphore_mem>>) src(%235 : memref<1x128xf32, #tpu.memory_space<any>>) dst(%236 : memref<1x128xf32, #tpu.memory_space<vmem>>)
      %c1_i32_142 = arith.constant 1 : i32
      %c0_i32_143 = arith.constant 0 : i32
      %c0_i32_144 = arith.constant 0 : i32
      %239 = tpu.memref_slice %arg3[%c0_i32_143, %c0_i32_144] : memref<30522x128xf32, #tpu.memory_space<any>> -> memref<1x128xf32, #tpu.memory_space<any>>
      %c0_i32_145 = arith.constant 0 : i32
      %c0_i32_146 = arith.constant 0 : i32
      %240 = tpu.memref_slice %arg4[%c0_i32_145, %c0_i32_146] : memref<256x128xf32, #tpu.memory_space<vmem>> -> memref<1x128xf32, #tpu.memory_space<vmem>>
      %241 = tpu.memref_slice %arg5[%c1_i32_142] : memref<32x!tpu.dma_semaphore, #tpu.memory_space<semaphore_mem>> -> memref<1x!tpu.dma_semaphore, #tpu.memory_space<semaphore_mem>>
      %242 = tpu.memref_squeeze %241 : memref<1x!tpu.dma_semaphore, #tpu.memory_space<semaphore_mem>> -> memref<!tpu.dma_semaphore, #tpu.memory_space<semaphore_mem>>
      tpu.wait_dma2 semaphore(%242 : memref<!tpu.dma_semaphore, #tpu.memory_space<semaphore_mem>>) src(%239 : memref<1x128xf32, #tpu.memory_space<any>>) dst(%240 : memref<1x128xf32, #tpu.memory_space<vmem>>)
      %c2_i32_147 = arith.constant 2 : i32
      %c0_i32_148 = arith.constant 0 : i32
      %c0_i32_149 = arith.constant 0 : i32
      %243 = tpu.memref_slice %arg3[%c0_i32_148, %c0_i32_149] : memref<30522x128xf32, #tpu.memory_space<any>> -> memref<1x128xf32, #tpu.memory_space<any>>
      %c0_i32_150 = arith.constant 0 : i32
      %c0_i32_151 = arith.constant 0 : i32
      %244 = tpu.memref_slice %arg4[%c0_i32_150, %c0_i32_151] : memref<256x128xf32, #tpu.memory_space<vmem>> -> memref<1x128xf32, #tpu.memory_space<vmem>>
      %245 = tpu.memref_slice %arg5[%c2_i32_147] : memref<32x!tpu.dma_semaphore, #tpu.memory_space<semaphore_mem>> -> memref<1x!tpu.dma_semaphore, #tpu.memory_space<semaphore_mem>>
      %246 = tpu.memref_squeeze %245 : memref<1x!tpu.dma_semaphore, #tpu.memory_space<semaphore_mem>> -> memref<!tpu.dma_semaphore, #tpu.memory_space<semaphore_mem>>
      tpu.wait_dma2 semaphore(%246 : memref<!tpu.dma_semaphore, #tpu.memory_space<semaphore_mem>>) src(%243 : memref<1x128xf32, #tpu.memory_space<any>>) dst(%244 : memref<1x128xf32, #tpu.memory_space<vmem>>)
      %c3_i32_152 = arith.constant 3 : i32
      %c0_i32_153 = arith.constant 0 : i32
      %c0_i32_154 = arith.constant 0 : i32
      %247 = tpu.memref_slice %arg3[%c0_i32_153, %c0_i32_154] : memref<30522x128xf32, #tpu.memory_space<any>> -> memref<1x128xf32, #tpu.memory_space<any>>
      %c0_i32_155 = arith.constant 0 : i32
      %c0_i32_156 = arith.constant 0 : i32
      %248 = tpu.memref_slice %arg4[%c0_i32_155, %c0_i32_156] : memref<256x128xf32, #tpu.memory_space<vmem>> -> memref<1x128xf32, #tpu.memory_space<vmem>>
      %249 = tpu.memref_slice %arg5[%c3_i32_152] : memref<32x!tpu.dma_semaphore, #tpu.memory_space<semaphore_mem>> -> memref<1x!tpu.dma_semaphore, #tpu.memory_space<semaphore_mem>>
      %250 = tpu.memref_squeeze %249 : memref<1x!tpu.dma_semaphore, #tpu.memory_space<semaphore_mem>> -> memref<!tpu.dma_semaphore, #tpu.memory_space<semaphore_mem>>
      tpu.wait_dma2 semaphore(%250 : memref<!tpu.dma_semaphore, #tpu.memory_space<semaphore_mem>>) src(%247 : memref<1x128xf32, #tpu.memory_space<any>>) dst(%248 : memref<1x128xf32, #tpu.memory_space<vmem>>)
      %c4_i32_157 = arith.constant 4 : i32
      %c0_i32_158 = arith.constant 0 : i32
      %c0_i32_159 = arith.constant 0 : i32
      %251 = tpu.memref_slice %arg3[%c0_i32_158, %c0_i32_159] : memref<30522x128xf32, #tpu.memory_space<any>> -> memref<1x128xf32, #tpu.memory_space<any>>
      %c0_i32_160 = arith.constant 0 : i32
      %c0_i32_161 = arith.constant 0 : i32
      %252 = tpu.memref_slice %arg4[%c0_i32_160, %c0_i32_161] : memref<256x128xf32, #tpu.memory_space<vmem>> -> memref<1x128xf32, #tpu.memory_space<vmem>>
      %253 = tpu.memref_slice %arg5[%c4_i32_157] : memref<32x!tpu.dma_semaphore, #tpu.memory_space<semaphore_mem>> -> memref<1x!tpu.dma_semaphore, #tpu.memory_space<semaphore_mem>>
      %254 = tpu.memref_squeeze %253 : memref<1x!tpu.dma_semaphore, #tpu.memory_space<semaphore_mem>> -> memref<!tpu.dma_semaphore, #tpu.memory_space<semaphore_mem>>
      tpu.wait_dma2 semaphore(%254 : memref<!tpu.dma_semaphore, #tpu.memory_space<semaphore_mem>>) src(%251 : memref<1x128xf32, #tpu.memory_space<any>>) dst(%252 : memref<1x128xf32, #tpu.memory_space<vmem>>)
      %c5_i32_162 = arith.constant 5 : i32
      %c0_i32_163 = arith.constant 0 : i32
      %c0_i32_164 = arith.constant 0 : i32
      %255 = tpu.memref_slice %arg3[%c0_i32_163, %c0_i32_164] : memref<30522x128xf32, #tpu.memory_space<any>> -> memref<1x128xf32, #tpu.memory_space<any>>
      %c0_i32_165 = arith.constant 0 : i32
      %c0_i32_166 = arith.constant 0 : i32
      %256 = tpu.memref_slice %arg4[%c0_i32_165, %c0_i32_166] : memref<256x128xf32, #tpu.memory_space<vmem>> -> memref<1x128xf32, #tpu.memory_space<vmem>>
      %257 = tpu.memref_slice %arg5[%c5_i32_162] : memref<32x!tpu.dma_semaphore, #tpu.memory_space<semaphore_mem>> -> memref<1x!tpu.dma_semaphore, #tpu.memory_space<semaphore_mem>>
      %258 = tpu.memref_squeeze %257 : memref<1x!tpu.dma_semaphore, #tpu.memory_space<semaphore_mem>> -> memref<!tpu.dma_semaphore, #tpu.memory_space<semaphore_mem>>
      tpu.wait_dma2 semaphore(%258 : memref<!tpu.dma_semaphore, #tpu.memory_space<semaphore_mem>>) src(%255 : memref<1x128xf32, #tpu.memory_space<any>>) dst(%256 : memref<1x128xf32, #tpu.memory_space<vmem>>)
      %c6_i32_167 = arith.constant 6 : i32
      %c0_i32_168 = arith.constant 0 : i32
      %c0_i32_169 = arith.constant 0 : i32
      %259 = tpu.memref_slice %arg3[%c0_i32_168, %c0_i32_169] : memref<30522x128xf32, #tpu.memory_space<any>> -> memref<1x128xf32, #tpu.memory_space<any>>
      %c0_i32_170 = arith.constant 0 : i32
      %c0_i32_171 = arith.constant 0 : i32
      %260 = tpu.memref_slice %arg4[%c0_i32_170, %c0_i32_171] : memref<256x128xf32, #tpu.memory_space<vmem>> -> memref<1x128xf32, #tpu.memory_space<vmem>>
      %261 = tpu.memref_slice %arg5[%c6_i32_167] : memref<32x!tpu.dma_semaphore, #tpu.memory_space<semaphore_mem>> -> memref<1x!tpu.dma_semaphore, #tpu.memory_space<semaphore_mem>>
      %262 = tpu.memref_squeeze %261 : memref<1x!tpu.dma_semaphore, #tpu.memory_space<semaphore_mem>> -> memref<!tpu.dma_semaphore, #tpu.memory_space<semaphore_mem>>
      tpu.wait_dma2 semaphore(%262 : memref<!tpu.dma_semaphore, #tpu.memory_space<semaphore_mem>>) src(%259 : memref<1x128xf32, #tpu.memory_space<any>>) dst(%260 : memref<1x128xf32, #tpu.memory_space<vmem>>)
      %c7_i32_172 = arith.constant 7 : i32
      %c0_i32_173 = arith.constant 0 : i32
      %c0_i32_174 = arith.constant 0 : i32
      %263 = tpu.memref_slice %arg3[%c0_i32_173, %c0_i32_174] : memref<30522x128xf32, #tpu.memory_space<any>> -> memref<1x128xf32, #tpu.memory_space<any>>
      %c0_i32_175 = arith.constant 0 : i32
      %c0_i32_176 = arith.constant 0 : i32
      %264 = tpu.memref_slice %arg4[%c0_i32_175, %c0_i32_176] : memref<256x128xf32, #tpu.memory_space<vmem>> -> memref<1x128xf32, #tpu.memory_space<vmem>>
      %265 = tpu.memref_slice %arg5[%c7_i32_172] : memref<32x!tpu.dma_semaphore, #tpu.memory_space<semaphore_mem>> -> memref<1x!tpu.dma_semaphore, #tpu.memory_space<semaphore_mem>>
      %266 = tpu.memref_squeeze %265 : memref<1x!tpu.dma_semaphore, #tpu.memory_space<semaphore_mem>> -> memref<!tpu.dma_semaphore, #tpu.memory_space<semaphore_mem>>
      tpu.wait_dma2 semaphore(%266 : memref<!tpu.dma_semaphore, #tpu.memory_space<semaphore_mem>>) src(%263 : memref<1x128xf32, #tpu.memory_space<any>>) dst(%264 : memref<1x128xf32, #tpu.memory_space<vmem>>)
      %c8_i32_177 = arith.constant 8 : i32
      %c0_i32_178 = arith.constant 0 : i32
      %c0_i32_179 = arith.constant 0 : i32
      %267 = tpu.memref_slice %arg3[%c0_i32_178, %c0_i32_179] : memref<30522x128xf32, #tpu.memory_space<any>> -> memref<1x128xf32, #tpu.memory_space<any>>
      %c0_i32_180 = arith.constant 0 : i32
      %c0_i32_181 = arith.constant 0 : i32
      %268 = tpu.memref_slice %arg4[%c0_i32_180, %c0_i32_181] : memref<256x128xf32, #tpu.memory_space<vmem>> -> memref<1x128xf32, #tpu.memory_space<vmem>>
      %269 = tpu.memref_slice %arg5[%c8_i32_177] : memref<32x!tpu.dma_semaphore, #tpu.memory_space<semaphore_mem>> -> memref<1x!tpu.dma_semaphore, #tpu.memory_space<semaphore_mem>>
      %270 = tpu.memref_squeeze %269 : memref<1x!tpu.dma_semaphore, #tpu.memory_space<semaphore_mem>> -> memref<!tpu.dma_semaphore, #tpu.memory_space<semaphore_mem>>
      tpu.wait_dma2 semaphore(%270 : memref<!tpu.dma_semaphore, #tpu.memory_space<semaphore_mem>>) src(%267 : memref<1x128xf32, #tpu.memory_space<any>>) dst(%268 : memref<1x128xf32, #tpu.memory_space<vmem>>)
      %c9_i32_182 = arith.constant 9 : i32
      %c0_i32_183 = arith.constant 0 : i32
      %c0_i32_184 = arith.constant 0 : i32
      %271 = tpu.memref_slice %arg3[%c0_i32_183, %c0_i32_184] : memref<30522x128xf32, #tpu.memory_space<any>> -> memref<1x128xf32, #tpu.memory_space<any>>
      %c0_i32_185 = arith.constant 0 : i32
      %c0_i32_186 = arith.constant 0 : i32
      %272 = tpu.memref_slice %arg4[%c0_i32_185, %c0_i32_186] : memref<256x128xf32, #tpu.memory_space<vmem>> -> memref<1x128xf32, #tpu.memory_space<vmem>>
      %273 = tpu.memref_slice %arg5[%c9_i32_182] : memref<32x!tpu.dma_semaphore, #tpu.memory_space<semaphore_mem>> -> memref<1x!tpu.dma_semaphore, #tpu.memory_space<semaphore_mem>>
      %274 = tpu.memref_squeeze %273 : memref<1x!tpu.dma_semaphore, #tpu.memory_space<semaphore_mem>> -> memref<!tpu.dma_semaphore, #tpu.memory_space<semaphore_mem>>
      tpu.wait_dma2 semaphore(%274 : memref<!tpu.dma_semaphore, #tpu.memory_space<semaphore_mem>>) src(%271 : memref<1x128xf32, #tpu.memory_space<any>>) dst(%272 : memref<1x128xf32, #tpu.memory_space<vmem>>)
      %c10_i32_187 = arith.constant 10 : i32
      %c0_i32_188 = arith.constant 0 : i32
      %c0_i32_189 = arith.constant 0 : i32
      %275 = tpu.memref_slice %arg3[%c0_i32_188, %c0_i32_189] : memref<30522x128xf32, #tpu.memory_space<any>> -> memref<1x128xf32, #tpu.memory_space<any>>
      %c0_i32_190 = arith.constant 0 : i32
      %c0_i32_191 = arith.constant 0 : i32
      %276 = tpu.memref_slice %arg4[%c0_i32_190, %c0_i32_191] : memref<256x128xf32, #tpu.memory_space<vmem>> -> memref<1x128xf32, #tpu.memory_space<vmem>>
      %277 = tpu.memref_slice %arg5[%c10_i32_187] : memref<32x!tpu.dma_semaphore, #tpu.memory_space<semaphore_mem>> -> memref<1x!tpu.dma_semaphore, #tpu.memory_space<semaphore_mem>>
      %278 = tpu.memref_squeeze %277 : memref<1x!tpu.dma_semaphore, #tpu.memory_space<semaphore_mem>> -> memref<!tpu.dma_semaphore, #tpu.memory_space<semaphore_mem>>
      tpu.wait_dma2 semaphore(%278 : memref<!tpu.dma_semaphore, #tpu.memory_space<semaphore_mem>>) src(%275 : memref<1x128xf32, #tpu.memory_space<any>>) dst(%276 : memref<1x128xf32, #tpu.memory_space<vmem>>)
      %c11_i32_192 = arith.constant 11 : i32
      %c0_i32_193 = arith.constant 0 : i32
      %c0_i32_194 = arith.constant 0 : i32
      %279 = tpu.memref_slice %arg3[%c0_i32_193, %c0_i32_194] : memref<30522x128xf32, #tpu.memory_space<any>> -> memref<1x128xf32, #tpu.memory_space<any>>
      %c0_i32_195 = arith.constant 0 : i32
      %c0_i32_196 = arith.constant 0 : i32
      %280 = tpu.memref_slice %arg4[%c0_i32_195, %c0_i32_196] : memref<256x128xf32, #tpu.memory_space<vmem>> -> memref<1x128xf32, #tpu.memory_space<vmem>>
      %281 = tpu.memref_slice %arg5[%c11_i32_192] : memref<32x!tpu.dma_semaphore, #tpu.memory_space<semaphore_mem>> -> memref<1x!tpu.dma_semaphore, #tpu.memory_space<semaphore_mem>>
      %282 = tpu.memref_squeeze %281 : memref<1x!tpu.dma_semaphore, #tpu.memory_space<semaphore_mem>> -> memref<!tpu.dma_semaphore, #tpu.memory_space<semaphore_mem>>
      tpu.wait_dma2 semaphore(%282 : memref<!tpu.dma_semaphore, #tpu.memory_space<semaphore_mem>>) src(%279 : memref<1x128xf32, #tpu.memory_space<any>>) dst(%280 : memref<1x128xf32, #tpu.memory_space<vmem>>)
      %c12_i32_197 = arith.constant 12 : i32
      %c0_i32_198 = arith.constant 0 : i32
      %c0_i32_199 = arith.constant 0 : i32
      %283 = tpu.memref_slice %arg3[%c0_i32_198, %c0_i32_199] : memref<30522x128xf32, #tpu.memory_space<any>> -> memref<1x128xf32, #tpu.memory_space<any>>
      %c0_i32_200 = arith.constant 0 : i32
      %c0_i32_201 = arith.constant 0 : i32
      %284 = tpu.memref_slice %arg4[%c0_i32_200, %c0_i32_201] : memref<256x128xf32, #tpu.memory_space<vmem>> -> memref<1x128xf32, #tpu.memory_space<vmem>>
      %285 = tpu.memref_slice %arg5[%c12_i32_197] : memref<32x!tpu.dma_semaphore, #tpu.memory_space<semaphore_mem>> -> memref<1x!tpu.dma_semaphore, #tpu.memory_space<semaphore_mem>>
      %286 = tpu.memref_squeeze %285 : memref<1x!tpu.dma_semaphore, #tpu.memory_space<semaphore_mem>> -> memref<!tpu.dma_semaphore, #tpu.memory_space<semaphore_mem>>
      tpu.wait_dma2 semaphore(%286 : memref<!tpu.dma_semaphore, #tpu.memory_space<semaphore_mem>>) src(%283 : memref<1x128xf32, #tpu.memory_space<any>>) dst(%284 : memref<1x128xf32, #tpu.memory_space<vmem>>)
      %c13_i32_202 = arith.constant 13 : i32
      %c0_i32_203 = arith.constant 0 : i32
      %c0_i32_204 = arith.constant 0 : i32
      %287 = tpu.memref_slice %arg3[%c0_i32_203, %c0_i32_204] : memref<30522x128xf32, #tpu.memory_space<any>> -> memref<1x128xf32, #tpu.memory_space<any>>
      %c0_i32_205 = arith.constant 0 : i32
      %c0_i32_206 = arith.constant 0 : i32
      %288 = tpu.memref_slice %arg4[%c0_i32_205, %c0_i32_206] : memref<256x128xf32, #tpu.memory_space<vmem>> -> memref<1x128xf32, #tpu.memory_space<vmem>>
      %289 = tpu.memref_slice %arg5[%c13_i32_202] : memref<32x!tpu.dma_semaphore, #tpu.memory_space<semaphore_mem>> -> memref<1x!tpu.dma_semaphore, #tpu.memory_space<semaphore_mem>>
      %290 = tpu.memref_squeeze %289 : memref<1x!tpu.dma_semaphore, #tpu.memory_space<semaphore_mem>> -> memref<!tpu.dma_semaphore, #tpu.memory_space<semaphore_mem>>
      tpu.wait_dma2 semaphore(%290 : memref<!tpu.dma_semaphore, #tpu.memory_space<semaphore_mem>>) src(%287 : memref<1x128xf32, #tpu.memory_space<any>>) dst(%288 : memref<1x128xf32, #tpu.memory_space<vmem>>)
      %c14_i32_207 = arith.constant 14 : i32
      %c0_i32_208 = arith.constant 0 : i32
      %c0_i32_209 = arith.constant 0 : i32
      %291 = tpu.memref_slice %arg3[%c0_i32_208, %c0_i32_209] : memref<30522x128xf32, #tpu.memory_space<any>> -> memref<1x128xf32, #tpu.memory_space<any>>
      %c0_i32_210 = arith.constant 0 : i32
      %c0_i32_211 = arith.constant 0 : i32
      %292 = tpu.memref_slice %arg4[%c0_i32_210, %c0_i32_211] : memref<256x128xf32, #tpu.memory_space<vmem>> -> memref<1x128xf32, #tpu.memory_space<vmem>>
      %293 = tpu.memref_slice %arg5[%c14_i32_207] : memref<32x!tpu.dma_semaphore, #tpu.memory_space<semaphore_mem>> -> memref<1x!tpu.dma_semaphore, #tpu.memory_space<semaphore_mem>>
      %294 = tpu.memref_squeeze %293 : memref<1x!tpu.dma_semaphore, #tpu.memory_space<semaphore_mem>> -> memref<!tpu.dma_semaphore, #tpu.memory_space<semaphore_mem>>
      tpu.wait_dma2 semaphore(%294 : memref<!tpu.dma_semaphore, #tpu.memory_space<semaphore_mem>>) src(%291 : memref<1x128xf32, #tpu.memory_space<any>>) dst(%292 : memref<1x128xf32, #tpu.memory_space<vmem>>)
      %c15_i32_212 = arith.constant 15 : i32
      %c0_i32_213 = arith.constant 0 : i32
      %c0_i32_214 = arith.constant 0 : i32
      %295 = tpu.memref_slice %arg3[%c0_i32_213, %c0_i32_214] : memref<30522x128xf32, #tpu.memory_space<any>> -> memref<1x128xf32, #tpu.memory_space<any>>
      %c0_i32_215 = arith.constant 0 : i32
      %c0_i32_216 = arith.constant 0 : i32
      %296 = tpu.memref_slice %arg4[%c0_i32_215, %c0_i32_216] : memref<256x128xf32, #tpu.memory_space<vmem>> -> memref<1x128xf32, #tpu.memory_space<vmem>>
      %297 = tpu.memref_slice %arg5[%c15_i32_212] : memref<32x!tpu.dma_semaphore, #tpu.memory_space<semaphore_mem>> -> memref<1x!tpu.dma_semaphore, #tpu.memory_space<semaphore_mem>>
      %298 = tpu.memref_squeeze %297 : memref<1x!tpu.dma_semaphore, #tpu.memory_space<semaphore_mem>> -> memref<!tpu.dma_semaphore, #tpu.memory_space<semaphore_mem>>
      tpu.wait_dma2 semaphore(%298 : memref<!tpu.dma_semaphore, #tpu.memory_space<semaphore_mem>>) src(%295 : memref<1x128xf32, #tpu.memory_space<any>>) dst(%296 : memref<1x128xf32, #tpu.memory_space<vmem>>)
      %c16_i32_217 = arith.constant 16 : i32
      %c0_i32_218 = arith.constant 0 : i32
      %c0_i32_219 = arith.constant 0 : i32
      %299 = tpu.memref_slice %arg3[%c0_i32_218, %c0_i32_219] : memref<30522x128xf32, #tpu.memory_space<any>> -> memref<1x128xf32, #tpu.memory_space<any>>
      %c0_i32_220 = arith.constant 0 : i32
      %c0_i32_221 = arith.constant 0 : i32
      %300 = tpu.memref_slice %arg4[%c0_i32_220, %c0_i32_221] : memref<256x128xf32, #tpu.memory_space<vmem>> -> memref<1x128xf32, #tpu.memory_space<vmem>>
      %301 = tpu.memref_slice %arg5[%c16_i32_217] : memref<32x!tpu.dma_semaphore, #tpu.memory_space<semaphore_mem>> -> memref<1x!tpu.dma_semaphore, #tpu.memory_space<semaphore_mem>>
      %302 = tpu.memref_squeeze %301 : memref<1x!tpu.dma_semaphore, #tpu.memory_space<semaphore_mem>> -> memref<!tpu.dma_semaphore, #tpu.memory_space<semaphore_mem>>
      tpu.wait_dma2 semaphore(%302 : memref<!tpu.dma_semaphore, #tpu.memory_space<semaphore_mem>>) src(%299 : memref<1x128xf32, #tpu.memory_space<any>>) dst(%300 : memref<1x128xf32, #tpu.memory_space<vmem>>)
      %c17_i32_222 = arith.constant 17 : i32
      %c0_i32_223 = arith.constant 0 : i32
      %c0_i32_224 = arith.constant 0 : i32
      %303 = tpu.memref_slice %arg3[%c0_i32_223, %c0_i32_224] : memref<30522x128xf32, #tpu.memory_space<any>> -> memref<1x128xf32, #tpu.memory_space<any>>
      %c0_i32_225 = arith.constant 0 : i32
      %c0_i32_226 = arith.constant 0 : i32
      %304 = tpu.memref_slice %arg4[%c0_i32_225, %c0_i32_226] : memref<256x128xf32, #tpu.memory_space<vmem>> -> memref<1x128xf32, #tpu.memory_space<vmem>>
      %305 = tpu.memref_slice %arg5[%c17_i32_222] : memref<32x!tpu.dma_semaphore, #tpu.memory_space<semaphore_mem>> -> memref<1x!tpu.dma_semaphore, #tpu.memory_space<semaphore_mem>>
      %306 = tpu.memref_squeeze %305 : memref<1x!tpu.dma_semaphore, #tpu.memory_space<semaphore_mem>> -> memref<!tpu.dma_semaphore, #tpu.memory_space<semaphore_mem>>
      tpu.wait_dma2 semaphore(%306 : memref<!tpu.dma_semaphore, #tpu.memory_space<semaphore_mem>>) src(%303 : memref<1x128xf32, #tpu.memory_space<any>>) dst(%304 : memref<1x128xf32, #tpu.memory_space<vmem>>)
      %c18_i32_227 = arith.constant 18 : i32
      %c0_i32_228 = arith.constant 0 : i32
      %c0_i32_229 = arith.constant 0 : i32
      %307 = tpu.memref_slice %arg3[%c0_i32_228, %c0_i32_229] : memref<30522x128xf32, #tpu.memory_space<any>> -> memref<1x128xf32, #tpu.memory_space<any>>
      %c0_i32_230 = arith.constant 0 : i32
      %c0_i32_231 = arith.constant 0 : i32
      %308 = tpu.memref_slice %arg4[%c0_i32_230, %c0_i32_231] : memref<256x128xf32, #tpu.memory_space<vmem>> -> memref<1x128xf32, #tpu.memory_space<vmem>>
      %309 = tpu.memref_slice %arg5[%c18_i32_227] : memref<32x!tpu.dma_semaphore, #tpu.memory_space<semaphore_mem>> -> memref<1x!tpu.dma_semaphore, #tpu.memory_space<semaphore_mem>>
      %310 = tpu.memref_squeeze %309 : memref<1x!tpu.dma_semaphore, #tpu.memory_space<semaphore_mem>> -> memref<!tpu.dma_semaphore, #tpu.memory_space<semaphore_mem>>
      tpu.wait_dma2 semaphore(%310 : memref<!tpu.dma_semaphore, #tpu.memory_space<semaphore_mem>>) src(%307 : memref<1x128xf32, #tpu.memory_space<any>>) dst(%308 : memref<1x128xf32, #tpu.memory_space<vmem>>)
      %c19_i32_232 = arith.constant 19 : i32
      %c0_i32_233 = arith.constant 0 : i32
      %c0_i32_234 = arith.constant 0 : i32
      %311 = tpu.memref_slice %arg3[%c0_i32_233, %c0_i32_234] : memref<30522x128xf32, #tpu.memory_space<any>> -> memref<1x128xf32, #tpu.memory_space<any>>
      %c0_i32_235 = arith.constant 0 : i32
      %c0_i32_236 = arith.constant 0 : i32
      %312 = tpu.memref_slice %arg4[%c0_i32_235, %c0_i32_236] : memref<256x128xf32, #tpu.memory_space<vmem>> -> memref<1x128xf32, #tpu.memory_space<vmem>>
      %313 = tpu.memref_slice %arg5[%c19_i32_232] : memref<32x!tpu.dma_semaphore, #tpu.memory_space<semaphore_mem>> -> memref<1x!tpu.dma_semaphore, #tpu.memory_space<semaphore_mem>>
      %314 = tpu.memref_squeeze %313 : memref<1x!tpu.dma_semaphore, #tpu.memory_space<semaphore_mem>> -> memref<!tpu.dma_semaphore, #tpu.memory_space<semaphore_mem>>
      tpu.wait_dma2 semaphore(%314 : memref<!tpu.dma_semaphore, #tpu.memory_space<semaphore_mem>>) src(%311 : memref<1x128xf32, #tpu.memory_space<any>>) dst(%312 : memref<1x128xf32, #tpu.memory_space<vmem>>)
      %c20_i32_237 = arith.constant 20 : i32
      %c0_i32_238 = arith.constant 0 : i32
      %c0_i32_239 = arith.constant 0 : i32
      %315 = tpu.memref_slice %arg3[%c0_i32_238, %c0_i32_239] : memref<30522x128xf32, #tpu.memory_space<any>> -> memref<1x128xf32, #tpu.memory_space<any>>
      %c0_i32_240 = arith.constant 0 : i32
      %c0_i32_241 = arith.constant 0 : i32
      %316 = tpu.memref_slice %arg4[%c0_i32_240, %c0_i32_241] : memref<256x128xf32, #tpu.memory_space<vmem>> -> memref<1x128xf32, #tpu.memory_space<vmem>>
      %317 = tpu.memref_slice %arg5[%c20_i32_237] : memref<32x!tpu.dma_semaphore, #tpu.memory_space<semaphore_mem>> -> memref<1x!tpu.dma_semaphore, #tpu.memory_space<semaphore_mem>>
      %318 = tpu.memref_squeeze %317 : memref<1x!tpu.dma_semaphore, #tpu.memory_space<semaphore_mem>> -> memref<!tpu.dma_semaphore, #tpu.memory_space<semaphore_mem>>
      tpu.wait_dma2 semaphore(%318 : memref<!tpu.dma_semaphore, #tpu.memory_space<semaphore_mem>>) src(%315 : memref<1x128xf32, #tpu.memory_space<any>>) dst(%316 : memref<1x128xf32, #tpu.memory_space<vmem>>)
      %c21_i32_242 = arith.constant 21 : i32
      %c0_i32_243 = arith.constant 0 : i32
      %c0_i32_244 = arith.constant 0 : i32
      %319 = tpu.memref_slice %arg3[%c0_i32_243, %c0_i32_244] : memref<30522x128xf32, #tpu.memory_space<any>> -> memref<1x128xf32, #tpu.memory_space<any>>
      %c0_i32_245 = arith.constant 0 : i32
      %c0_i32_246 = arith.constant 0 : i32
      %320 = tpu.memref_slice %arg4[%c0_i32_245, %c0_i32_246] : memref<256x128xf32, #tpu.memory_space<vmem>> -> memref<1x128xf32, #tpu.memory_space<vmem>>
      %321 = tpu.memref_slice %arg5[%c21_i32_242] : memref<32x!tpu.dma_semaphore, #tpu.memory_space<semaphore_mem>> -> memref<1x!tpu.dma_semaphore, #tpu.memory_space<semaphore_mem>>
      %322 = tpu.memref_squeeze %321 : memref<1x!tpu.dma_semaphore, #tpu.memory_space<semaphore_mem>> -> memref<!tpu.dma_semaphore, #tpu.memory_space<semaphore_mem>>
      tpu.wait_dma2 semaphore(%322 : memref<!tpu.dma_semaphore, #tpu.memory_space<semaphore_mem>>) src(%319 : memref<1x128xf32, #tpu.memory_space<any>>) dst(%320 : memref<1x128xf32, #tpu.memory_space<vmem>>)
      %c22_i32_247 = arith.constant 22 : i32
      %c0_i32_248 = arith.constant 0 : i32
      %c0_i32_249 = arith.constant 0 : i32
      %323 = tpu.memref_slice %arg3[%c0_i32_248, %c0_i32_249] : memref<30522x128xf32, #tpu.memory_space<any>> -> memref<1x128xf32, #tpu.memory_space<any>>
      %c0_i32_250 = arith.constant 0 : i32
      %c0_i32_251 = arith.constant 0 : i32
      %324 = tpu.memref_slice %arg4[%c0_i32_250, %c0_i32_251] : memref<256x128xf32, #tpu.memory_space<vmem>> -> memref<1x128xf32, #tpu.memory_space<vmem>>
      %325 = tpu.memref_slice %arg5[%c22_i32_247] : memref<32x!tpu.dma_semaphore, #tpu.memory_space<semaphore_mem>> -> memref<1x!tpu.dma_semaphore, #tpu.memory_space<semaphore_mem>>
      %326 = tpu.memref_squeeze %325 : memref<1x!tpu.dma_semaphore, #tpu.memory_space<semaphore_mem>> -> memref<!tpu.dma_semaphore, #tpu.memory_space<semaphore_mem>>
      tpu.wait_dma2 semaphore(%326 : memref<!tpu.dma_semaphore, #tpu.memory_space<semaphore_mem>>) src(%323 : memref<1x128xf32, #tpu.memory_space<any>>) dst(%324 : memref<1x128xf32, #tpu.memory_space<vmem>>)
      %c23_i32_252 = arith.constant 23 : i32
      %c0_i32_253 = arith.constant 0 : i32
      %c0_i32_254 = arith.constant 0 : i32
      %327 = tpu.memref_slice %arg3[%c0_i32_253, %c0_i32_254] : memref<30522x128xf32, #tpu.memory_space<any>> -> memref<1x128xf32, #tpu.memory_space<any>>
      %c0_i32_255 = arith.constant 0 : i32
      %c0_i32_256 = arith.constant 0 : i32
      %328 = tpu.memref_slice %arg4[%c0_i32_255, %c0_i32_256] : memref<256x128xf32, #tpu.memory_space<vmem>> -> memref<1x128xf32, #tpu.memory_space<vmem>>
      %329 = tpu.memref_slice %arg5[%c23_i32_252] : memref<32x!tpu.dma_semaphore, #tpu.memory_space<semaphore_mem>> -> memref<1x!tpu.dma_semaphore, #tpu.memory_space<semaphore_mem>>
      %330 = tpu.memref_squeeze %329 : memref<1x!tpu.dma_semaphore, #tpu.memory_space<semaphore_mem>> -> memref<!tpu.dma_semaphore, #tpu.memory_space<semaphore_mem>>
      tpu.wait_dma2 semaphore(%330 : memref<!tpu.dma_semaphore, #tpu.memory_space<semaphore_mem>>) src(%327 : memref<1x128xf32, #tpu.memory_space<any>>) dst(%328 : memref<1x128xf32, #tpu.memory_space<vmem>>)
      %c24_i32_257 = arith.constant 24 : i32
      %c0_i32_258 = arith.constant 0 : i32
      %c0_i32_259 = arith.constant 0 : i32
      %331 = tpu.memref_slice %arg3[%c0_i32_258, %c0_i32_259] : memref<30522x128xf32, #tpu.memory_space<any>> -> memref<1x128xf32, #tpu.memory_space<any>>
      %c0_i32_260 = arith.constant 0 : i32
      %c0_i32_261 = arith.constant 0 : i32
      %332 = tpu.memref_slice %arg4[%c0_i32_260, %c0_i32_261] : memref<256x128xf32, #tpu.memory_space<vmem>> -> memref<1x128xf32, #tpu.memory_space<vmem>>
      %333 = tpu.memref_slice %arg5[%c24_i32_257] : memref<32x!tpu.dma_semaphore, #tpu.memory_space<semaphore_mem>> -> memref<1x!tpu.dma_semaphore, #tpu.memory_space<semaphore_mem>>
      %334 = tpu.memref_squeeze %333 : memref<1x!tpu.dma_semaphore, #tpu.memory_space<semaphore_mem>> -> memref<!tpu.dma_semaphore, #tpu.memory_space<semaphore_mem>>
      tpu.wait_dma2 semaphore(%334 : memref<!tpu.dma_semaphore, #tpu.memory_space<semaphore_mem>>) src(%331 : memref<1x128xf32, #tpu.memory_space<any>>) dst(%332 : memref<1x128xf32, #tpu.memory_space<vmem>>)
      %c25_i32_262 = arith.constant 25 : i32
      %c0_i32_263 = arith.constant 0 : i32
      %c0_i32_264 = arith.constant 0 : i32
      %335 = tpu.memref_slice %arg3[%c0_i32_263, %c0_i32_264] : memref<30522x128xf32, #tpu.memory_space<any>> -> memref<1x128xf32, #tpu.memory_space<any>>
      %c0_i32_265 = arith.constant 0 : i32
      %c0_i32_266 = arith.constant 0 : i32
      %336 = tpu.memref_slice %arg4[%c0_i32_265, %c0_i32_266] : memref<256x128xf32, #tpu.memory_space<vmem>> -> memref<1x128xf32, #tpu.memory_space<vmem>>
      %337 = tpu.memref_slice %arg5[%c25_i32_262] : memref<32x!tpu.dma_semaphore, #tpu.memory_space<semaphore_mem>> -> memref<1x!tpu.dma_semaphore, #tpu.memory_space<semaphore_mem>>
      %338 = tpu.memref_squeeze %337 : memref<1x!tpu.dma_semaphore, #tpu.memory_space<semaphore_mem>> -> memref<!tpu.dma_semaphore, #tpu.memory_space<semaphore_mem>>
      tpu.wait_dma2 semaphore(%338 : memref<!tpu.dma_semaphore, #tpu.memory_space<semaphore_mem>>) src(%335 : memref<1x128xf32, #tpu.memory_space<any>>) dst(%336 : memref<1x128xf32, #tpu.memory_space<vmem>>)
      %c26_i32_267 = arith.constant 26 : i32
      %c0_i32_268 = arith.constant 0 : i32
      %c0_i32_269 = arith.constant 0 : i32
      %339 = tpu.memref_slice %arg3[%c0_i32_268, %c0_i32_269] : memref<30522x128xf32, #tpu.memory_space<any>> -> memref<1x128xf32, #tpu.memory_space<any>>
      %c0_i32_270 = arith.constant 0 : i32
      %c0_i32_271 = arith.constant 0 : i32
      %340 = tpu.memref_slice %arg4[%c0_i32_270, %c0_i32_271] : memref<256x128xf32, #tpu.memory_space<vmem>> -> memref<1x128xf32, #tpu.memory_space<vmem>>
      %341 = tpu.memref_slice %arg5[%c26_i32_267] : memref<32x!tpu.dma_semaphore, #tpu.memory_space<semaphore_mem>> -> memref<1x!tpu.dma_semaphore, #tpu.memory_space<semaphore_mem>>
      %342 = tpu.memref_squeeze %341 : memref<1x!tpu.dma_semaphore, #tpu.memory_space<semaphore_mem>> -> memref<!tpu.dma_semaphore, #tpu.memory_space<semaphore_mem>>
      tpu.wait_dma2 semaphore(%342 : memref<!tpu.dma_semaphore, #tpu.memory_space<semaphore_mem>>) src(%339 : memref<1x128xf32, #tpu.memory_space<any>>) dst(%340 : memref<1x128xf32, #tpu.memory_space<vmem>>)
      %c27_i32_272 = arith.constant 27 : i32
      %c0_i32_273 = arith.constant 0 : i32
      %c0_i32_274 = arith.constant 0 : i32
      %343 = tpu.memref_slice %arg3[%c0_i32_273, %c0_i32_274] : memref<30522x128xf32, #tpu.memory_space<any>> -> memref<1x128xf32, #tpu.memory_space<any>>
      %c0_i32_275 = arith.constant 0 : i32
      %c0_i32_276 = arith.constant 0 : i32
      %344 = tpu.memref_slice %arg4[%c0_i32_275, %c0_i32_276] : memref<256x128xf32, #tpu.memory_space<vmem>> -> memref<1x128xf32, #tpu.memory_space<vmem>>
      %345 = tpu.memref_slice %arg5[%c27_i32_272] : memref<32x!tpu.dma_semaphore, #tpu.memory_space<semaphore_mem>> -> memref<1x!tpu.dma_semaphore, #tpu.memory_space<semaphore_mem>>
      %346 = tpu.memref_squeeze %345 : memref<1x!tpu.dma_semaphore, #tpu.memory_space<semaphore_mem>> -> memref<!tpu.dma_semaphore, #tpu.memory_space<semaphore_mem>>
      tpu.wait_dma2 semaphore(%346 : memref<!tpu.dma_semaphore, #tpu.memory_space<semaphore_mem>>) src(%343 : memref<1x128xf32, #tpu.memory_space<any>>) dst(%344 : memref<1x128xf32, #tpu.memory_space<vmem>>)
      %c28_i32_277 = arith.constant 28 : i32
      %c0_i32_278 = arith.constant 0 : i32
      %c0_i32_279 = arith.constant 0 : i32
      %347 = tpu.memref_slice %arg3[%c0_i32_278, %c0_i32_279] : memref<30522x128xf32, #tpu.memory_space<any>> -> memref<1x128xf32, #tpu.memory_space<any>>
      %c0_i32_280 = arith.constant 0 : i32
      %c0_i32_281 = arith.constant 0 : i32
      %348 = tpu.memref_slice %arg4[%c0_i32_280, %c0_i32_281] : memref<256x128xf32, #tpu.memory_space<vmem>> -> memref<1x128xf32, #tpu.memory_space<vmem>>
      %349 = tpu.memref_slice %arg5[%c28_i32_277] : memref<32x!tpu.dma_semaphore, #tpu.memory_space<semaphore_mem>> -> memref<1x!tpu.dma_semaphore, #tpu.memory_space<semaphore_mem>>
      %350 = tpu.memref_squeeze %349 : memref<1x!tpu.dma_semaphore, #tpu.memory_space<semaphore_mem>> -> memref<!tpu.dma_semaphore, #tpu.memory_space<semaphore_mem>>
      tpu.wait_dma2 semaphore(%350 : memref<!tpu.dma_semaphore, #tpu.memory_space<semaphore_mem>>) src(%347 : memref<1x128xf32, #tpu.memory_space<any>>) dst(%348 : memref<1x128xf32, #tpu.memory_space<vmem>>)
      %c29_i32_282 = arith.constant 29 : i32
      %c0_i32_283 = arith.constant 0 : i32
      %c0_i32_284 = arith.constant 0 : i32
      %351 = tpu.memref_slice %arg3[%c0_i32_283, %c0_i32_284] : memref<30522x128xf32, #tpu.memory_space<any>> -> memref<1x128xf32, #tpu.memory_space<any>>
      %c0_i32_285 = arith.constant 0 : i32
      %c0_i32_286 = arith.constant 0 : i32
      %352 = tpu.memref_slice %arg4[%c0_i32_285, %c0_i32_286] : memref<256x128xf32, #tpu.memory_space<vmem>> -> memref<1x128xf32, #tpu.memory_space<vmem>>
      %353 = tpu.memref_slice %arg5[%c29_i32_282] : memref<32x!tpu.dma_semaphore, #tpu.memory_space<semaphore_mem>> -> memref<1x!tpu.dma_semaphore, #tpu.memory_space<semaphore_mem>>
      %354 = tpu.memref_squeeze %353 : memref<1x!tpu.dma_semaphore, #tpu.memory_space<semaphore_mem>> -> memref<!tpu.dma_semaphore, #tpu.memory_space<semaphore_mem>>
      tpu.wait_dma2 semaphore(%354 : memref<!tpu.dma_semaphore, #tpu.memory_space<semaphore_mem>>) src(%351 : memref<1x128xf32, #tpu.memory_space<any>>) dst(%352 : memref<1x128xf32, #tpu.memory_space<vmem>>)
      %c30_i32_287 = arith.constant 30 : i32
      %c0_i32_288 = arith.constant 0 : i32
      %c0_i32_289 = arith.constant 0 : i32
      %355 = tpu.memref_slice %arg3[%c0_i32_288, %c0_i32_289] : memref<30522x128xf32, #tpu.memory_space<any>> -> memref<1x128xf32, #tpu.memory_space<any>>
      %c0_i32_290 = arith.constant 0 : i32
      %c0_i32_291 = arith.constant 0 : i32
      %356 = tpu.memref_slice %arg4[%c0_i32_290, %c0_i32_291] : memref<256x128xf32, #tpu.memory_space<vmem>> -> memref<1x128xf32, #tpu.memory_space<vmem>>
      %357 = tpu.memref_slice %arg5[%c30_i32_287] : memref<32x!tpu.dma_semaphore, #tpu.memory_space<semaphore_mem>> -> memref<1x!tpu.dma_semaphore, #tpu.memory_space<semaphore_mem>>
      %358 = tpu.memref_squeeze %357 : memref<1x!tpu.dma_semaphore, #tpu.memory_space<semaphore_mem>> -> memref<!tpu.dma_semaphore, #tpu.memory_space<semaphore_mem>>
      tpu.wait_dma2 semaphore(%358 : memref<!tpu.dma_semaphore, #tpu.memory_space<semaphore_mem>>) src(%355 : memref<1x128xf32, #tpu.memory_space<any>>) dst(%356 : memref<1x128xf32, #tpu.memory_space<vmem>>)
      %c31_i32_292 = arith.constant 31 : i32
      %c0_i32_293 = arith.constant 0 : i32
      %c0_i32_294 = arith.constant 0 : i32
      %359 = tpu.memref_slice %arg3[%c0_i32_293, %c0_i32_294] : memref<30522x128xf32, #tpu.memory_space<any>> -> memref<1x128xf32, #tpu.memory_space<any>>
      %c0_i32_295 = arith.constant 0 : i32
      %c0_i32_296 = arith.constant 0 : i32
      %360 = tpu.memref_slice %arg4[%c0_i32_295, %c0_i32_296] : memref<256x128xf32, #tpu.memory_space<vmem>> -> memref<1x128xf32, #tpu.memory_space<vmem>>
      %361 = tpu.memref_slice %arg5[%c31_i32_292] : memref<32x!tpu.dma_semaphore, #tpu.memory_space<semaphore_mem>> -> memref<1x!tpu.dma_semaphore, #tpu.memory_space<semaphore_mem>>
      %362 = tpu.memref_squeeze %361 : memref<1x!tpu.dma_semaphore, #tpu.memory_space<semaphore_mem>> -> memref<!tpu.dma_semaphore, #tpu.memory_space<semaphore_mem>>
      tpu.wait_dma2 semaphore(%362 : memref<!tpu.dma_semaphore, #tpu.memory_space<semaphore_mem>>) src(%359 : memref<1x128xf32, #tpu.memory_space<any>>) dst(%360 : memref<1x128xf32, #tpu.memory_space<vmem>>)
    } else {
    }
    %c256_i32_2 = arith.constant 256 : i32
    %7 = arith.cmpi slt, %3, %c256_i32_2 : i32
    %8 = arith.extui %7 : i1 to i32
    %c0_i32_3 = arith.constant 0 : i32
    %9 = arith.cmpi ne, %8, %c0_i32_3 : i32
    scf.if %9 {
      %c32_i32 = arith.constant 32 : i32
      %10 = arith.minsi %c32_i32, %3 : i32
      %c0_i32_4 = arith.constant 0 : i32
      %11 = arith.subi %10, %c0_i32_4 : i32
      %c1_i32 = arith.constant 1 : i32
      %c1_i32_5 = arith.constant 1 : i32
      %12 = arith.subi %c1_i32, %c1_i32_5 : i32
      %13 = arith.addi %11, %12 : i32
      %c1_i32_6 = arith.constant 1 : i32
      %14 = arith.divsi %13, %c1_i32_6 : i32
      %c1_i32_7 = arith.constant 1 : i32
      %c0_i32_8 = arith.constant 0 : i32
      %c0_i32_9 = arith.constant 0 : i32
      %15 = arith.subi %14, %c0_i32_9 : i32
      %16 = arith.addi %c0_i32_9, %15 : i32
      %c1_i32_10 = arith.constant 1 : i32
      scf.for %arg6 = %c0_i32_9 to %16 step %c1_i32_10  : i32 {
        %23 = arith.muli %arg6, %c1_i32_7 : i32
        %24 = arith.addi %c0_i32_8, %23 : i32
        %25 = arith.addi %0, %24 : i32
        %26 = arith.index_cast %25 : i32 to index
        %27 = memref.load %arg2[%26] : memref<256xi32, #tpu.memory_space<smem>>
        %c0_i32_19 = arith.constant 0 : i32
        %28 = tpu.memref_slice %arg3[%27, %c0_i32_19] : memref<30522x128xf32, #tpu.memory_space<any>> -> memref<1x128xf32, #tpu.memory_space<any>>
        %c0_i32_20 = arith.constant 0 : i32
        %29 = tpu.memref_slice %arg4[%24, %c0_i32_20] : memref<256x128xf32, #tpu.memory_space<vmem>> -> memref<1x128xf32, #tpu.memory_space<vmem>>
        %30 = tpu.memref_slice %arg5[%24] : memref<32x!tpu.dma_semaphore, #tpu.memory_space<semaphore_mem>> -> memref<1x!tpu.dma_semaphore, #tpu.memory_space<semaphore_mem>>
        %31 = tpu.memref_squeeze %30 : memref<1x!tpu.dma_semaphore, #tpu.memory_space<semaphore_mem>> -> memref<!tpu.dma_semaphore, #tpu.memory_space<semaphore_mem>>
        tpu.enqueue_dma source(%28 : memref<1x128xf32, #tpu.memory_space<any>>) target(%29 : memref<1x128xf32, #tpu.memory_space<vmem>>) target_semaphore(%31 : memref<!tpu.dma_semaphore, #tpu.memory_space<semaphore_mem>>)
      }
      %c0_i32_11 = arith.constant 0 : i32
      %17 = arith.subi %3, %c0_i32_11 : i32
      %c1_i32_12 = arith.constant 1 : i32
      %c1_i32_13 = arith.constant 1 : i32
      %18 = arith.subi %c1_i32_12, %c1_i32_13 : i32
      %19 = arith.addi %17, %18 : i32
      %c1_i32_14 = arith.constant 1 : i32
      %20 = arith.divsi %19, %c1_i32_14 : i32
      %c1_i32_15 = arith.constant 1 : i32
      %c0_i32_16 = arith.constant 0 : i32
      %c0_i32_17 = arith.constant 0 : i32
      %21 = arith.subi %20, %c0_i32_17 : i32
      %22 = arith.addi %c0_i32_17, %21 : i32
      %c1_i32_18 = arith.constant 1 : i32
      scf.for %arg6 = %c0_i32_17 to %22 step %c1_i32_18  : i32 {
        %23 = arith.muli %arg6, %c1_i32_15 : i32
        %24 = arith.addi %c0_i32_16, %23 : i32
        %c31_i32 = arith.constant 31 : i32
        %25 = arith.andi %24, %c31_i32 : i32
        %c0_i32_19 = arith.constant 0 : i32
        %c0_i32_20 = arith.constant 0 : i32
        %26 = tpu.memref_slice %arg3[%c0_i32_19, %c0_i32_20] : memref<30522x128xf32, #tpu.memory_space<any>> -> memref<1x128xf32, #tpu.memory_space<any>>
        %c0_i32_21 = arith.constant 0 : i32
        %c0_i32_22 = arith.constant 0 : i32
        %27 = tpu.memref_slice %arg4[%c0_i32_21, %c0_i32_22] : memref<256x128xf32, #tpu.memory_space<vmem>> -> memref<1x128xf32, #tpu.memory_space<vmem>>
        %28 = tpu.memref_slice %arg5[%25] : memref<32x!tpu.dma_semaphore, #tpu.memory_space<semaphore_mem>> -> memref<1x!tpu.dma_semaphore, #tpu.memory_space<semaphore_mem>>
        %29 = tpu.memref_squeeze %28 : memref<1x!tpu.dma_semaphore, #tpu.memory_space<semaphore_mem>> -> memref<!tpu.dma_semaphore, #tpu.memory_space<semaphore_mem>>
        tpu.wait_dma2 semaphore(%29 : memref<!tpu.dma_semaphore, #tpu.memory_space<semaphore_mem>>) src(%26 : memref<1x128xf32, #tpu.memory_space<any>>) dst(%27 : memref<1x128xf32, #tpu.memory_space<vmem>>)
        %c32_i32_23 = arith.constant 32 : i32
        %30 = arith.addi %24, %c32_i32_23 : i32
        %31 = arith.cmpi slt, %30, %3 : i32
        %32 = arith.extui %31 : i1 to i32
        %c0_i32_24 = arith.constant 0 : i32
        %33 = arith.cmpi ne, %32, %c0_i32_24 : i32
        scf.if %33 {
          %c32_i32_25 = arith.constant 32 : i32
          %34 = arith.addi %24, %c32_i32_25 : i32
          %35 = arith.addi %0, %24 : i32
          %c32_i32_26 = arith.constant 32 : i32
          %36 = arith.addi %35, %c32_i32_26 : i32
          %37 = arith.index_cast %36 : i32 to index
          %38 = memref.load %arg2[%37] : memref<256xi32, #tpu.memory_space<smem>>
          %c0_i32_27 = arith.constant 0 : i32
          %39 = tpu.memref_slice %arg3[%38, %c0_i32_27] : memref<30522x128xf32, #tpu.memory_space<any>> -> memref<1x128xf32, #tpu.memory_space<any>>
          %c0_i32_28 = arith.constant 0 : i32
          %40 = tpu.memref_slice %arg4[%34, %c0_i32_28] : memref<256x128xf32, #tpu.memory_space<vmem>> -> memref<1x128xf32, #tpu.memory_space<vmem>>
          %41 = tpu.memref_slice %arg5[%25] : memref<32x!tpu.dma_semaphore, #tpu.memory_space<semaphore_mem>> -> memref<1x!tpu.dma_semaphore, #tpu.memory_space<semaphore_mem>>
          %42 = tpu.memref_squeeze %41 : memref<1x!tpu.dma_semaphore, #tpu.memory_space<semaphore_mem>> -> memref<!tpu.dma_semaphore, #tpu.memory_space<semaphore_mem>>
          tpu.enqueue_dma source(%39 : memref<1x128xf32, #tpu.memory_space<any>>) target(%40 : memref<1x128xf32, #tpu.memory_space<vmem>>) target_semaphore(%42 : memref<!tpu.dma_semaphore, #tpu.memory_space<semaphore_mem>>)
        } else {
        }
      }
    } else {
    }
    return
  }
  func.func @transform_1(%arg0: i32, %arg1: memref<1xi32, #tpu.memory_space<smem>>, %arg2: memref<256xi32, #tpu.memory_space<smem>>) -> (i32, i32) {
    %c0_i32 = arith.constant 0 : i32
    %c0_i32_0 = arith.constant 0 : i32
    return %arg0, %c0_i32 : i32, i32
  }
}

</mosaic_0001>

<bundles_post_ra>
// kernel: tpu_custom_call.1
= control target key start
LH: loop header
LB: loop body
LE: loop exit
PB: predicated region body
PF: predicated region fallthrough
CT: control target
= control target key end

     0   :  { %s3449_s0 = inlined_call_operand.<no memory space> [shape: s32[1], index: 0, kind: input, shape index: {}]   ;;  %s3450_s1 = inlined_call_operand.hbm [shape: s32[256], index: 1, kind: input, shape index: {}]   ;;  %s3451_s2 = inlined_call_operand.hbm [shape: f32[30522,128], index: 2, kind: input, shape index: {}]   ;;  %s3452_s3 = inlined_call_operand.hbm [shape: f32[256,128], index: 3, kind: output, shape index: {}]  }
   0x1   :  { %s1450_s14 = scalar_lea.hbm %s3450_s1, 32 }
   0x2   :  { %p1451_p0 = scmp.ne.s32.totalorder %s3450_s1, %s1450_s14  ;;  %p1454_p1 = scmp.lt.u32.totalorder %s1450_s14, %s3450_s1 }
   0x4   :  { %p1456_p2 = pnand %p1454_p1, %p1451_p0 }
   0x6   :  { %1459 = shalt.err (!%p1456_p2)  }
   0x7   :  { %s2604_s19 = smov [#allocation5]  }
   0x8   :  { %10 = dma.hbm_to_smem %s3450_s1, 32, %s2604_s19, [#allocation3] }
   0x9   :  { %2506 = dma.done.wait [#allocation3], 32 }
   0xa   :  { %2507 = vsyncadd [#allocation3], 4294967264 }
   0xb   :  { %12 = sfence }
   0xc   :  { %13 = vsyncpa [#allocation7], 0  ;;  %p17_p3 = scmp.lt.s32.totalorder %s3449_s0, 256 }
   0xe   :  { %s2684_s28 = scalar_select %p17_p3, %s3449_s0, 256 }
  0x10   :  { %p1257_p4 = scmp.ne.s32.totalorder %s2684_s28, 256 }
  0x11   :  { %s23_s1 = sld [smem:[#allocation5]] (!%p1257_p4)  ;;  %s2605_s29 = smov (!%p1257_p4), [#allocation6]  }
  0x12   :  { %22 = sbr.rel (%p1257_p4) target bundleno = 999 (0x3e7), region = 5  ;;  %s33_s30 = sshll.u32 (!%p1257_p4), %s2605_s29, 4  ;;  %s2689_s30 = int_to_ptr.vmem [resolvable:$true] %s33_s30 }
  0x13   :  { %s2687_s4 = sld [smem:[#allocation5 + $0x1]] (!%p1257_p4)  ;;  %s2606_s5 = smov (!%p1257_p4), [#allocation6 + $0x1]  }
  0x14   :  { %s50_s6 = sshll.u32 (!%p1257_p4), %s2606_s5, 4  ;;  %s2691_s7 = sld [smem:[#allocation5 + $0x2]] (!%p1257_p4)  ;;  %s2693_s6 = int_to_ptr.vmem [resolvable:$true] %s50_s6 }
  0x15   :  { %s2607_s8 = smov (!%p1257_p4), [#allocation6 + $0x2]   ;;  %s2695_s10 = sld [smem:[#allocation5 + $0x3]] (!%p1257_p4) }
  0x16   :  { %s67_s9 = sshll.u32 (!%p1257_p4), %s2607_s8, 4  ;;  %s2706_s19 = scalar_lea.hbm (!%p1257_p4), %s3451_s2, 488448  ;;  %s2697_s9 = int_to_ptr.vmem [resolvable:$true] %s67_s9 }
  0x17   :  { %s1258_s11 = sshll.u32 (!%p1257_p4), %s23_s1, 4 }
  0x18   :  { %s25_s14 = scalar_lea.hbm (!%p1257_p4), %s3451_s2, %s1258_s11 }
  0x19   :  { %s1260_s15 = sshll.u32 %s2687_s4, 4  ;;  %s1460_s16 = scalar_lea.hbm %s25_s14, 16 }
  0x1a   :  { %p1461_p5 = scmp.ne.s32.totalorder %s25_s14, %s1460_s16  ;;  %p1463_p6 = scmp.lt.u32.totalorder %s25_s14, %s3451_s2 }
  0x1b   :  { %p1464_p7 = scmp.lt.u32.totalorder %s2706_s19, %s1460_s16  ;;  %p1466_p9 = scmp.lt.u32.totalorder %s1460_s16, %s25_s14 }
  0x1d   :  { %p1465_p8 = por %p1464_p7, %p1463_p6 }
  0x1f   :  { %p1467_p10 = por %p1466_p9, %p1465_p8 }
  0x21   :  { %p1468_p11 = pnand %p1467_p10, %p1461_p5 }
  0x23   :  { %1471 = shalt.err (!%p1468_p11)  }
  0x24   :  { %s1472_s22 = scalar_lea.vmem %s2689_s30, 16  ;;  %s2715_s23 = scalar_lea.vmem %s2689_s30, 4096 }
  0x25   :  { %p1473_p12 = scmp.ne.s32.totalorder %s2689_s30, %s1472_s22  ;;  %p1477_p13 = scmp.lt.s32.totalorder %s2689_s30, %s2689_s30 }
  0x26   :  { %p1478_p0 = scmp.lt.s32.totalorder %s2715_s23, %s1472_s22 }
  0x28   :  { %p1479_p1 = por %p1478_p0, %p1477_p13 }
  0x2a   :  { %p1480_p2 = pnand %p1479_p1, %p1473_p12 }
  0x2c   :  { %1483 = shalt.err (!%p1480_p2)  }
  0x2d   :  { %36 = dma.hbm_to_vmem [thread:$0]  %s25_s14, 16, %s2689_s30, [#allocation2] }
  0x2e   :  { %s40_s26 = scalar_lea.hbm %s3451_s2, %s1260_s15  ;;  %s1262_s27 = sshll.u32 %s2691_s7, 4 }
  0x2f   :  { %s1484_s1 = scalar_lea.hbm %s40_s26, 16  ;;  %p1487_p5 = scmp.lt.u32.totalorder %s40_s26, %s3451_s2 }
  0x30   :  { %p1485_p4 = scmp.ne.s32.totalorder %s40_s26, %s1484_s1  ;;  %p1488_p6 = scmp.lt.u32.totalorder %s2706_s19, %s1484_s1 }
  0x31   :  { %p1490_p8 = scmp.lt.u32.totalorder %s1484_s1, %s40_s26 }
  0x32   :  { %p1489_p7 = por %p1488_p6, %p1487_p5 }
  0x34   :  { %p1491_p9 = por %p1490_p8, %p1489_p7 }
  0x36   :  { %p1492_p10 = pnand %p1491_p9, %p1485_p4 }
  0x38   :  { %1495 = shalt.err (!%p1492_p10)  }
  0x39   :  { %s1496_s5 = scalar_lea.vmem %s2693_s6, 16  ;;  %p1501_p12 = scmp.lt.s32.totalorder %s2693_s6, %s2689_s30 }
  0x3a   :  { %p1497_p11 = scmp.ne.s32.totalorder %s2693_s6, %s1496_s5  ;;  %p1502_p13 = scmp.lt.s32.totalorder %s2715_s23, %s1496_s5 }
  0x3c   :  { %p1503_p0 = por %p1502_p13, %p1501_p12 }
  0x3e   :  { %p1504_p1 = pnand %p1503_p0, %p1497_p11 }
  0x40   :  { %1507 = shalt.err (!%p1504_p1)  }
  0x41   :  { %53 = dma.hbm_to_vmem [thread:$0]  %s40_s26, 16, %s2693_s6, [#allocation2 + $0x1] }
  0x42   :  { %s57_s11 = scalar_lea.hbm %s3451_s2, %s1262_s27  ;;  %s1264_s12 = sshll.u32 %s2695_s10, 4 }
  0x43   :  { %s1508_s13 = scalar_lea.hbm %s57_s11, 16  ;;  %p1511_p4 = scmp.lt.u32.totalorder %s57_s11, %s3451_s2 }
  0x44   :  { %p1509_p2 = scmp.ne.s32.totalorder %s57_s11, %s1508_s13  ;;  %p1512_p5 = scmp.lt.u32.totalorder %s2706_s19, %s1508_s13 }
  0x45   :  { %p1514_p7 = scmp.lt.u32.totalorder %s1508_s13, %s57_s11 }
  0x46   :  { %p1513_p6 = por %p1512_p5, %p1511_p4 }
  0x48   :  { %p1515_p8 = por %p1514_p7, %p1513_p6 }
  0x4a   :  { %p1516_p9 = pnand %p1515_p8, %p1509_p2 }
  0x4c   :  { %1519 = shalt.err (!%p1516_p9)  }
  0x4d   :  { %s1520_s6 = scalar_lea.vmem %s2697_s9, 16  ;;  %p1525_p11 = scmp.lt.s32.totalorder %s2697_s9, %s2689_s30 }
  0x4e   :  { %p1521_p10 = scmp.ne.s32.totalorder %s2697_s9, %s1520_s6  ;;  %p1526_p12 = scmp.lt.s32.totalorder %s2715_s23, %s1520_s6 }
  0x50   :  { %p1527_p13 = por %p1526_p12, %p1525_p11 }
  0x52   :  { %p1528_p0 = pnand %p1527_p13, %p1521_p10 }
  0x54   :  { %1531 = shalt.err (!%p1528_p0)  }
  0x55   :  { %70 = dma.hbm_to_vmem [thread:$0]  %s57_s11, 16, %s2697_s9, [#allocation2 + $0x2] }
  0x56   :  { %s74_s17 = scalar_lea.hbm %s3451_s2, %s1264_s12  ;;  %s2608_s18 = smov [#allocation6 + $0x3]  }
  0x57   :  { %s84_s20 = sshll.u32 %s2608_s18, 4  ;;  %s2752_s21 = sld [smem:[#allocation5 + $0x4]]  ;;  %s85_s20 = int_to_ptr.vmem [resolvable:$true] %s84_s20 }
  0x58   :  { %s1532_s22 = scalar_lea.hbm %s74_s17, 16  ;;  %p1535_p2 = scmp.lt.u32.totalorder %s74_s17, %s3451_s2 }
  0x59   :  { %p1533_p1 = scmp.ne.s32.totalorder %s74_s17, %s1532_s22  ;;  %p1536_p4 = scmp.lt.u32.totalorder %s2706_s19, %s1532_s22 }
  0x5a   :  { %p1538_p6 = scmp.lt.u32.totalorder %s1532_s22, %s74_s17 }
  0x5b   :  { %p1537_p5 = por %p1536_p4, %p1535_p2 }
  0x5d   :  { %p1539_p7 = por %p1538_p6, %p1537_p5 }
  0x5f   :  { %p1540_p8 = pnand %p1539_p7, %p1533_p1 }
  0x61   :  { %1543 = shalt.err (!%p1540_p8)  }
  0x62   :  { %s1544_s9 = scalar_lea.vmem %s85_s20, 16  ;;  %p1549_p10 = scmp.lt.s32.totalorder %s85_s20, %s2689_s30 }
  0x63   :  { %p1545_p9 = scmp.ne.s32.totalorder %s85_s20, %s1544_s9  ;;  %p1550_p11 = scmp.lt.s32.totalorder %s2715_s23, %s1544_s9 }
  0x65   :  { %p1551_p12 = por %p1550_p11, %p1549_p10 }
  0x67   :  { %p1552_p13 = pnand %p1551_p12, %p1545_p9 }
  0x69   :  { %1555 = shalt.err (!%p1552_p13)  }
  0x6a   :  { %87 = dma.hbm_to_vmem [thread:$0]  %s74_s17, 16, %s85_s20, [#allocation2 + $0x3] }
  0x6b   :  { %s2609_s26 = smov [#allocation6 + $0x4]   ;;  %s2760_s1 = sld [smem:[#allocation5 + $0x5]] }
  0x6c   :  { %s101_s27 = sshll.u32 %s2609_s26, 4  ;;  %s2610_s29 = smov [#allocation6 + $0x5]   ;;  %s102_s27 = int_to_ptr.vmem [resolvable:$true] %s101_s27 }
  0x6d   :  { %s118_s4 = sshll.u32 %s2610_s29, 4  ;;  %s2762_s5 = sld [smem:[#allocation5 + $0x6]]  ;;  %s2765_s4 = int_to_ptr.vmem [resolvable:$true] %s118_s4 }
  0x6e   :  { %s1266_s7 = sshll.u32 %s2752_s21, 4 }
  0x6f   :  { %s91_s12 = scalar_lea.hbm %s3451_s2, %s1266_s7 }
  0x70   :  { %s1556_s13 = scalar_lea.hbm %s91_s12, 16  ;;  %p1559_p1 = scmp.lt.u32.totalorder %s91_s12, %s3451_s2 }
  0x71   :  { %p1557_p0 = scmp.ne.s32.totalorder %s91_s12, %s1556_s13  ;;  %p1560_p2 = scmp.lt.u32.totalorder %s2706_s19, %s1556_s13 }
  0x72   :  { %p1562_p5 = scmp.lt.u32.totalorder %s1556_s13, %s91_s12 }
  0x73   :  { %p1561_p4 = por %p1560_p2, %p1559_p1 }
  0x75   :  { %p1563_p6 = por %p1562_p5, %p1561_p4 }
  0x77   :  { %p1564_p7 = pnand %p1563_p6, %p1557_p0 }
  0x79   :  { %1567 = shalt.err (!%p1564_p7)  }
  0x7a   :  { %s1568_s6 = scalar_lea.vmem %s102_s27, 16  ;;  %p1573_p9 = scmp.lt.s32.totalorder %s102_s27, %s2689_s30 }
  0x7b   :  { %p1569_p8 = scmp.ne.s32.totalorder %s102_s27, %s1568_s6  ;;  %p1574_p10 = scmp.lt.s32.totalorder %s2715_s23, %s1568_s6 }
  0x7d   :  { %p1575_p11 = por %p1574_p10, %p1573_p9 }
  0x7f   :  { %p1576_p12 = pnand %p1575_p11, %p1569_p8 }
  0x81   :  { %1579 = shalt.err (!%p1576_p12)  }
  0x82   :  { %104 = dma.hbm_to_vmem [thread:$0]  %s91_s12, 16, %s102_s27, [#allocation2 + $0x4] }
  0x83   :  { %s1268_s10 = sshll.u32 %s2760_s1, 4  ;;  %s2611_s16 = smov [#allocation6 + $0x6]  }
  0x84   :  { %s135_s17 = sshll.u32 %s2611_s16, 4  ;;  %s108_s21 = scalar_lea.hbm %s3451_s2, %s1268_s10  ;;  %s2780_s17 = int_to_ptr.vmem [resolvable:$true] %s135_s17 }
  0x85   :  { %s1580_s22 = scalar_lea.hbm %s108_s21, 16  ;;  %p1583_p0 = scmp.lt.u32.totalorder %s108_s21, %s3451_s2 }
  0x86   :  { %p1581_p13 = scmp.ne.s32.totalorder %s108_s21, %s1580_s22  ;;  %p1584_p1 = scmp.lt.u32.totalorder %s2706_s19, %s1580_s22 }
  0x87   :  { %p1586_p4 = scmp.lt.u32.totalorder %s1580_s22, %s108_s21 }
  0x88   :  { %p1585_p2 = por %p1584_p1, %p1583_p0 }
  0x8a   :  { %p1587_p5 = por %p1586_p4, %p1585_p2 }
  0x8c   :  { %p1588_p6 = pnand %p1587_p5, %p1581_p13 }
  0x8e   :  { %1591 = shalt.err (!%p1588_p6)  }
  0x8f   :  { %s1592_s9 = scalar_lea.vmem %s2765_s4, 16  ;;  %p1597_p8 = scmp.lt.s32.totalorder %s2765_s4, %s2689_s30 }
  0x90   :  { %p1593_p7 = scmp.ne.s32.totalorder %s2765_s4, %s1592_s9  ;;  %p1598_p9 = scmp.lt.s32.totalorder %s2715_s23, %s1592_s9 }
  0x92   :  { %p1599_p10 = por %p1598_p9, %p1597_p8 }
  0x94   :  { %p1600_p11 = pnand %p1599_p10, %p1593_p7 }
  0x96   :  { %1603 = shalt.err (!%p1600_p11)  }
  0x97   :  { %121 = dma.hbm_to_vmem [thread:$0]  %s108_s21, 16, %s2765_s4, [#allocation2 + $0x5] }
  0x98   :  { %s1270_s26 = sshll.u32 %s2762_s5, 4  ;;  %s2793_s27 = sld [smem:[#allocation5 + $0x7]] }
  0x99   :  { %s125_s7 = scalar_lea.hbm %s3451_s2, %s1270_s26 }
  0x9a   :  { %s1604_s8 = scalar_lea.hbm %s125_s7, 16  ;;  %p1607_p13 = scmp.lt.u32.totalorder %s125_s7, %s3451_s2 }
  0x9b   :  { %p1605_p12 = scmp.ne.s32.totalorder %s125_s7, %s1604_s8  ;;  %p1608_p0 = scmp.lt.u32.totalorder %s2706_s19, %s1604_s8 }
  0x9c   :  { %p1610_p2 = scmp.lt.u32.totalorder %s1604_s8, %s125_s7 }
  0x9d   :  { %p1609_p1 = por %p1608_p0, %p1607_p13 }
  0x9f   :  { %p1611_p4 = por %p1610_p2, %p1609_p1 }
  0xa1   :  { %p1612_p5 = pnand %p1611_p4, %p1605_p12 }
  0xa3   :  { %1615 = shalt.err (!%p1612_p5)  }
  0xa4   :  { %s1616_s4 = scalar_lea.vmem %s2780_s17, 16  ;;  %p1621_p7 = scmp.lt.s32.totalorder %s2780_s17, %s2689_s30 }
  0xa5   :  { %p1617_p6 = scmp.ne.s32.totalorder %s2780_s17, %s1616_s4  ;;  %p1622_p8 = scmp.lt.s32.totalorder %s2715_s23, %s1616_s4 }
  0xa7   :  { %p1623_p9 = por %p1622_p8, %p1621_p7 }
  0xa9   :  { %p1624_p10 = pnand %p1623_p9, %p1617_p6 }
  0xab   :  { %1627 = shalt.err (!%p1624_p10)  }
  0xac   :  { %138 = dma.hbm_to_vmem [thread:$0]  %s125_s7, 16, %s2780_s17, [#allocation2 + $0x6] }
  0xad   :  { %s2612_s5 = smov [#allocation6 + $0x7]   ;;  %s2808_s14 = sld [smem:[#allocation5 + $0x8]] }
  0xae   :  { %s152_s13 = sshll.u32 %s2612_s5, 4  ;;  %s2613_s15 = smov [#allocation6 + $0x8]   ;;  %s153_s13 = int_to_ptr.vmem [resolvable:$true] %s152_s13 }
  0xaf   :  { %s169_s6 = sshll.u32 %s2613_s15, 4  ;;  %s2810_s10 = sld [smem:[#allocation5 + $0x9]]  ;;  %s2813_s6 = int_to_ptr.vmem [resolvable:$true] %s169_s6 }
  0xb0   :  { %s1272_s16 = sshll.u32 %s2793_s27, 4 }
  0xb1   :  { %s142_s21 = scalar_lea.hbm %s3451_s2, %s1272_s16 }
  0xb2   :  { %s1628_s22 = scalar_lea.hbm %s142_s21, 16  ;;  %p1631_p12 = scmp.lt.u32.totalorder %s142_s21, %s3451_s2 }
  0xb3   :  { %p1629_p11 = scmp.ne.s32.totalorder %s142_s21, %s1628_s22  ;;  %p1632_p13 = scmp.lt.u32.totalorder %s2706_s19, %s1628_s22 }
  0xb4   :  { %p1634_p1 = scmp.lt.u32.totalorder %s1628_s22, %s142_s21 }
  0xb5   :  { %p1633_p0 = por %p1632_p13, %p1631_p12 }
  0xb7   :  { %p1635_p2 = por %p1634_p1, %p1633_p0 }
  0xb9   :  { %p1636_p4 = pnand %p1635_p2, %p1629_p11 }
  0xbb   :  { %1639 = shalt.err (!%p1636_p4)  }
  0xbc   :  { %s1640_s25 = scalar_lea.vmem %s153_s13, 16  ;;  %p1645_p6 = scmp.lt.s32.totalorder %s153_s13, %s2689_s30 }
  0xbd   :  { %p1641_p5 = scmp.ne.s32.totalorder %s153_s13, %s1640_s25  ;;  %p1646_p7 = scmp.lt.s32.totalorder %s2715_s23, %s1640_s25 }
  0xbf   :  { %p1647_p8 = por %p1646_p7, %p1645_p6 }
  0xc1   :  { %p1648_p9 = pnand %p1647_p8, %p1641_p5 }
  0xc3   :  { %1651 = shalt.err (!%p1648_p9)  }
  0xc4   :  { %155 = dma.hbm_to_vmem [thread:$0]  %s142_s21, 16, %s153_s13, [#allocation2 + $0x7] }
  0xc5   :  { %s1274_s9 = sshll.u32 %s2808_s14, 4  ;;  %s2614_s26 = smov [#allocation6 + $0x9]  }
  0xc6   :  { %s186_s27 = sshll.u32 %s2614_s26, 4  ;;  %s159_s7 = scalar_lea.hbm %s3451_s2, %s1274_s9  ;;  %s2828_s27 = int_to_ptr.vmem [resolvable:$true] %s186_s27 }
  0xc7   :  { %s1652_s8 = scalar_lea.hbm %s159_s7, 16  ;;  %p1655_p11 = scmp.lt.u32.totalorder %s159_s7, %s3451_s2 }
  0xc8   :  { %p1653_p10 = scmp.ne.s32.totalorder %s159_s7, %s1652_s8  ;;  %p1656_p12 = scmp.lt.u32.totalorder %s2706_s19, %s1652_s8 }
  0xc9   :  { %p1658_p0 = scmp.lt.u32.totalorder %s1652_s8, %s159_s7 }
  0xca   :  { %p1657_p13 = por %p1656_p12, %p1655_p11 }
  0xcc   :  { %p1659_p1 = por %p1658_p0, %p1657_p13 }
  0xce   :  { %p1660_p2 = pnand %p1659_p1, %p1653_p10 }
  0xd0   :  { %1663 = shalt.err (!%p1660_p2)  }
  0xd1   :  { %s1664_s4 = scalar_lea.vmem %s2813_s6, 16  ;;  %p1669_p5 = scmp.lt.s32.totalorder %s2813_s6, %s2689_s30 }
  0xd2   :  { %p1665_p4 = scmp.ne.s32.totalorder %s2813_s6, %s1664_s4  ;;  %p1670_p6 = scmp.lt.s32.totalorder %s2715_s23, %s1664_s4 }
  0xd4   :  { %p1671_p7 = por %p1670_p6, %p1669_p5 }
  0xd6   :  { %p1672_p8 = pnand %p1671_p7, %p1665_p4 }
  0xd8   :  { %1675 = shalt.err (!%p1672_p8)  }
  0xd9   :  { %172 = dma.hbm_to_vmem [thread:$0]  %s159_s7, 16, %s2813_s6, [#allocation2 + $0x8] }
  0xda   :  { %s1276_s5 = sshll.u32 %s2810_s10, 4  ;;  %s2841_s13 = sld [smem:[#allocation5 + $0xa]] }
  0xdb   :  { %s176_s16 = scalar_lea.hbm %s3451_s2, %s1276_s5 }
  0xdc   :  { %s1676_s18 = scalar_lea.hbm %s176_s16, 16  ;;  %p1679_p10 = scmp.lt.u32.totalorder %s176_s16, %s3451_s2 }
  0xdd   :  { %p1677_p9 = scmp.ne.s32.totalorder %s176_s16, %s1676_s18  ;;  %p1680_p11 = scmp.lt.u32.totalorder %s2706_s19, %s1676_s18 }
  0xde   :  { %p1682_p13 = scmp.lt.u32.totalorder %s1676_s18, %s176_s16 }
  0xdf   :  { %p1681_p12 = por %p1680_p11, %p1679_p10 }
  0xe1   :  { %p1683_p0 = por %p1682_p13, %p1681_p12 }
  0xe3   :  { %p1684_p1 = pnand %p1683_p0, %p1677_p9 }
  0xe5   :  { %1687 = shalt.err (!%p1684_p1)  }
  0xe6   :  { %s1688_s6 = scalar_lea.vmem %s2828_s27, 16  ;;  %p1693_p4 = scmp.lt.s32.totalorder %s2828_s27, %s2689_s30 }
  0xe7   :  { %p1689_p2 = scmp.ne.s32.totalorder %s2828_s27, %s1688_s6  ;;  %p1694_p5 = scmp.lt.s32.totalorder %s2715_s23, %s1688_s6 }
  0xe9   :  { %p1695_p6 = por %p1694_p5, %p1693_p4 }
  0xeb   :  { %p1696_p7 = pnand %p1695_p6, %p1689_p2 }
  0xed   :  { %1699 = shalt.err (!%p1696_p7)  }
  0xee   :  { %189 = dma.hbm_to_vmem [thread:$0]  %s176_s16, 16, %s2828_s27, [#allocation2 + $0x9] }
  0xef   :  { %s2615_s10 = smov [#allocation6 + $0xa]   ;;  %s2856_s24 = sld [smem:[#allocation5 + $0xb]] }
  0xf0   :  { %s203_s22 = sshll.u32 %s2615_s10, 4  ;;  %s2616_s17 = smov [#allocation6 + $0xb]   ;;  %s204_s22 = int_to_ptr.vmem [resolvable:$true] %s203_s22 }
  0xf1   :  { %s220_s25 = sshll.u32 %s2616_s17, 4  ;;  %s2858_s9 = sld [smem:[#allocation5 + $0xc]]  ;;  %s2861_s25 = int_to_ptr.vmem [resolvable:$true] %s220_s25 }
  0xf2   :  { %s1278_s26 = sshll.u32 %s2841_s13, 4 }
  0xf3   :  { %s193_s7 = scalar_lea.hbm %s3451_s2, %s1278_s26 }
  0xf4   :  { %s1700_s8 = scalar_lea.hbm %s193_s7, 16  ;;  %p1703_p9 = scmp.lt.u32.totalorder %s193_s7, %s3451_s2 }
  0xf5   :  { %p1701_p8 = scmp.ne.s32.totalorder %s193_s7, %s1700_s8  ;;  %p1704_p10 = scmp.lt.u32.totalorder %s2706_s19, %s1700_s8 }
  0xf6   :  { %p1706_p12 = scmp.lt.u32.totalorder %s1700_s8, %s193_s7 }
  0xf7   :  { %p1705_p11 = por %p1704_p10, %p1703_p9 }
  0xf9   :  { %p1707_p13 = por %p1706_p12, %p1705_p11 }
  0xfb   :  { %p1708_p0 = pnand %p1707_p13, %p1701_p8 }
  0xfd   :  { %1711 = shalt.err (!%p1708_p0)  }
  0xfe   :  { %s1712_s12 = scalar_lea.vmem %s204_s22, 16  ;;  %p1717_p2 = scmp.lt.s32.totalorder %s204_s22, %s2689_s30 }
  0xff   :  { %p1713_p1 = scmp.ne.s32.totalorder %s204_s22, %s1712_s12  ;;  %p1718_p4 = scmp.lt.s32.totalorder %s2715_s23, %s1712_s12 }
 0x101   :  { %p1719_p5 = por %p1718_p4, %p1717_p2 }
 0x103   :  { %p1720_p6 = pnand %p1719_p5, %p1713_p1 }
 0x105   :  { %1723 = shalt.err (!%p1720_p6)  }
 0x106   :  { %206 = dma.hbm_to_vmem [thread:$0]  %s193_s7, 16, %s204_s22, [#allocation2 + $0xa] }
 0x107   :  { %s1280_s4 = sshll.u32 %s2856_s24, 4  ;;  %s2617_s5 = smov [#allocation6 + $0xc]  }
 0x108   :  { %s237_s13 = sshll.u32 %s2617_s5, 4  ;;  %s210_s16 = scalar_lea.hbm %s3451_s2, %s1280_s4  ;;  %s2876_s13 = int_to_ptr.vmem [resolvable:$true] %s237_s13 }
 0x109   :  { %s1724_s18 = scalar_lea.hbm %s210_s16, 16  ;;  %p1727_p8 = scmp.lt.u32.totalorder %s210_s16, %s3451_s2 }
 0x10a   :  { %p1725_p7 = scmp.ne.s32.totalorder %s210_s16, %s1724_s18  ;;  %p1728_p9 = scmp.lt.u32.totalorder %s2706_s19, %s1724_s18 }
 0x10b   :  { %p1730_p11 = scmp.lt.u32.totalorder %s1724_s18, %s210_s16 }
 0x10c   :  { %p1729_p10 = por %p1728_p9, %p1727_p8 }
 0x10e   :  { %p1731_p12 = por %p1730_p11, %p1729_p10 }
 0x110   :  { %p1732_p13 = pnand %p1731_p12, %p1725_p7 }
 0x112   :  { %1735 = shalt.err (!%p1732_p13)  }
 0x113   :  { %s1736_s6 = scalar_lea.vmem %s2861_s25, 16  ;;  %p1741_p1 = scmp.lt.s32.totalorder %s2861_s25, %s2689_s30 }
 0x114   :  { %p1737_p0 = scmp.ne.s32.totalorder %s2861_s25, %s1736_s6  ;;  %p1742_p2 = scmp.lt.s32.totalorder %s2715_s23, %s1736_s6 }
 0x116   :  { %p1743_p4 = por %p1742_p2, %p1741_p1 }
 0x118   :  { %p1744_p5 = pnand %p1743_p4, %p1737_p0 }
 0x11a   :  { %1747 = shalt.err (!%p1744_p5)  }
 0x11b   :  { %223 = dma.hbm_to_vmem [thread:$0]  %s210_s16, 16, %s2861_s25, [#allocation2 + $0xb] }
 0x11c   :  { %s1282_s10 = sshll.u32 %s2858_s9, 4  ;;  %s2889_s22 = sld [smem:[#allocation5 + $0xd]] }
 0x11d   :  { %s227_s26 = scalar_lea.hbm %s3451_s2, %s1282_s10 }
 0x11e   :  { %s1748_s1 = scalar_lea.hbm %s227_s26, 16  ;;  %p1751_p7 = scmp.lt.u32.totalorder %s227_s26, %s3451_s2 }
 0x11f   :  { %p1749_p6 = scmp.ne.s32.totalorder %s227_s26, %s1748_s1  ;;  %p1752_p8 = scmp.lt.u32.totalorder %s2706_s19, %s1748_s1 }
 0x120   :  { %p1754_p10 = scmp.lt.u32.totalorder %s1748_s1, %s227_s26 }
 0x121   :  { %p1753_p9 = por %p1752_p8, %p1751_p7 }
 0x123   :  { %p1755_p11 = por %p1754_p10, %p1753_p9 }
 0x125   :  { %p1756_p12 = pnand %p1755_p11, %p1749_p6 }
 0x127   :  { %1759 = shalt.err (!%p1756_p12)  }
 0x128   :  { %s1760_s25 = scalar_lea.vmem %s2876_s13, 16  ;;  %p1765_p0 = scmp.lt.s32.totalorder %s2876_s13, %s2689_s30 }
 0x129   :  { %p1761_p13 = scmp.ne.s32.totalorder %s2876_s13, %s1760_s25  ;;  %p1766_p1 = scmp.lt.s32.totalorder %s2715_s23, %s1760_s25 }
 0x12b   :  { %p1767_p2 = por %p1766_p1, %p1765_p0 }
 0x12d   :  { %p1768_p4 = pnand %p1767_p2, %p1761_p13 }
 0x12f   :  { %1771 = shalt.err (!%p1768_p4)  }
 0x130   :  { %240 = dma.hbm_to_vmem [thread:$0]  %s227_s26, 16, %s2876_s13, [#allocation2 + $0xc] }
 0x131   :  { %s2618_s9 = smov [#allocation6 + $0xd]   ;;  %s2904_s11 = sld [smem:[#allocation5 + $0xe]] }
 0x132   :  { %s254_s8 = sshll.u32 %s2618_s9, 4  ;;  %s2619_s27 = smov [#allocation6 + $0xe]   ;;  %s255_s8 = int_to_ptr.vmem [resolvable:$true] %s254_s8 }
 0x133   :  { %s271_s12 = sshll.u32 %s2619_s27, 4  ;;  %s2906_s4 = sld [smem:[#allocation5 + $0xf]]  ;;  %s2909_s12 = int_to_ptr.vmem [resolvable:$true] %s271_s12 }
 0x134   :  { %s1284_s5 = sshll.u32 %s2889_s22, 4 }
 0x135   :  { %s244_s16 = scalar_lea.hbm %s3451_s2, %s1284_s5 }
 0x136   :  { %s1772_s18 = scalar_lea.hbm %s244_s16, 16  ;;  %p1775_p6 = scmp.lt.u32.totalorder %s244_s16, %s3451_s2 }
 0x137   :  { %p1773_p5 = scmp.ne.s32.totalorder %s244_s16, %s1772_s18  ;;  %p1776_p7 = scmp.lt.u32.totalorder %s2706_s19, %s1772_s18 }
 0x138   :  { %p1778_p9 = scmp.lt.u32.totalorder %s1772_s18, %s244_s16 }
 0x139   :  { %p1777_p8 = por %p1776_p7, %p1775_p6 }
 0x13b   :  { %p1779_p10 = por %p1778_p9, %p1777_p8 }
 0x13d   :  { %p1780_p11 = pnand %p1779_p10, %p1773_p5 }
 0x13f   :  { %1783 = shalt.err (!%p1780_p11)  }
 0x140   :  { %s1784_s21 = scalar_lea.vmem %s255_s8, 16  ;;  %p1789_p13 = scmp.lt.s32.totalorder %s255_s8, %s2689_s30 }
 0x141   :  { %p1785_p12 = scmp.ne.s32.totalorder %s255_s8, %s1784_s21  ;;  %p1790_p0 = scmp.lt.s32.totalorder %s2715_s23, %s1784_s21 }
 0x143   :  { %p1791_p1 = por %p1790_p0, %p1789_p13 }
 0x145   :  { %p1792_p2 = pnand %p1791_p1, %p1785_p12 }
 0x147   :  { %1795 = shalt.err (!%p1792_p2)  }
 0x148   :  { %257 = dma.hbm_to_vmem [thread:$0]  %s244_s16, 16, %s255_s8, [#allocation2 + $0xd] }
 0x149   :  { %s1286_s6 = sshll.u32 %s2904_s11, 4  ;;  %s2620_s10 = smov [#allocation6 + $0xf]  }
 0x14a   :  { %s288_s22 = sshll.u32 %s2620_s10, 4  ;;  %s261_s26 = scalar_lea.hbm %s3451_s2, %s1286_s6  ;;  %s2924_s22 = int_to_ptr.vmem [resolvable:$true] %s288_s22 }
 0x14b   :  { %s1796_s1 = scalar_lea.hbm %s261_s26, 16  ;;  %p1799_p5 = scmp.lt.u32.totalorder %s261_s26, %s3451_s2 }
 0x14c   :  { %p1797_p4 = scmp.ne.s32.totalorder %s261_s26, %s1796_s1  ;;  %p1800_p6 = scmp.lt.u32.totalorder %s2706_s19, %s1796_s1 }
 0x14d   :  { %p1802_p8 = scmp.lt.u32.totalorder %s1796_s1, %s261_s26 }
 0x14e   :  { %p1801_p7 = por %p1800_p6, %p1799_p5 }
 0x150   :  { %p1803_p9 = por %p1802_p8, %p1801_p7 }
 0x152   :  { %p1804_p10 = pnand %p1803_p9, %p1797_p4 }
 0x154   :  { %1807 = shalt.err (!%p1804_p10)  }
 0x155   :  { %s1808_s25 = scalar_lea.vmem %s2909_s12, 16  ;;  %p1813_p12 = scmp.lt.s32.totalorder %s2909_s12, %s2689_s30 }
 0x156   :  { %p1809_p11 = scmp.ne.s32.totalorder %s2909_s12, %s1808_s25  ;;  %p1814_p13 = scmp.lt.s32.totalorder %s2715_s23, %s1808_s25 }
 0x158   :  { %p1815_p0 = por %p1814_p13, %p1813_p12 }
 0x15a   :  { %p1816_p1 = pnand %p1815_p0, %p1809_p11 }
 0x15c   :  { %1819 = shalt.err (!%p1816_p1)  }
 0x15d   :  { %274 = dma.hbm_to_vmem [thread:$0]  %s261_s26, 16, %s2909_s12, [#allocation2 + $0xe] }
 0x15e   :  { %s1288_s9 = sshll.u32 %s2906_s4, 4  ;;  %s2937_s8 = sld [smem:[#allocation5 + $0x10]] }
 0x15f   :  { %s278_s5 = scalar_lea.hbm %s3451_s2, %s1288_s9 }
 0x160   :  { %s1820_s14 = scalar_lea.hbm %s278_s5, 16  ;;  %p1823_p4 = scmp.lt.u32.totalorder %s278_s5, %s3451_s2 }
 0x161   :  { %p1821_p2 = scmp.ne.s32.totalorder %s278_s5, %s1820_s14  ;;  %p1824_p5 = scmp.lt.u32.totalorder %s2706_s19, %s1820_s14 }
 0x162   :  { %p1826_p7 = scmp.lt.u32.totalorder %s1820_s14, %s278_s5 }
 0x163   :  { %p1825_p6 = por %p1824_p5, %p1823_p4 }
 0x165   :  { %p1827_p8 = por %p1826_p7, %p1825_p6 }
 0x167   :  { %p1828_p9 = pnand %p1827_p8, %p1821_p2 }
 0x169   :  { %1831 = shalt.err (!%p1828_p9)  }
 0x16a   :  { %s1832_s12 = scalar_lea.vmem %s2924_s22, 16  ;;  %p1837_p11 = scmp.lt.s32.totalorder %s2924_s22, %s2689_s30 }
 0x16b   :  { %p1833_p10 = scmp.ne.s32.totalorder %s2924_s22, %s1832_s12  ;;  %p1838_p12 = scmp.lt.s32.totalorder %s2715_s23, %s1832_s12 }
 0x16d   :  { %p1839_p13 = por %p1838_p12, %p1837_p11 }
 0x16f   :  { %p1840_p0 = pnand %p1839_p13, %p1833_p10 }
 0x171   :  { %1843 = shalt.err (!%p1840_p0)  }
 0x172   :  { %291 = dma.hbm_to_vmem [thread:$0]  %s278_s5, 16, %s2924_s22, [#allocation2 + $0xf] }
 0x173   :  { %s2621_s4 = smov [#allocation6 + $0x10]   ;;  %s2952_s20 = sld [smem:[#allocation5 + $0x11]] }
 0x174   :  { %s305_s18 = sshll.u32 %s2621_s4, 4  ;;  %s2622_s13 = smov [#allocation6 + $0x11]   ;;  %s306_s18 = int_to_ptr.vmem [resolvable:$true] %s305_s18 }
 0x175   :  { %s322_s21 = sshll.u32 %s2622_s13, 4  ;;  %s2954_s6 = sld [smem:[#allocation5 + $0x12]]  ;;  %s2957_s21 = int_to_ptr.vmem [resolvable:$true] %s322_s21 }
 0x176   :  { %s1290_s10 = sshll.u32 %s2937_s8, 4 }
 0x177   :  { %s295_s26 = scalar_lea.hbm %s3451_s2, %s1290_s10 }
 0x178   :  { %s1844_s1 = scalar_lea.hbm %s295_s26, 16  ;;  %p1847_p2 = scmp.lt.u32.totalorder %s295_s26, %s3451_s2 }
 0x179   :  { %p1845_p1 = scmp.ne.s32.totalorder %s295_s26, %s1844_s1  ;;  %p1848_p4 = scmp.lt.u32.totalorder %s2706_s19, %s1844_s1 }
 0x17a   :  { %p1850_p6 = scmp.lt.u32.totalorder %s1844_s1, %s295_s26 }
 0x17b   :  { %p1849_p5 = por %p1848_p4, %p1847_p2 }
 0x17d   :  { %p1851_p7 = por %p1850_p6, %p1849_p5 }
 0x17f   :  { %p1852_p8 = pnand %p1851_p7, %p1845_p1 }
 0x181   :  { %1855 = shalt.err (!%p1852_p8)  }
 0x182   :  { %s1856_s7 = scalar_lea.vmem %s306_s18, 16  ;;  %p1861_p10 = scmp.lt.s32.totalorder %s306_s18, %s2689_s30 }
 0x183   :  { %p1857_p9 = scmp.ne.s32.totalorder %s306_s18, %s1856_s7  ;;  %p1862_p11 = scmp.lt.s32.totalorder %s2715_s23, %s1856_s7 }
 0x185   :  { %p1863_p12 = por %p1862_p11, %p1861_p10 }
 0x187   :  { %p1864_p13 = pnand %p1863_p12, %p1857_p9 }
 0x189   :  { %1867 = shalt.err (!%p1864_p13)  }
 0x18a   :  { %308 = dma.hbm_to_vmem [thread:$0]  %s295_s26, 16, %s306_s18, [#allocation2 + $0x10] }
 0x18b   :  { %s1292_s25 = sshll.u32 %s2952_s20, 4  ;;  %s2623_s9 = smov [#allocation6 + $0x12]  }
 0x18c   :  { %s339_s8 = sshll.u32 %s2623_s9, 4  ;;  %s312_s5 = scalar_lea.hbm %s3451_s2, %s1292_s25  ;;  %s2972_s8 = int_to_ptr.vmem [resolvable:$true] %s339_s8 }
 0x18d   :  { %s1868_s14 = scalar_lea.hbm %s312_s5, 16  ;;  %p1871_p1 = scmp.lt.u32.totalorder %s312_s5, %s3451_s2 }
 0x18e   :  { %p1869_p0 = scmp.ne.s32.totalorder %s312_s5, %s1868_s14  ;;  %p1872_p2 = scmp.lt.u32.totalorder %s2706_s19, %s1868_s14 }
 0x18f   :  { %p1874_p5 = scmp.lt.u32.totalorder %s1868_s14, %s312_s5 }
 0x190   :  { %p1873_p4 = por %p1872_p2, %p1871_p1 }
 0x192   :  { %p1875_p6 = por %p1874_p5, %p1873_p4 }
 0x194   :  { %p1876_p7 = pnand %p1875_p6, %p1869_p0 }
 0x196   :  { %1879 = shalt.err (!%p1876_p7)  }
 0x197   :  { %s1880_s12 = scalar_lea.vmem %s2957_s21, 16  ;;  %p1885_p9 = scmp.lt.s32.totalorder %s2957_s21, %s2689_s30 }
 0x198   :  { %p1881_p8 = scmp.ne.s32.totalorder %s2957_s21, %s1880_s12  ;;  %p1886_p10 = scmp.lt.s32.totalorder %s2715_s23, %s1880_s12 }
 0x19a   :  { %p1887_p11 = por %p1886_p10, %p1885_p9 }
 0x19c   :  { %p1888_p12 = pnand %p1887_p11, %p1881_p8 }
 0x19e   :  { %1891 = shalt.err (!%p1888_p12)  }
 0x19f   :  { %325 = dma.hbm_to_vmem [thread:$0]  %s312_s5, 16, %s2957_s21, [#allocation2 + $0x11] }
 0x1a0   :  { %s1294_s4 = sshll.u32 %s2954_s6, 4  ;;  %s2985_s18 = sld [smem:[#allocation5 + $0x13]] }
 0x1a1   :  { %s329_s10 = scalar_lea.hbm %s3451_s2, %s1294_s4 }
 0x1a2   :  { %s1892_s24 = scalar_lea.hbm %s329_s10, 16  ;;  %p1895_p0 = scmp.lt.u32.totalorder %s329_s10, %s3451_s2 }
 0x1a3   :  { %p1893_p13 = scmp.ne.s32.totalorder %s329_s10, %s1892_s24  ;;  %p1896_p1 = scmp.lt.u32.totalorder %s2706_s19, %s1892_s24 }
 0x1a4   :  { %p1898_p4 = scmp.lt.u32.totalorder %s1892_s24, %s329_s10 }
 0x1a5   :  { %p1897_p2 = por %p1896_p1, %p1895_p0 }
 0x1a7   :  { %p1899_p5 = por %p1898_p4, %p1897_p2 }
 0x1a9   :  { %p1900_p6 = pnand %p1899_p5, %p1893_p13 }
 0x1ab   :  { %1903 = shalt.err (!%p1900_p6)  }
 0x1ac   :  { %s1904_s21 = scalar_lea.vmem %s2972_s8, 16  ;;  %p1909_p8 = scmp.lt.s32.totalorder %s2972_s8, %s2689_s30 }
 0x1ad   :  { %p1905_p7 = scmp.ne.s32.totalorder %s2972_s8, %s1904_s21  ;;  %p1910_p9 = scmp.lt.s32.totalorder %s2715_s23, %s1904_s21 }
 0x1af   :  { %p1911_p10 = por %p1910_p9, %p1909_p8 }
 0x1b1   :  { %p1912_p11 = pnand %p1911_p10, %p1905_p7 }
 0x1b3   :  { %1915 = shalt.err (!%p1912_p11)  }
 0x1b4   :  { %342 = dma.hbm_to_vmem [thread:$0]  %s329_s10, 16, %s2972_s8, [#allocation2 + $0x12] }
 0x1b5   :  { %s2624_s6 = smov [#allocation6 + $0x13]   ;;  %s3000_s29 = sld [smem:[#allocation5 + $0x14]] }
 0x1b6   :  { %s356_s1 = sshll.u32 %s2624_s6, 4  ;;  %s2625_s22 = smov [#allocation6 + $0x14]   ;;  %s357_s1 = int_to_ptr.vmem [resolvable:$true] %s356_s1 }
 0x1b7   :  { %s373_s7 = sshll.u32 %s2625_s22, 4  ;;  %s3002_s25 = sld [smem:[#allocation5 + $0x15]]  ;;  %s3005_s7 = int_to_ptr.vmem [resolvable:$true] %s373_s7 }
 0x1b8   :  { %s1296_s9 = sshll.u32 %s2985_s18, 4 }
 0x1b9   :  { %s346_s5 = scalar_lea.hbm %s3451_s2, %s1296_s9 }
 0x1ba   :  { %s1916_s14 = scalar_lea.hbm %s346_s5, 16  ;;  %p1919_p13 = scmp.lt.u32.totalorder %s346_s5, %s3451_s2 }
 0x1bb   :  { %p1917_p12 = scmp.ne.s32.totalorder %s346_s5, %s1916_s14  ;;  %p1920_p0 = scmp.lt.u32.totalorder %s2706_s19, %s1916_s14 }
 0x1bc   :  { %p1922_p2 = scmp.lt.u32.totalorder %s1916_s14, %s346_s5 }
 0x1bd   :  { %p1921_p1 = por %p1920_p0, %p1919_p13 }
 0x1bf   :  { %p1923_p4 = por %p1922_p2, %p1921_p1 }
 0x1c1   :  { %p1924_p5 = pnand %p1923_p4, %p1917_p12 }
 0x1c3   :  { %1927 = shalt.err (!%p1924_p5)  }
 0x1c4   :  { %s1928_s16 = scalar_lea.vmem %s357_s1, 16  ;;  %p1933_p7 = scmp.lt.s32.totalorder %s357_s1, %s2689_s30 }
 0x1c5   :  { %p1929_p6 = scmp.ne.s32.totalorder %s357_s1, %s1928_s16  ;;  %p1934_p8 = scmp.lt.s32.totalorder %s2715_s23, %s1928_s16 }
 0x1c7   :  { %p1935_p9 = por %p1934_p8, %p1933_p7 }
 0x1c9   :  { %p1936_p10 = pnand %p1935_p9, %p1929_p6 }
 0x1cb   :  { %1939 = shalt.err (!%p1936_p10)  }
 0x1cc   :  { %359 = dma.hbm_to_vmem [thread:$0]  %s346_s5, 16, %s357_s1, [#allocation2 + $0x13] }
 0x1cd   :  { %s1298_s12 = sshll.u32 %s3000_s29, 4  ;;  %s2626_s4 = smov [#allocation6 + $0x15]  }
 0x1ce   :  { %s390_s18 = sshll.u32 %s2626_s4, 4  ;;  %s363_s10 = scalar_lea.hbm %s3451_s2, %s1298_s12  ;;  %s3020_s18 = int_to_ptr.vmem [resolvable:$true] %s390_s18 }
 0x1cf   :  { %s1940_s24 = scalar_lea.hbm %s363_s10, 16  ;;  %p1943_p12 = scmp.lt.u32.totalorder %s363_s10, %s3451_s2 }
 0x1d0   :  { %p1941_p11 = scmp.ne.s32.totalorder %s363_s10, %s1940_s24  ;;  %p1944_p13 = scmp.lt.u32.totalorder %s2706_s19, %s1940_s24 }
 0x1d1   :  { %p1946_p1 = scmp.lt.u32.totalorder %s1940_s24, %s363_s10 }
 0x1d2   :  { %p1945_p0 = por %p1944_p13, %p1943_p12 }
 0x1d4   :  { %p1947_p2 = por %p1946_p1, %p1945_p0 }
 0x1d6   :  { %p1948_p4 = pnand %p1947_p2, %p1941_p11 }
 0x1d8   :  { %1951 = shalt.err (!%p1948_p4)  }
 0x1d9   :  { %s1952_s21 = scalar_lea.vmem %s3005_s7, 16  ;;  %p1957_p6 = scmp.lt.s32.totalorder %s3005_s7, %s2689_s30 }
 0x1da   :  { %p1953_p5 = scmp.ne.s32.totalorder %s3005_s7, %s1952_s21  ;;  %p1958_p7 = scmp.lt.s32.totalorder %s2715_s23, %s1952_s21 }
 0x1dc   :  { %p1959_p8 = por %p1958_p7, %p1957_p6 }
 0x1de   :  { %p1960_p9 = pnand %p1959_p8, %p1953_p5 }
 0x1e0   :  { %1963 = shalt.err (!%p1960_p9)  }
 0x1e1   :  { %376 = dma.hbm_to_vmem [thread:$0]  %s363_s10, 16, %s3005_s7, [#allocation2 + $0x14] }
 0x1e2   :  { %s1300_s6 = sshll.u32 %s3002_s25, 4  ;;  %s3033_s1 = sld [smem:[#allocation5 + $0x16]] }
 0x1e3   :  { %s380_s9 = scalar_lea.hbm %s3451_s2, %s1300_s6 }
 0x1e4   :  { %s1964_s11 = scalar_lea.hbm %s380_s9, 16  ;;  %p1967_p11 = scmp.lt.u32.totalorder %s380_s9, %s3451_s2 }
 0x1e5   :  { %p1965_p10 = scmp.ne.s32.totalorder %s380_s9, %s1964_s11  ;;  %p1968_p12 = scmp.lt.u32.totalorder %s2706_s19, %s1964_s11 }
 0x1e6   :  { %p1970_p0 = scmp.lt.u32.totalorder %s1964_s11, %s380_s9 }
 0x1e7   :  { %p1969_p13 = por %p1968_p12, %p1967_p11 }
 0x1e9   :  { %p1971_p1 = por %p1970_p0, %p1969_p13 }
 0x1eb   :  { %p1972_p2 = pnand %p1971_p1, %p1965_p10 }
 0x1ed   :  { %1975 = shalt.err (!%p1972_p2)  }
 0x1ee   :  { %s1976_s7 = scalar_lea.vmem %s3020_s18, 16  ;;  %p1981_p5 = scmp.lt.s32.totalorder %s3020_s18, %s2689_s30 }
 0x1ef   :  { %p1977_p4 = scmp.ne.s32.totalorder %s3020_s18, %s1976_s7  ;;  %p1982_p6 = scmp.lt.s32.totalorder %s2715_s23, %s1976_s7 }
 0x1f1   :  { %p1983_p7 = por %p1982_p6, %p1981_p5 }
 0x1f3   :  { %p1984_p8 = pnand %p1983_p7, %p1977_p4 }
 0x1f5   :  { %1987 = shalt.err (!%p1984_p8)  }
 0x1f6   :  { %393 = dma.hbm_to_vmem [thread:$0]  %s380_s9, 16, %s3020_s18, [#allocation2 + $0x15] }
 0x1f7   :  { %s2627_s25 = smov [#allocation6 + $0x16]   ;;  %s3048_s15 = sld [smem:[#allocation5 + $0x17]] }
 0x1f8   :  { %s407_s14 = sshll.u32 %s2627_s25, 4  ;;  %s2628_s8 = smov [#allocation6 + $0x17]   ;;  %s408_s14 = int_to_ptr.vmem [resolvable:$true] %s407_s14 }
 0x1f9   :  { %s424_s16 = sshll.u32 %s2628_s8, 4  ;;  %s3050_s12 = sld [smem:[#allocation5 + $0x18]]  ;;  %s3053_s16 = int_to_ptr.vmem [resolvable:$true] %s424_s16 }
 0x1fa   :  { %s1302_s4 = sshll.u32 %s3033_s1, 4 }
 0x1fb   :  { %s397_s10 = scalar_lea.hbm %s3451_s2, %s1302_s4 }
 0x1fc   :  { %s1988_s24 = scalar_lea.hbm %s397_s10, 16  ;;  %p1991_p10 = scmp.lt.u32.totalorder %s397_s10, %s3451_s2 }
 0x1fd   :  { %p1989_p9 = scmp.ne.s32.totalorder %s397_s10, %s1988_s24  ;;  %p1992_p11 = scmp.lt.u32.totalorder %s2706_s19, %s1988_s24 }
 0x1fe   :  { %p1994_p13 = scmp.lt.u32.totalorder %s1988_s24, %s397_s10 }
 0x1ff   :  { %p1993_p12 = por %p1992_p11, %p1991_p10 }
 0x201   :  { %p1995_p0 = por %p1994_p13, %p1993_p12 }
 0x203   :  { %p1996_p1 = pnand %p1995_p0, %p1989_p9 }
 0x205   :  { %1999 = shalt.err (!%p1996_p1)  }
 0x206   :  { %s2000_s26 = scalar_lea.vmem %s408_s14, 16  ;;  %p2005_p4 = scmp.lt.s32.totalorder %s408_s14, %s2689_s30 }
 0x207   :  { %p2001_p2 = scmp.ne.s32.totalorder %s408_s14, %s2000_s26  ;;  %p2006_p5 = scmp.lt.s32.totalorder %s2715_s23, %s2000_s26 }
 0x209   :  { %p2007_p6 = por %p2006_p5, %p2005_p4 }
 0x20b   :  { %p2008_p7 = pnand %p2007_p6, %p2001_p2 }
 0x20d   :  { %2011 = shalt.err (!%p2008_p7)  }
 0x20e   :  { %410 = dma.hbm_to_vmem [thread:$0]  %s397_s10, 16, %s408_s14, [#allocation2 + $0x16] }
 0x20f   :  { %s1304_s21 = sshll.u32 %s3048_s15, 4  ;;  %s2629_s6 = smov [#allocation6 + $0x18]  }
 0x210   :  { %s441_s1 = sshll.u32 %s2629_s6, 4  ;;  %s414_s9 = scalar_lea.hbm %s3451_s2, %s1304_s21  ;;  %s3068_s1 = int_to_ptr.vmem [resolvable:$true] %s441_s1 }
 0x211   :  { %s2012_s11 = scalar_lea.hbm %s414_s9, 16  ;;  %p2015_p9 = scmp.lt.u32.totalorder %s414_s9, %s3451_s2 }
 0x212   :  { %p2013_p8 = scmp.ne.s32.totalorder %s414_s9, %s2012_s11  ;;  %p2016_p10 = scmp.lt.u32.totalorder %s2706_s19, %s2012_s11 }
 0x213   :  { %p2018_p12 = scmp.lt.u32.totalorder %s2012_s11, %s414_s9 }
 0x214   :  { %p2017_p11 = por %p2016_p10, %p2015_p9 }
 0x216   :  { %p2019_p13 = por %p2018_p12, %p2017_p11 }
 0x218   :  { %p2020_p0 = pnand %p2019_p13, %p2013_p8 }
 0x21a   :  { %2023 = shalt.err (!%p2020_p0)  }
 0x21b   :  { %s2024_s7 = scalar_lea.vmem %s3053_s16, 16  ;;  %p2029_p2 = scmp.lt.s32.totalorder %s3053_s16, %s2689_s30 }
 0x21c   :  { %p2025_p1 = scmp.ne.s32.totalorder %s3053_s16, %s2024_s7  ;;  %p2030_p4 = scmp.lt.s32.totalorder %s2715_s23, %s2024_s7 }
 0x21e   :  { %p2031_p5 = por %p2030_p4, %p2029_p2 }
 0x220   :  { %p2032_p6 = pnand %p2031_p5, %p2025_p1 }
 0x222   :  { %2035 = shalt.err (!%p2032_p6)  }
 0x223   :  { %427 = dma.hbm_to_vmem [thread:$0]  %s414_s9, 16, %s3053_s16, [#allocation2 + $0x17] }
 0x224   :  { %s1306_s25 = sshll.u32 %s3050_s12, 4  ;;  %s3081_s14 = sld [smem:[#allocation5 + $0x19]] }
 0x225   :  { %s431_s4 = scalar_lea.hbm %s3451_s2, %s1306_s25 }
 0x226   :  { %s2036_s20 = scalar_lea.hbm %s431_s4, 16  ;;  %p2039_p8 = scmp.lt.u32.totalorder %s431_s4, %s3451_s2 }
 0x227   :  { %p2037_p7 = scmp.ne.s32.totalorder %s431_s4, %s2036_s20  ;;  %p2040_p9 = scmp.lt.u32.totalorder %s2706_s19, %s2036_s20 }
 0x228   :  { %p2042_p11 = scmp.lt.u32.totalorder %s2036_s20, %s431_s4 }
 0x229   :  { %p2041_p10 = por %p2040_p9, %p2039_p8 }
 0x22b   :  { %p2043_p12 = por %p2042_p11, %p2041_p10 }
 0x22d   :  { %p2044_p13 = pnand %p2043_p12, %p2037_p7 }
 0x22f   :  { %2047 = shalt.err (!%p2044_p13)  }
 0x230   :  { %s2048_s16 = scalar_lea.vmem %s3068_s1, 16  ;;  %p2053_p1 = scmp.lt.s32.totalorder %s3068_s1, %s2689_s30 }
 0x231   :  { %p2049_p0 = scmp.ne.s32.totalorder %s3068_s1, %s2048_s16  ;;  %p2054_p2 = scmp.lt.s32.totalorder %s2715_s23, %s2048_s16 }
 0x233   :  { %p2055_p4 = por %p2054_p2, %p2053_p1 }
 0x235   :  { %p2056_p5 = pnand %p2055_p4, %p2049_p0 }
 0x237   :  { %2059 = shalt.err (!%p2056_p5)  }
 0x238   :  { %444 = dma.hbm_to_vmem [thread:$0]  %s431_s4, 16, %s3068_s1, [#allocation2 + $0x18] }
 0x239   :  { %s2630_s12 = smov [#allocation6 + $0x19]   ;;  %s3096_s17 = sld [smem:[#allocation5 + $0x1a]] }
 0x23a   :  { %s458_s24 = sshll.u32 %s2630_s12, 4  ;;  %s2631_s18 = smov [#allocation6 + $0x1a]   ;;  %s459_s24 = int_to_ptr.vmem [resolvable:$true] %s458_s24 }
 0x23b   :  { %s475_s26 = sshll.u32 %s2631_s18, 4  ;;  %s3098_s21 = sld [smem:[#allocation5 + $0x1b]]  ;;  %s3101_s26 = int_to_ptr.vmem [resolvable:$true] %s475_s26 }
 0x23c   :  { %s1308_s6 = sshll.u32 %s3081_s14, 4 }
 0x23d   :  { %s448_s9 = scalar_lea.hbm %s3451_s2, %s1308_s6 }
 0x23e   :  { %s2060_s11 = scalar_lea.hbm %s448_s9, 16  ;;  %p2063_p7 = scmp.lt.u32.totalorder %s448_s9, %s3451_s2 }
 0x23f   :  { %p2061_p6 = scmp.ne.s32.totalorder %s448_s9, %s2060_s11  ;;  %p2064_p8 = scmp.lt.u32.totalorder %s2706_s19, %s2060_s11 }
 0x240   :  { %p2066_p10 = scmp.lt.u32.totalorder %s2060_s11, %s448_s9 }
 0x241   :  { %p2065_p9 = por %p2064_p8, %p2063_p7 }
 0x243   :  { %p2067_p11 = por %p2066_p10, %p2065_p9 }
 0x245   :  { %p2068_p12 = pnand %p2067_p11, %p2061_p6 }
 0x247   :  { %2071 = shalt.err (!%p2068_p12)  }
 0x248   :  { %s2072_s5 = scalar_lea.vmem %s459_s24, 16  ;;  %p2077_p0 = scmp.lt.s32.totalorder %s459_s24, %s2689_s30 }
 0x249   :  { %p2073_p13 = scmp.ne.s32.totalorder %s459_s24, %s2072_s5  ;;  %p2078_p1 = scmp.lt.s32.totalorder %s2715_s23, %s2072_s5 }
 0x24b   :  { %p2079_p2 = por %p2078_p1, %p2077_p0 }
 0x24d   :  { %p2080_p4 = pnand %p2079_p2, %p2073_p13 }
 0x24f   :  { %2083 = shalt.err (!%p2080_p4)  }
 0x250   :  { %461 = dma.hbm_to_vmem [thread:$0]  %s448_s9, 16, %s459_s24, [#allocation2 + $0x19] }
 0x251   :  { %s1310_s7 = sshll.u32 %s3096_s17, 4  ;;  %s2632_s25 = smov [#allocation6 + $0x1b]  }
 0x252   :  { %s492_s14 = sshll.u32 %s2632_s25, 4  ;;  %s465_s4 = scalar_lea.hbm %s3451_s2, %s1310_s7  ;;  %s3116_s14 = int_to_ptr.vmem [resolvable:$true] %s492_s14 }
 0x253   :  { %s2084_s20 = scalar_lea.hbm %s465_s4, 16  ;;  %p2087_p6 = scmp.lt.u32.totalorder %s465_s4, %s3451_s2 }
 0x254   :  { %p2085_p5 = scmp.ne.s32.totalorder %s465_s4, %s2084_s20  ;;  %p2088_p7 = scmp.lt.u32.totalorder %s2706_s19, %s2084_s20 }
 0x255   :  { %p2090_p9 = scmp.lt.u32.totalorder %s2084_s20, %s465_s4 }
 0x256   :  { %p2089_p8 = por %p2088_p7, %p2087_p6 }
 0x258   :  { %p2091_p10 = por %p2090_p9, %p2089_p8 }
 0x25a   :  { %p2092_p11 = pnand %p2091_p10, %p2085_p5 }
 0x25c   :  { %2095 = shalt.err (!%p2092_p11)  }
 0x25d   :  { %s2096_s16 = scalar_lea.vmem %s3101_s26, 16  ;;  %p2101_p13 = scmp.lt.s32.totalorder %s3101_s26, %s2689_s30 }
 0x25e   :  { %p2097_p12 = scmp.ne.s32.totalorder %s3101_s26, %s2096_s16  ;;  %p2102_p0 = scmp.lt.s32.totalorder %s2715_s23, %s2096_s16 }
 0x260   :  { %p2103_p1 = por %p2102_p0, %p2101_p13 }
 0x262   :  { %p2104_p2 = pnand %p2103_p1, %p2097_p12 }
 0x264   :  { %2107 = shalt.err (!%p2104_p2)  }
 0x265   :  { %478 = dma.hbm_to_vmem [thread:$0]  %s465_s4, 16, %s3101_s26, [#allocation2 + $0x1a] }
 0x266   :  { %s1312_s12 = sshll.u32 %s3098_s21, 4  ;;  %s3129_s24 = sld [smem:[#allocation5 + $0x1c]] }
 0x267   :  { %s482_s6 = scalar_lea.hbm %s3451_s2, %s1312_s12 }
 0x268   :  { %s2108_s29 = scalar_lea.hbm %s482_s6, 16  ;;  %p2111_p5 = scmp.lt.u32.totalorder %s482_s6, %s3451_s2 }
 0x269   :  { %p2109_p4 = scmp.ne.s32.totalorder %s482_s6, %s2108_s29  ;;  %p2112_p6 = scmp.lt.u32.totalorder %s2706_s19, %s2108_s29 }
 0x26a   :  { %p2114_p8 = scmp.lt.u32.totalorder %s2108_s29, %s482_s6 }
 0x26b   :  { %p2113_p7 = por %p2112_p6, %p2111_p5 }
 0x26d   :  { %p2115_p9 = por %p2114_p8, %p2113_p7 }
 0x26f   :  { %p2116_p10 = pnand %p2115_p9, %p2109_p4 }
 0x271   :  { %2119 = shalt.err (!%p2116_p10)  }
 0x272   :  { %s2120_s26 = scalar_lea.vmem %s3116_s14, 16  ;;  %p2125_p12 = scmp.lt.s32.totalorder %s3116_s14, %s2689_s30 }
 0x273   :  { %p2121_p11 = scmp.ne.s32.totalorder %s3116_s14, %s2120_s26  ;;  %p2126_p13 = scmp.lt.s32.totalorder %s2715_s23, %s2120_s26 }
 0x275   :  { %p2127_p0 = por %p2126_p13, %p2125_p12 }
 0x277   :  { %p2128_p1 = pnand %p2127_p0, %p2121_p11 }
 0x279   :  { %2131 = shalt.err (!%p2128_p1)  }
 0x27a   :  { %495 = dma.hbm_to_vmem [thread:$0]  %s482_s6, 16, %s3116_s14, [#allocation2 + $0x1b] }
 0x27b   :  { %s2633_s21 = smov [#allocation6 + $0x1c]   ;;  %s3144_s27 = sld [smem:[#allocation5 + $0x1d]] }
 0x27c   :  { %s509_s11 = sshll.u32 %s2633_s21, 4  ;;  %s2634_s1 = smov [#allocation6 + $0x1d]   ;;  %s510_s11 = int_to_ptr.vmem [resolvable:$true] %s509_s11 }
 0x27d   :  { %s526_s5 = sshll.u32 %s2634_s1, 4  ;;  %s3146_s7 = sld [smem:[#allocation5 + $0x1e]]  ;;  %s3149_s5 = int_to_ptr.vmem [resolvable:$true] %s526_s5 }
 0x27e   :  { %s1314_s25 = sshll.u32 %s3129_s24, 4 }
 0x27f   :  { %s499_s4 = scalar_lea.hbm %s3451_s2, %s1314_s25 }
 0x280   :  { %s2132_s20 = scalar_lea.hbm %s499_s4, 16  ;;  %p2135_p4 = scmp.lt.u32.totalorder %s499_s4, %s3451_s2 }
 0x281   :  { %p2133_p2 = scmp.ne.s32.totalorder %s499_s4, %s2132_s20  ;;  %p2136_p5 = scmp.lt.u32.totalorder %s2706_s19, %s2132_s20 }
 0x282   :  { %p2138_p7 = scmp.lt.u32.totalorder %s2132_s20, %s499_s4 }
 0x283   :  { %p2137_p6 = por %p2136_p5, %p2135_p4 }
 0x285   :  { %p2139_p8 = por %p2138_p7, %p2137_p6 }
 0x287   :  { %p2140_p9 = pnand %p2139_p8, %p2133_p2 }
 0x289   :  { %2143 = shalt.err (!%p2140_p9)  }
 0x28a   :  { %s2144_s10 = scalar_lea.vmem %s510_s11, 16  ;;  %p2149_p11 = scmp.lt.s32.totalorder %s510_s11, %s2689_s30 }
 0x28b   :  { %p2145_p10 = scmp.ne.s32.totalorder %s510_s11, %s2144_s10  ;;  %p2150_p12 = scmp.lt.s32.totalorder %s2715_s23, %s2144_s10 }
 0x28d   :  { %p2151_p13 = por %p2150_p12, %p2149_p11 }
 0x28f   :  { %p2152_p0 = pnand %p2151_p13, %p2145_p10 }
 0x291   :  { %2155 = shalt.err (!%p2152_p0)  }
 0x292   :  { %512 = dma.hbm_to_vmem [thread:$0]  %s499_s4, 16, %s510_s11, [#allocation2 + $0x1c] }
 0x293   :  { %s1316_s16 = sshll.u32 %s3144_s27, 4  ;;  %s2635_s12 = smov [#allocation6 + $0x1e]  }
 0x294   :  { %s543_s24 = sshll.u32 %s2635_s12, 4  ;;  %s516_s6 = scalar_lea.hbm %s3451_s2, %s1316_s16  ;;  %s3164_s24 = int_to_ptr.vmem [resolvable:$true] %s543_s24 }
 0x295   :  { %s2156_s29 = scalar_lea.hbm %s516_s6, 16  ;;  %p2159_p2 = scmp.lt.u32.totalorder %s516_s6, %s3451_s2 }
 0x296   :  { %p2157_p1 = scmp.ne.s32.totalorder %s516_s6, %s2156_s29  ;;  %p2160_p4 = scmp.lt.u32.totalorder %s2706_s19, %s2156_s29 }
 0x297   :  { %p2162_p6 = scmp.lt.u32.totalorder %s2156_s29, %s516_s6 }
 0x298   :  { %p2161_p5 = por %p2160_p4, %p2159_p2 }
 0x29a   :  { %p2163_p7 = por %p2162_p6, %p2161_p5 }
 0x29c   :  { %p2164_p8 = pnand %p2163_p7, %p2157_p1 }
 0x29e   :  { %2167 = shalt.err (!%p2164_p8)  }
 0x29f   :  { %s2168_s26 = scalar_lea.vmem %s3149_s5, 16  ;;  %p2173_p10 = scmp.lt.s32.totalorder %s3149_s5, %s2689_s30 }
 0x2a0   :  { %p2169_p9 = scmp.ne.s32.totalorder %s3149_s5, %s2168_s26  ;;  %p2174_p11 = scmp.lt.s32.totalorder %s2715_s23, %s2168_s26 }
 0x2a2   :  { %p2175_p12 = por %p2174_p11, %p2173_p10 }
 0x2a4   :  { %p2176_p13 = pnand %p2175_p12, %p2169_p9 }
 0x2a6   :  { %2179 = shalt.err (!%p2176_p13)  }
 0x2a7   :  { %529 = dma.hbm_to_vmem [thread:$0]  %s516_s6, 16, %s3149_s5, [#allocation2 + $0x1d] }
 0x2a8   :  { %s1318_s21 = sshll.u32 %s3146_s7, 4  ;;  %s1319_s11 = sld [smem:[#allocation5 + $0x1f]] }
 0x2a9   :  { %s533_s25 = scalar_lea.hbm %s3451_s2, %s1318_s21 }
 0x2aa   :  { %s2180_s15 = scalar_lea.hbm %s533_s25, 16  ;;  %p2183_p1 = scmp.lt.u32.totalorder %s533_s25, %s3451_s2 }
 0x2ab   :  { %p2181_p0 = scmp.ne.s32.totalorder %s533_s25, %s2180_s15  ;;  %p2184_p2 = scmp.lt.u32.totalorder %s2706_s19, %s2180_s15 }
 0x2ac   :  { %p2186_p5 = scmp.lt.u32.totalorder %s2180_s15, %s533_s25 }
 0x2ad   :  { %p2185_p4 = por %p2184_p2, %p2183_p1 }
 0x2af   :  { %p2187_p6 = por %p2186_p5, %p2185_p4 }
 0x2b1   :  { %p2188_p7 = pnand %p2187_p6, %p2181_p0 }
 0x2b3   :  { %2191 = shalt.err (!%p2188_p7)  }
 0x2b4   :  { %s2192_s5 = scalar_lea.vmem %s3164_s24, 16  ;;  %p2197_p9 = scmp.lt.s32.totalorder %s3164_s24, %s2689_s30 }
 0x2b5   :  { %p2193_p8 = scmp.ne.s32.totalorder %s3164_s24, %s2192_s5  ;;  %p2198_p10 = scmp.lt.s32.totalorder %s2715_s23, %s2192_s5 }
 0x2b7   :  { %p2199_p11 = por %p2198_p10, %p2197_p9 }
 0x2b9   :  { %p2200_p12 = pnand %p2199_p11, %p2193_p8 }
 0x2bb   :  { %2203 = shalt.err (!%p2200_p12)  }
 0x2bc   :  { %546 = dma.hbm_to_vmem [thread:$0]  %s533_s25, 16, %s3164_s24, [#allocation2 + $0x1e] }
 0x2bd   :  { %s2636_s7 = smov [#allocation6 + $0x1f]   ;;  %s1320_s13 = sshll.u32 %s1319_s11, 4 }
 0x2be   :  { %s560_s20 = sshll.u32 %s2636_s7, 4  ;;  %s550_s16 = scalar_lea.hbm %s3451_s2, %s1320_s13  ;;  %s561_s20 = int_to_ptr.vmem [resolvable:$true] %s560_s20 }
 0x2bf   :  { %s2204_s12 = scalar_lea.hbm %s550_s16, 16  ;;  %p2207_p0 = scmp.lt.u32.totalorder %s550_s16, %s3451_s2 }
 0x2c0   :  { %p2205_p13 = scmp.ne.s32.totalorder %s550_s16, %s2204_s12  ;;  %p2208_p1 = scmp.lt.u32.totalorder %s2706_s19, %s2204_s12 }
 0x2c1   :  { %p2210_p4 = scmp.lt.u32.totalorder %s2204_s12, %s550_s16 }
 0x2c2   :  { %p2209_p2 = por %p2208_p1, %p2207_p0 }
 0x2c4   :  { %p2211_p5 = por %p2210_p4, %p2209_p2 }
 0x2c6   :  { %p2212_p6 = pnand %p2211_p5, %p2205_p13 }
 0x2c8   :  { %2215 = shalt.err (!%p2212_p6)  }
 0x2c9   :  { %s2216_s24 = scalar_lea.vmem %s561_s20, 16  ;;  %p2221_p8 = scmp.lt.s32.totalorder %s561_s20, %s2689_s30 }
 0x2ca   :  { %p2217_p7 = scmp.ne.s32.totalorder %s561_s20, %s2216_s24  ;;  %p2222_p9 = scmp.lt.s32.totalorder %s2715_s23, %s2216_s24 }
 0x2cc   :  { %p2223_p10 = por %p2222_p9, %p2221_p8 }
 0x2ce   :  { %p2224_p11 = pnand %p2223_p10, %p2217_p7 }
 0x2d0   :  { %2227 = shalt.err (!%p2224_p11)  }
 0x2d1   :  { %563 = dma.hbm_to_vmem [thread:$0]  %s550_s16, 16, %s561_s20, [#allocation2 + $0x1f] }
 0x2d2   :  { %s3199_s6 = smov 0  }
 0x2d3 LB: > { %s3205_s29 = sshll.u32 %s2594_s6, 3  ;;  %s2594_s6 = sphi %s3199_s6, %s569_s6  }
 0x2d4   : > { %s572_s22 = sadd.s32 32, %s3205_s29  ;;  %s574_s9 = sand.u32 31, %s3205_s29 }
 0x2d5   : > { %s573_s26 = sld [smem:[#allocation5 + %s572_s22]]  ;;  %s3209_s21 = scalar_lea.sflag [#allocation2], %s574_s9 }
 0x2d6   : > { %2508 = dma.done.wait %s3209_s21, 16 }
 0x2d7   : > { %2509 = vsyncadd %s3209_s21, 4294967280  ;;  %s594_s11 = sadd.s32 1, %s3205_s29  ;;  %s3220_s7 = scalar_lea.vmem [#allocation6], %s3205_s29 }
 0x2d8   : > { %s596_s1 = sadd.s32 32, %s594_s11  ;;  %s598_s25 = sand.u32 31, %s594_s11 }
 0x2d9   : > { %s3214_s15 = sld [smem:[#allocation5 + %s596_s1]]  ;;  %s1190_s20 = scalar_lea.vmem %s3220_s7, 32 [#allocation6] }
 0x2da   : > { %s590_s13 = sshll.u32 %s1190_s20, 4  ;;  %s591_s13 = int_to_ptr.vmem [resolvable:$true] %s590_s13 }
 0x2db   : > { %s1322_s27 = sshll.u32 %s573_s26, 4 }
 0x2dc   : > { %s581_s5 = scalar_lea.hbm %s3451_s2, %s1322_s27 }
 0x2dd   : > { %s2228_s14 = scalar_lea.hbm %s581_s5, 16  ;;  %p2231_p13 = scmp.lt.u32.totalorder %s581_s5, %s3451_s2 }
 0x2de   : > { %p2229_p12 = scmp.ne.s32.totalorder %s581_s5, %s2228_s14  ;;  %p2232_p0 = scmp.lt.u32.totalorder %s2706_s19, %s2228_s14 }
 0x2df   : > { %p2234_p2 = scmp.lt.u32.totalorder %s2228_s14, %s581_s5 }
 0x2e0   : > { %p2233_p1 = por %p2232_p0, %p2231_p13 }
 0x2e2   : > { %p2235_p4 = por %p2234_p2, %p2233_p1 }
 0x2e4   : > { %p2236_p5 = pnand %p2235_p4, %p2229_p12 }
 0x2e6   : > { %2239 = shalt.err (!%p2236_p5)  }
 0x2e7   : > { %s2240_s12 = scalar_lea.vmem %s591_s13, 16  ;;  %p2245_p7 = scmp.lt.s32.totalorder %s591_s13, %s2689_s30 }
 0x2e8   : > { %p2241_p6 = scmp.ne.s32.totalorder %s591_s13, %s2240_s12  ;;  %p2246_p8 = scmp.lt.s32.totalorder %s2715_s23, %s2240_s12 }
 0x2ea   : > { %p2247_p9 = por %p2246_p8, %p2245_p7 }
 0x2ec   : > { %p2248_p10 = pnand %p2247_p9, %p2241_p6 }
 0x2ee   : > { %2251 = shalt.err (!%p2248_p10)  }
 0x2ef   : > { %593 = dma.hbm_to_vmem [thread:$0]  %s581_s5, 16, %s591_s13, %s3209_s21 }
 0x2f0   : > { %s3230_s17 = scalar_lea.sflag [#allocation2], %s598_s25 }
 0x2f1   : > { %2510 = dma.done.wait %s3230_s17, 16 }
 0x2f2   : > { %2511 = vsyncadd %s3230_s17, 4294967280  ;;  %s617_s18 = sadd.s32 2, %s3205_s29  ;;  %s1324_s24 = sshll.u32 %s3214_s15, 4 }
 0x2f3   : > { %s619_s22 = sadd.s32 32, %s617_s18  ;;  %s621_s9 = sand.u32 31, %s617_s18 }
 0x2f4   : > { %s3236_s26 = sld [smem:[#allocation5 + %s619_s22]]  ;;  %s604_s21 = scalar_lea.hbm %s3451_s2, %s1324_s24 }
 0x2f5   : > { %s1196_s1 = scalar_lea.vmem %s3220_s7, 33 [#allocation6]  ;;  %s2252_s8 = scalar_lea.hbm %s604_s21, 16 }
 0x2f6   : > { %s613_s25 = sshll.u32 %s1196_s1, 4  ;;  %p2253_p11 = scmp.ne.s32.totalorder %s604_s21, %s2252_s8  ;;  %s614_s25 = int_to_ptr.vmem [resolvable:$true] %s613_s25 }
 0x2f7   : > { %p2255_p12 = scmp.lt.u32.totalorder %s604_s21, %s3451_s2  ;;  %p2256_p13 = scmp.lt.u32.totalorder %s2706_s19, %s2252_s8 }
 0x2f8   : > { %p2258_p1 = scmp.lt.u32.totalorder %s2252_s8, %s604_s21 }
 0x2f9   : > { %p2257_p0 = por %p2256_p13, %p2255_p12 }
 0x2fb   : > { %p2259_p2 = por %p2258_p1, %p2257_p0 }
 0x2fd   : > { %p2260_p4 = pnand %p2259_p2, %p2253_p11 }
 0x2ff   : > { %2263 = shalt.err (!%p2260_p4)  }
 0x300   : > { %s2264_s15 = scalar_lea.vmem %s614_s25, 16  ;;  %p2269_p6 = scmp.lt.s32.totalorder %s614_s25, %s2689_s30 }
 0x301   : > { %p2265_p5 = scmp.ne.s32.totalorder %s614_s25, %s2264_s15  ;;  %p2270_p7 = scmp.lt.s32.totalorder %s2715_s23, %s2264_s15 }
 0x303   : > { %p2271_p8 = por %p2270_p7, %p2269_p6 }
 0x305   : > { %p2272_p9 = pnand %p2271_p8, %p2265_p5 }
 0x307   : > { %2275 = shalt.err (!%p2272_p9)  }
 0x308   : > { %616 = dma.hbm_to_vmem [thread:$0]  %s604_s21, 16, %s614_s25, %s3230_s17 }
 0x309   : > { %s3249_s20 = scalar_lea.sflag [#allocation2], %s621_s9 }
 0x30a   : > { %2512 = dma.done.wait %s3249_s20, 16 }
 0x30b   : > { %2513 = vsyncadd %s3249_s20, 4294967280  ;;  %s640_s13 = sadd.s32 3, %s3205_s29  ;;  %s1326_s14 = sshll.u32 %s3236_s26, 4 }
 0x30c   : > { %s642_s10 = sadd.s32 32, %s640_s13  ;;  %s644_s16 = sand.u32 31, %s640_s13 }
 0x30d   : > { %s3255_s12 = sld [smem:[#allocation5 + %s642_s10]]  ;;  %s627_s17 = scalar_lea.hbm %s3451_s2, %s1326_s14 }
 0x30e   : > { %s1202_s22 = scalar_lea.vmem %s3220_s7, 34 [#allocation6]  ;;  %s2276_s11 = scalar_lea.hbm %s627_s17, 16 }
 0x30f   : > { %s636_s9 = sshll.u32 %s1202_s22, 4  ;;  %p2277_p10 = scmp.ne.s32.totalorder %s627_s17, %s2276_s11  ;;  %s637_s9 = int_to_ptr.vmem [resolvable:$true] %s636_s9 }
 0x310   : > { %p2279_p11 = scmp.lt.u32.totalorder %s627_s17, %s3451_s2  ;;  %p2280_p12 = scmp.lt.u32.totalorder %s2706_s19, %s2276_s11 }
 0x311   : > { %p2282_p0 = scmp.lt.u32.totalorder %s2276_s11, %s627_s17 }
 0x312   : > { %p2281_p13 = por %p2280_p12, %p2279_p11 }
 0x314   : > { %p2283_p1 = por %p2282_p0, %p2281_p13 }
 0x316   : > { %p2284_p2 = pnand %p2283_p1, %p2277_p10 }
 0x318   : > { %2287 = shalt.err (!%p2284_p2)  }
 0x319   : > { %s2288_s26 = scalar_lea.vmem %s637_s9, 16  ;;  %p2293_p5 = scmp.lt.s32.totalorder %s637_s9, %s2689_s30 }
 0x31a   : > { %p2289_p4 = scmp.ne.s32.totalorder %s637_s9, %s2288_s26  ;;  %p2294_p6 = scmp.lt.s32.totalorder %s2715_s23, %s2288_s26 }
 0x31c   : > { %p2295_p7 = por %p2294_p6, %p2293_p5 }
 0x31e   : > { %p2296_p8 = pnand %p2295_p7, %p2289_p4 }
 0x320   : > { %2299 = shalt.err (!%p2296_p8)  }
 0x321   : > { %639 = dma.hbm_to_vmem [thread:$0]  %s627_s17, 16, %s637_s9, %s3249_s20 }
 0x322   : > { %s3268_s1 = scalar_lea.sflag [#allocation2], %s644_s16 }
 0x323   : > { %2514 = dma.done.wait %s3268_s1, 16 }
 0x324   : > { %2515 = vsyncadd %s3268_s1, 4294967280  ;;  %s663_s25 = sadd.s32 4, %s3205_s29  ;;  %s1328_s8 = sshll.u32 %s3255_s12, 4 }
 0x325   : > { %s665_s4 = sadd.s32 32, %s663_s25  ;;  %s667_s5 = sand.u32 31, %s663_s25 }
 0x326   : > { %s3274_s15 = sld [smem:[#allocation5 + %s665_s4]]  ;;  %s650_s20 = scalar_lea.hbm %s3451_s2, %s1328_s8 }
 0x327   : > { %s1208_s10 = scalar_lea.vmem %s3220_s7, 35 [#allocation6]  ;;  %s2300_s18 = scalar_lea.hbm %s650_s20, 16 }
 0x328   : > { %s659_s16 = sshll.u32 %s1208_s10, 4  ;;  %p2301_p9 = scmp.ne.s32.totalorder %s650_s20, %s2300_s18  ;;  %s660_s16 = int_to_ptr.vmem [resolvable:$true] %s659_s16 }
 0x329   : > { %p2303_p10 = scmp.lt.u32.totalorder %s650_s20, %s3451_s2  ;;  %p2304_p11 = scmp.lt.u32.totalorder %s2706_s19, %s2300_s18 }
 0x32a   : > { %p2306_p13 = scmp.lt.u32.totalorder %s2300_s18, %s650_s20 }
 0x32b   : > { %p2305_p12 = por %p2304_p11, %p2303_p10 }
 0x32d   : > { %p2307_p0 = por %p2306_p13, %p2305_p12 }
 0x32f   : > { %p2308_p1 = pnand %p2307_p0, %p2301_p9 }
 0x331   : > { %2311 = shalt.err (!%p2308_p1)  }
 0x332   : > { %s2312_s12 = scalar_lea.vmem %s660_s16, 16  ;;  %p2317_p4 = scmp.lt.s32.totalorder %s660_s16, %s2689_s30 }
 0x333   : > { %p2313_p2 = scmp.ne.s32.totalorder %s660_s16, %s2312_s12  ;;  %p2318_p5 = scmp.lt.s32.totalorder %s2715_s23, %s2312_s12 }
 0x335   : > { %p2319_p6 = por %p2318_p5, %p2317_p4 }
 0x337   : > { %p2320_p7 = pnand %p2319_p6, %p2313_p2 }
 0x339   : > { %2323 = shalt.err (!%p2320_p7)  }
 0x33a   : > { %662 = dma.hbm_to_vmem [thread:$0]  %s650_s20, 16, %s660_s16, %s3268_s1 }
 0x33b   : > { %s3287_s22 = scalar_lea.sflag [#allocation2], %s667_s5 }
 0x33c   : > { %2516 = dma.done.wait %s3287_s22, 16 }
 0x33d   : > { %2517 = vsyncadd %s3287_s22, 4294967280  ;;  %s686_s9 = sadd.s32 5, %s3205_s29  ;;  %s1330_s11 = sshll.u32 %s3274_s15, 4 }
 0x33e   : > { %s688_s27 = sadd.s32 32, %s686_s9  ;;  %s690_s21 = sand.u32 31, %s686_s9 }
 0x33f   : > { %s3293_s26 = sld [smem:[#allocation5 + %s688_s27]]  ;;  %s673_s1 = scalar_lea.hbm %s3451_s2, %s1330_s11 }
 0x340   : > { %s1214_s4 = scalar_lea.vmem %s3220_s7, 36 [#allocation6]  ;;  %s2324_s13 = scalar_lea.hbm %s673_s1, 16 }
 0x341   : > { %s682_s5 = sshll.u32 %s1214_s4, 4  ;;  %p2325_p8 = scmp.ne.s32.totalorder %s673_s1, %s2324_s13  ;;  %s683_s5 = int_to_ptr.vmem [resolvable:$true] %s682_s5 }
 0x342   : > { %p2327_p9 = scmp.lt.u32.totalorder %s673_s1, %s3451_s2  ;;  %p2328_p10 = scmp.lt.u32.totalorder %s2706_s19, %s2324_s13 }
 0x343   : > { %p2330_p12 = scmp.lt.u32.totalorder %s2324_s13, %s673_s1 }
 0x344   : > { %p2329_p11 = por %p2328_p10, %p2327_p9 }
 0x346   : > { %p2331_p13 = por %p2330_p12, %p2329_p11 }
 0x348   : > { %p2332_p0 = pnand %p2331_p13, %p2325_p8 }
 0x34a   : > { %2335 = shalt.err (!%p2332_p0)  }
 0x34b   : > { %s2336_s15 = scalar_lea.vmem %s683_s5, 16  ;;  %p2341_p2 = scmp.lt.s32.totalorder %s683_s5, %s2689_s30 }
 0x34c   : > { %p2337_p1 = scmp.ne.s32.totalorder %s683_s5, %s2336_s15  ;;  %p2342_p4 = scmp.lt.s32.totalorder %s2715_s23, %s2336_s15 }
 0x34e   : > { %p2343_p5 = por %p2342_p4, %p2341_p2 }
 0x350   : > { %p2344_p6 = pnand %p2343_p5, %p2337_p1 }
 0x352   : > { %2347 = shalt.err (!%p2344_p6)  }
 0x353   : > { %685 = dma.hbm_to_vmem [thread:$0]  %s673_s1, 16, %s683_s5, %s3287_s22 }
 0x354   : > { %s3306_s10 = scalar_lea.sflag [#allocation2], %s690_s21 }
 0x355   : > { %2518 = dma.done.wait %s3306_s10, 16 }
 0x356   : > { %2519 = vsyncadd %s3306_s10, 4294967280  ;;  %s709_s16 = sadd.s32 6, %s3205_s29  ;;  %s1332_s18 = sshll.u32 %s3293_s26, 4 }
 0x357   : > { %s711_s24 = sadd.s32 32, %s709_s16  ;;  %s713_s17 = sand.u32 31, %s709_s16 }
 0x358   : > { %s3312_s12 = sld [smem:[#allocation5 + %s711_s24]]  ;;  %s696_s22 = scalar_lea.hbm %s3451_s2, %s1332_s18 }
 0x359   : > { %s1220_s27 = scalar_lea.vmem %s3220_s7, 37 [#allocation6]  ;;  %s2348_s25 = scalar_lea.hbm %s696_s22, 16 }
 0x35a   : > { %s705_s21 = sshll.u32 %s1220_s27, 4  ;;  %p2349_p7 = scmp.ne.s32.totalorder %s696_s22, %s2348_s25  ;;  %s706_s21 = int_to_ptr.vmem [resolvable:$true] %s705_s21 }
 0x35b   : > { %p2351_p8 = scmp.lt.u32.totalorder %s696_s22, %s3451_s2  ;;  %p2352_p9 = scmp.lt.u32.totalorder %s2706_s19, %s2348_s25 }
 0x35c   : > { %p2354_p11 = scmp.lt.u32.totalorder %s2348_s25, %s696_s22 }
 0x35d   : > { %p2353_p10 = por %p2352_p9, %p2351_p8 }
 0x35f   : > { %p2355_p12 = por %p2354_p11, %p2353_p10 }
 0x361   : > { %p2356_p13 = pnand %p2355_p12, %p2349_p7 }
 0x363   : > { %2359 = shalt.err (!%p2356_p13)  }
 0x364   : > { %s2360_s26 = scalar_lea.vmem %s706_s21, 16  ;;  %p2365_p1 = scmp.lt.s32.totalorder %s706_s21, %s2689_s30 }
 0x365   : > { %p2361_p0 = scmp.ne.s32.totalorder %s706_s21, %s2360_s26  ;;  %p2366_p2 = scmp.lt.s32.totalorder %s2715_s23, %s2360_s26 }
 0x367   : > { %p2367_p4 = por %p2366_p2, %p2365_p1 }
 0x369   : > { %p2368_p5 = pnand %p2367_p4, %p2361_p0 }
 0x36b   : > { %2371 = shalt.err (!%p2368_p5)  }
 0x36c   : > { %708 = dma.hbm_to_vmem [thread:$0]  %s696_s22, 16, %s706_s21, %s3306_s10 }
 0x36d   : > { %s3325_s4 = scalar_lea.sflag [#allocation2], %s713_s17 }
 0x36e   : > { %2520 = dma.done.wait %s3325_s4, 16 }
 0x36f   : > { %2521 = vsyncadd %s3325_s4, 4294967280  ;;  %s732_s5 = sadd.s32 7, %s3205_s29  ;;  %s1334_s13 = sshll.u32 %s3312_s12, 4 }
 0x370   : > { %s734_s14 = sadd.s32 32, %s732_s5  ;;  %s736_s20 = sand.u32 31, %s732_s5 }
 0x371   : > { %s735_s15 = sld [smem:[#allocation5 + %s734_s14]]  ;;  %s719_s24 = scalar_lea.hbm %s3451_s2, %s1334_s13 }
 0x372   : > { %s1226_s10 = scalar_lea.vmem %s3220_s7, 38 [#allocation6]  ;;  %s2372_s9 = scalar_lea.hbm %s719_s24, 16 }
 0x373   : > { %s728_s17 = sshll.u32 %s1226_s10, 4  ;;  %p2373_p6 = scmp.ne.s32.totalorder %s719_s24, %s2372_s9  ;;  %s729_s17 = int_to_ptr.vmem [resolvable:$true] %s728_s17 }
 0x374   : > { %p2375_p7 = scmp.lt.u32.totalorder %s719_s24, %s3451_s2  ;;  %p2376_p8 = scmp.lt.u32.totalorder %s2706_s19, %s2372_s9 }
 0x375   : > { %p2378_p10 = scmp.lt.u32.totalorder %s2372_s9, %s719_s24 }
 0x376   : > { %p2377_p9 = por %p2376_p8, %p2375_p7 }
 0x378   : > { %p2379_p11 = por %p2378_p10, %p2377_p9 }
 0x37a   : > { %p2380_p12 = pnand %p2379_p11, %p2373_p6 }
 0x37c   : > { %2383 = shalt.err (!%p2380_p12)  }
 0x37d   : > { %s2384_s29 = scalar_lea.vmem %s729_s17, 16  ;;  %p2389_p0 = scmp.lt.s32.totalorder %s729_s17, %s2689_s30 }
 0x37e   : > { %p2385_p13 = scmp.ne.s32.totalorder %s729_s17, %s2384_s29  ;;  %p2390_p1 = scmp.lt.s32.totalorder %s2715_s23, %s2384_s29 }
 0x380   : > { %p2391_p2 = por %p2390_p1, %p2389_p0 }
 0x382   : > { %p2392_p4 = pnand %p2391_p2, %p2385_p13 }
 0x384   : > { %2395 = shalt.err (!%p2392_p4)  }
 0x385   : > { %731 = dma.hbm_to_vmem [thread:$0]  %s719_s24, 16, %s729_s17, %s3325_s4 }
 0x386   : > { %s737_s12 = scalar_lea.sflag [#allocation2], %s736_s20 }
 0x387   : > { %2522 = dma.done.wait %s737_s12, 16 }
 0x388   : > { %2523 = vsyncadd %s737_s12, 4294967280  ;;  %s1336_s27 = sshll.u32 %s735_s15, 4  ;;  %s1232_s21 = scalar_lea.vmem %s3220_s7, 39 [#allocation6] }
 0x389   : > { %s742_s1 = scalar_lea.hbm %s3451_s2, %s1336_s27  ;;  %s751_s26 = sshll.u32 %s1232_s21, 4  ;;  %s752_s26 = int_to_ptr.vmem [resolvable:$true] %s751_s26 }
 0x38a   : > { %s2396_s5 = scalar_lea.hbm %s742_s1, 16  ;;  %p2399_p6 = scmp.lt.u32.totalorder %s742_s1, %s3451_s2 }
 0x38b   : > { %p2397_p5 = scmp.ne.s32.totalorder %s742_s1, %s2396_s5  ;;  %p2400_p7 = scmp.lt.u32.totalorder %s2706_s19, %s2396_s5 }
 0x38c   : > { %p2402_p9 = scmp.lt.u32.totalorder %s2396_s5, %s742_s1 }
 0x38d   : > { %p2401_p8 = por %p2400_p7, %p2399_p6 }
 0x38f   : > { %p2403_p10 = por %p2402_p9, %p2401_p8 }
 0x391   : > { %p2404_p11 = pnand %p2403_p10, %p2397_p5 }
 0x393   : > { %2407 = shalt.err (!%p2404_p11)  }
 0x394   : > { %s2408_s4 = scalar_lea.vmem %s752_s26, 16  ;;  %p2413_p13 = scmp.lt.s32.totalorder %s752_s26, %s2689_s30 }
 0x395   : > { %p2409_p12 = scmp.ne.s32.totalorder %s752_s26, %s2408_s4  ;;  %p2414_p0 = scmp.lt.s32.totalorder %s2715_s23, %s2408_s4 }
 0x397   : > { %p2415_p1 = por %p2414_p0, %p2413_p13 }
 0x399   : > { %p2416_p2 = pnand %p2415_p1, %p2409_p12 }
 0x39b   : > { %2419 = shalt.err (!%p2416_p2)  }
 0x39c   : > { %754 = dma.hbm_to_vmem [thread:$0]  %s742_s1, 16, %s752_s26, %s737_s12 }
 0x39d   : > { %s569_s6 = sadd.s32 1, %s2594_s6  }
 0x39e   : > { %p566_p4 = scmp.ge.s32.totalorder %s569_s6, 28  }
 0x3a0   :  { %568 = sbr.rel (!%p566_p4) target bundleno = 723 (0x2d3), region = 376 }
 0x3a7   :  { %2524 = dma.done.wait [#allocation2], 16 }
 0x3a8   :  { %2525 = vsyncadd [#allocation2], 4294967280 }
 0x3a9   :  { %2526 = dma.done.wait [#allocation2 + $0x1], 16 }
 0x3aa   :  { %2527 = vsyncadd [#allocation2 + $0x1], 4294967280 }
 0x3ab   :  { %2528 = dma.done.wait [#allocation2 + $0x2], 16 }
 0x3ac   :  { %2529 = vsyncadd [#allocation2 + $0x2], 4294967280 }
 0x3ad   :  { %2530 = dma.done.wait [#allocation2 + $0x3], 16 }
 0x3ae   :  { %2531 = vsyncadd [#allocation2 + $0x3], 4294967280 }
 0x3af   :  { %2532 = dma.done.wait [#allocation2 + $0x4], 16 }
 0x3b0   :  { %2533 = vsyncadd [#allocation2 + $0x4], 4294967280 }
 0x3b1   :  { %2534 = dma.done.wait [#allocation2 + $0x5], 16 }
 0x3b2   :  { %2535 = vsyncadd [#allocation2 + $0x5], 4294967280 }
 0x3b3   :  { %2536 = dma.done.wait [#allocation2 + $0x6], 16 }
 0x3b4   :  { %2537 = vsyncadd [#allocation2 + $0x6], 4294967280 }
 0x3b5   :  { %2538 = dma.done.wait [#allocation2 + $0x7], 16 }
 0x3b6   :  { %2539 = vsyncadd [#allocation2 + $0x7], 4294967280 }
 0x3b7   :  { %2540 = dma.done.wait [#allocation2 + $0x8], 16 }
 0x3b8   :  { %2541 = vsyncadd [#allocation2 + $0x8], 4294967280 }
 0x3b9   :  { %2542 = dma.done.wait [#allocation2 + $0x9], 16 }
 0x3ba   :  { %2543 = vsyncadd [#allocation2 + $0x9], 4294967280 }
 0x3bb   :  { %2544 = dma.done.wait [#allocation2 + $0xa], 16 }
 0x3bc   :  { %2545 = vsyncadd [#allocation2 + $0xa], 4294967280 }
 0x3bd   :  { %2546 = dma.done.wait [#allocation2 + $0xb], 16 }
 0x3be   :  { %2547 = vsyncadd [#allocation2 + $0xb], 4294967280 }
 0x3bf   :  { %2548 = dma.done.wait [#allocation2 + $0xc], 16 }
 0x3c0   :  { %2549 = vsyncadd [#allocation2 + $0xc], 4294967280 }
 0x3c1   :  { %2550 = dma.done.wait [#allocation2 + $0xd], 16 }
 0x3c2   :  { %2551 = vsyncadd [#allocation2 + $0xd], 4294967280 }
 0x3c3   :  { %2552 = dma.done.wait [#allocation2 + $0xe], 16 }
 0x3c4   :  { %2553 = vsyncadd [#allocation2 + $0xe], 4294967280 }
 0x3c5   :  { %2554 = dma.done.wait [#allocation2 + $0xf], 16 }
 0x3c6   :  { %2555 = vsyncadd [#allocation2 + $0xf], 4294967280 }
 0x3c7   :  { %2556 = dma.done.wait [#allocation2 + $0x10], 16 }
 0x3c8   :  { %2557 = vsyncadd [#allocation2 + $0x10], 4294967280 }
 0x3c9   :  { %2558 = dma.done.wait [#allocation2 + $0x11], 16 }
 0x3ca   :  { %2559 = vsyncadd [#allocation2 + $0x11], 4294967280 }
 0x3cb   :  { %2560 = dma.done.wait [#allocation2 + $0x12], 16 }
 0x3cc   :  { %2561 = vsyncadd [#allocation2 + $0x12], 4294967280 }
 0x3cd   :  { %2562 = dma.done.wait [#allocation2 + $0x13], 16 }
 0x3ce   :  { %2563 = vsyncadd [#allocation2 + $0x13], 4294967280 }
 0x3cf   :  { %2564 = dma.done.wait [#allocation2 + $0x14], 16 }
 0x3d0   :  { %2565 = vsyncadd [#allocation2 + $0x14], 4294967280 }
 0x3d1   :  { %2566 = dma.done.wait [#allocation2 + $0x15], 16 }
 0x3d2   :  { %2567 = vsyncadd [#allocation2 + $0x15], 4294967280 }
 0x3d3   :  { %2568 = dma.done.wait [#allocation2 + $0x16], 16 }
 0x3d4   :  { %2569 = vsyncadd [#allocation2 + $0x16], 4294967280 }
 0x3d5   :  { %2570 = dma.done.wait [#allocation2 + $0x17], 16 }
 0x3d6   :  { %2571 = vsyncadd [#allocation2 + $0x17], 4294967280 }
 0x3d7   :  { %2572 = dma.done.wait [#allocation2 + $0x18], 16 }
 0x3d8   :  { %2573 = vsyncadd [#allocation2 + $0x18], 4294967280 }
 0x3d9   :  { %2574 = dma.done.wait [#allocation2 + $0x19], 16 }
 0x3da   :  { %2575 = vsyncadd [#allocation2 + $0x19], 4294967280 }
 0x3db   :  { %2576 = dma.done.wait [#allocation2 + $0x1a], 16 }
 0x3dc   :  { %2577 = vsyncadd [#allocation2 + $0x1a], 4294967280 }
 0x3dd   :  { %2578 = dma.done.wait [#allocation2 + $0x1b], 16 }
 0x3de   :  { %2579 = vsyncadd [#allocation2 + $0x1b], 4294967280 }
 0x3df   :  { %2580 = dma.done.wait [#allocation2 + $0x1c], 16 }
 0x3e0   :  { %2581 = vsyncadd [#allocation2 + $0x1c], 4294967280 }
 0x3e1   :  { %2582 = dma.done.wait [#allocation2 + $0x1d], 16 }
 0x3e2   :  { %2583 = vsyncadd [#allocation2 + $0x1d], 4294967280 }
 0x3e3   :  { %2584 = dma.done.wait [#allocation2 + $0x1e], 16 }
 0x3e4   :  { %2585 = vsyncadd [#allocation2 + $0x1e], 4294967280 }
 0x3e5   :  { %2586 = dma.done.wait [#allocation2 + $0x1f], 16 }
 0x3e6   :  { %2587 = vsyncadd [#allocation2 + $0x1f], 4294967280 }
 0x3e7 PF:  { %823 = sbr.rel (!%p17_p3) target bundleno = 1112 (0x458), region = 176  ;;  %p1341_p5 = scmp.lt.s32.totalorder (%p17_p3), %s3449_s0, 32 }
 0x3ee   :  { %s3363_s7 = scalar_select %p1341_p5, %s2684_s28, 32 }
 0x3f0   :  { %p1344_p6 = scmp.le.s32.totalorder %s3363_s7, 0 }
 0x3f1   :  { %s3366_s20 = smov (!%p1344_p6), 0  }
 0x3f2   :  { %1249 = sbr.rel (%p1344_p6) target bundleno = 1056 (0x420), region = 381 }
 0x3f9 LB: > { %s833_s15 = sld [smem:[#allocation5 + %s2598_s20]]  ;;  %s836_s16 = scalar_lea.vmem [#allocation6], %s2598_s20  ;;  %s2598_s20 = sphi %s3366_s20, %s829_s20  }
 0x3fa   : > { %s845_s18 = sshll.u32 %s836_s16, 4  ;;  %s837_s11 = scalar_lea.sflag [#allocation2], %s2598_s20  ;;  %s846_s18 = int_to_ptr.vmem [resolvable:$true] %s845_s18 }
 0x3fb   : > { %s2422_s27 = scalar_lea.hbm %s3451_s2, 488448 }
 0x3ff   : > { %s1345_s24 = sshll.u32 %s833_s15, 4 }
 0x400   : > { %s835_s9 = scalar_lea.hbm %s3451_s2, %s1345_s24 }
 0x401   : > { %s2420_s22 = scalar_lea.hbm %s835_s9, 16  ;;  %p2423_p7 = scmp.lt.u32.totalorder %s835_s9, %s3451_s2 }
 0x402   : > { %p2421_p3 = scmp.ne.s32.totalorder %s835_s9, %s2420_s22  ;;  %p2424_p8 = scmp.lt.u32.totalorder %s2422_s27, %s2420_s22 }
 0x403   : > { %p2426_p10 = scmp.lt.u32.totalorder %s2420_s22, %s835_s9 }
 0x404   : > { %p2425_p9 = por %p2424_p8, %p2423_p7 }
 0x406   : > { %p2427_p11 = por %p2426_p10, %p2425_p9 }
 0x408   : > { %p2428_p12 = pnand %p2427_p11, %p2421_p3 }
 0x40a   : > { %2431 = shalt.err (!%p2428_p12)  }
 0x40b   : > { %s2432_s8 = scalar_lea.vmem %s846_s18, 16  ;;  %s2637_s1 = smov [#allocation6]  }
 0x40c   : > { %p2433_p13 = scmp.ne.s32.totalorder %s846_s18, %s2432_s8  ;;  %s2434_s26 = sshll.u32 %s2637_s1, 4  ;;  %s2435_s26 = int_to_ptr.vmem [resolvable:$false] %s2434_s26 }
 0x40d   : > { %s2436_s5 = scalar_lea.vmem %s2435_s26, 4096  ;;  %p2437_p0 = scmp.lt.s32.totalorder %s846_s18, %s2435_s26 }
 0x40e   : > { %p2438_p1 = scmp.lt.s32.totalorder %s2436_s5, %s2432_s8 }
 0x410   : > { %p2439_p2 = por %p2438_p1, %p2437_p0 }
 0x412   : > { %p2440_p4 = pnand %p2439_p2, %p2433_p13 }
 0x414   : > { %2443 = shalt.err (!%p2440_p4)  }
 0x415   : > { %848 = dma.hbm_to_vmem [thread:$0]  %s835_s9, 16, %s846_s18, %s837_s11 }
 0x416   : > { %s829_s20 = sadd.s32 1, %s2598_s20  }
 0x417   : > { %p828_p5 = scmp.ge.s32.totalorder %s829_s20, %s3363_s7 }
 0x419   :  { %831 = sbr.rel (!%p828_p5) target bundleno = 1017 (0x3f9), region = 387 }
 0x420 PF:  { %p1382_p6 = scmp.le.s32.totalorder %s3449_s0, 0 }
 0x421   :  { %s3390_s4 = smov (!%p1382_p6), 0  }
 0x422   :  { %1254 = sbr.rel (%p1382_p6) target bundleno = 1112 (0x458), region = 392 }
 0x429 LB: > { %s855_s30 = sand.u32 31, %s2602_s4  ;;  %s2602_s4 = sphi %s3390_s4, %s852_s4  }
 0x42a   : > { %s3396_s19 = scalar_lea.sflag [#allocation2], %s855_s30 }
 0x42b   : > { %2588 = dma.done.wait %s3396_s19, 16 }
 0x42c   : > { %2589 = vsyncadd %s3396_s19, 4294967280  ;;  %s860_s0 = sadd.s32 32, %s2602_s4  ;;  %s1240_s7 = scalar_lea.vmem [#allocation6], %s2602_s4 }
 0x42d   : > { %p3402_p3 = scmp.lt.s32.totalorder %s860_s0, %s2684_s28  ;;  %s1241_s20 = scalar_lea.vmem %s1240_s7, 32 [#allocation6] }
 0x42e   : > { %s878_s16 = sshll.u32 %s1241_s20, 4  ;;  %s2448_s29 = scalar_lea.hbm %s3451_s2, 488448  ;;  %s3411_s16 = int_to_ptr.vmem [resolvable:$true] %s878_s16 }
 0x42f   : > { %s1386_s6 = scalar_select %p3402_p3, [#allocation5], [#allocation94] }
 0x430   : > { %s3455_s0 = smov (!%p3402_p3, %s860_s0), 0 }
 0x431   : > { %s867_s15 = sld [smem:[%s1386_s6 + %s3455_s0]] }
 0x437   : > { %s1348_s18 = sshll.u32 %s867_s15, 4 }
 0x438   : > { %s869_s17 = scalar_lea.hbm %s3451_s2, %s1348_s18 }
 0x439   : > { %s2444_s9 = scalar_lea.hbm %s869_s17, 16  ;;  %p2449_p10 = scmp.lt.u32.totalorder %s869_s17, %s3451_s2 }
 0x43a   : > { %p2445_p7 = scmp.ne.s32.totalorder %s869_s17, %s2444_s9  ;;  %p2450_p11 = scmp.lt.u32.totalorder %s2448_s29, %s2444_s9 }
 0x43b   : > { %p2452_p13 = scmp.lt.u32.totalorder %s2444_s9, %s869_s17 }
 0x43c   : > { %p2446_p8 = pnand %p2445_p7, %p3402_p3  ;;  %p2451_p12 = por %p2450_p11, %p2449_p10 }
 0x43e   : > { %p2447_p9 = pneg %p2446_p8  ;;  %p2453_p0 = por %p2452_p13, %p2451_p12 }
 0x440   : > { %p2454_p1 = pnand %p2453_p0, %p2447_p9 }
 0x442   : > { %2457 = shalt.err (!%p2454_p1)  }
 0x443   : > { %s2458_s21 = scalar_lea.vmem %s3411_s16, 16  ;;  %s2638_s25 = smov [#allocation6]  }
 0x444   : > { %p2459_p2 = scmp.ne.s32.totalorder %s3411_s16, %s2458_s21  ;;  %s2462_s8 = sshll.u32 %s2638_s25, 4  ;;  %s2463_s8 = int_to_ptr.vmem [resolvable:$false] %s2462_s8 }
 0x445   : > { %s2464_s1 = scalar_lea.vmem %s2463_s8, 4096  ;;  %p2465_p6 = scmp.lt.s32.totalorder %s3411_s16, %s2463_s8 }
 0x446   : > { %p2460_p4 = pnand %p2459_p2, %p3402_p3  ;;  %p2466_p7 = scmp.lt.s32.totalorder %s2464_s1, %s2458_s21 }
 0x448   : > { %p2461_p5 = pneg %p2460_p4  ;;  %p2467_p8 = por %p2466_p7, %p2465_p6 }
 0x44a   : > { %p2468_p10 = pnand %p2467_p8, %p2461_p5 }
 0x44c   : > { %2471 = shalt.err (!%p2468_p10)  }
 0x44d   : > { %1388 = dma.hbm_to_vmem [thread:$0]  (%p3402_p3), %s869_s17, 16, %s3411_s16, %s3396_s19 }
 0x44e   : > { %s852_s4 = sadd.s32 1, %s2602_s4  }
 0x44f   : > { %p851_p9 = scmp.ge.s32.totalorder %s852_s4, %s2684_s28 }
 0x451   :  { %854 = sbr.rel (!%p851_p9) target bundleno = 1065 (0x429), region = 398 }
 0x458 PF:  { %s2639_s26 = smov [#allocation6]  }
 0x459   :  { %s887_s5 = sshll.u32 %s2639_s26, 4  ;;  %s888_s5 = int_to_ptr.vmem [resolvable:$true] %s887_s5 }
 0x45a   :  { %s2472_s13 = scalar_lea.vmem %s888_s5, 4096  ;;  %p2477_p12 = scmp.lt.s32.totalorder %s888_s5, %s888_s5 }
 0x45b   :  { %p2473_p11 = scmp.ne.s32.totalorder %s888_s5, %s2472_s13  ;;  %p2478_p13 = scmp.lt.s32.totalorder %s2472_s13, %s2472_s13 }
 0x45d   :  { %p2479_p0 = por %p2478_p13, %p2477_p12 }
 0x45f   :  { %p2480_p1 = pnand %p2479_p0, %p2473_p11 }
 0x461   :  { %2483 = shalt.err (!%p2480_p1)
}
 0x462   :  { %s2484_s19 = scalar_lea.hbm %s3452_s3, 4096 }
 0x463   :  { %p2485_p3 = scmp.ne.s32.totalorder %s3452_s3, %s2484_s19  ;;  %p2488_p2 = scmp.lt.u32.totalorder %s2484_s19, %s3452_s3 }
 0x465   :  { %p2490_p4 = pnand %p2488_p2, %p2485_p3 }
 0x467   :  { %2493 = shalt.err (!%p2490_p4)
}
 0x468   :  { %s2640_s4 = smov 128   ;;  %s2641_s6 = smov 8  }
 0x469   :  { %893 = dma.vmem_to_hbm [thread:$0]  %s888_s5, 4096, %s3452_s3, [#allocation7], %s2640_s4, %s2640_s4, %s2641_s6  }
 0x46a   :  { %2590 = dma.done.wait [#allocation7], 4096  }
 0x46b   :  { %2591 = vsyncadd [#allocation7], 4294963200 }
 0x46c   :  { %897 = vsyncpa [#allocation7], 1 }
 0x46d   :  { %898 = vsyncmov [#allocation2] }
 0x470   :  { %s899_s15 = vpop.sfrf %898 }
 0x471   :  { %p1349_p5 = scmp.ne.s32.totalorder %s899_s15, 0 }
 0x473   :  { %903 = shalt.err (%p1349_p5)  }
 0x474   :  { %905 = vsyncmov [#allocation2 + $0x1] }
 0x477   :  { %s906_s16 = vpop.sfrf %905 }
 0x478   :  { %p1350_p6 = scmp.ne.s32.totalorder %s906_s16, 0 }
 0x47a   :  { %910 = shalt.err (%p1350_p6)  }
 0x47b   :  { %912 = vsyncmov [#allocation2 + $0x2] }
 0x47e   :  { %s913_s18 = vpop.sfrf %912 }
 0x47f   :  { %p1351_p7 = scmp.ne.s32.totalorder %s913_s18, 0 }
 0x481   :  { %917 = shalt.err (%p1351_p7)  }
 0x482   :  { %919 = vsyncmov [#allocation2 + $0x3] }
 0x485   :  { %s920_s24 = vpop.sfrf %919 }
 0x486   :  { %p1352_p8 = scmp.ne.s32.totalorder %s920_s24, 0 }
 0x488   :  { %924 = shalt.err (%p1352_p8)  }
 0x489   :  { %926 = vsyncmov [#allocation2 + $0x4] }
 0x48c   :  { %s927_s3 = vpop.sfrf %926 }
 0x48d   :  { %p1353_p10 = scmp.ne.s32.totalorder %s927_s3, 0 }
 0x48f   :  { %931 = shalt.err (%p1353_p10)  }
 0x490   :  { %933 = vsyncmov [#allocation2 + $0x5] }
 0x493   :  { %s934_s10 = vpop.sfrf %933 }
 0x494   :  { %p1354_p9 = scmp.ne.s32.totalorder %s934_s10, 0 }
 0x496   :  { %938 = shalt.err (%p1354_p9)  }
 0x497   :  { %940 = vsyncmov [#allocation2 + $0x6] }
 0x49a   :  { %s941_s17 = vpop.sfrf %940 }
 0x49b   :  { %p1355_p11 = scmp.ne.s32.totalorder %s941_s17, 0 }
 0x49d   :  { %945 = shalt.err (%p1355_p11)  }
 0x49e   :  { %947 = vsyncmov [#allocation2 + $0x7] }
 0x4a1   :  { %s948_s9 = vpop.sfrf %947 }
 0x4a2   :  { %p1356_p12 = scmp.ne.s32.totalorder %s948_s9, 0 }
 0x4a4   :  { %952 = shalt.err (%p1356_p12)  }
 0x4a5   :  { %954 = vsyncmov [#allocation2 + $0x8] }
 0x4a8   :  { %s955_s11 = vpop.sfrf %954 }
 0x4a9   :  { %p1357_p13 = scmp.ne.s32.totalorder %s955_s11, 0 }
 0x4ab   :  { %959 = shalt.err (%p1357_p13)  }
 0x4ac   :  { %961 = vsyncmov [#allocation2 + $0x9] }
 0x4af   :  { %s962_s22 = vpop.sfrf %961 }
 0x4b0   :  { %p1358_p0 = scmp.ne.s32.totalorder %s962_s22, 0 }
 0x4b2   :  { %966 = shalt.err (%p1358_p0)  }
 0x4b3   :  { %968 = vsyncmov [#allocation2 + $0xa] }
 0x4b6   :  { %s969_s29 = vpop.sfrf %968 }
 0x4b7   :  { %p1359_p1 = scmp.ne.s32.totalorder %s969_s29, 0 }
 0x4b9   :  { %973 = shalt.err (%p1359_p1)  }
 0x4ba   :  { %975 = vsyncmov [#allocation2 + $0xb] }
 0x4bd   :  { %s976_s12 = vpop.sfrf %975 }
 0x4be   :  { %p1360_p3 = scmp.ne.s32.totalorder %s976_s12, 0 }
 0x4c0   :  { %980 = shalt.err (%p1360_p3)  }
 0x4c1   :  { %982 = vsyncmov [#allocation2 + $0xc] }
 0x4c4   :  { %s983_s27 = vpop.sfrf %982 }
 0x4c5   :  { %p1361_p2 = scmp.ne.s32.totalorder %s983_s27, 0 }
 0x4c7   :  { %987 = shalt.err (%p1361_p2)  }
 0x4c8   :  { %989 = vsyncmov [#allocation2 + $0xd] }
 0x4cb   :  { %s990_s21 = vpop.sfrf %989 }
 0x4cc   :  { %p1362_p4 = scmp.ne.s32.totalorder %s990_s21, 0 }
 0x4ce   :  { %994 = shalt.err (%p1362_p4)  }
 0x4cf   :  { %996 = vsyncmov [#allocation2 + $0xe] }
 0x4d2   :  { %s997_s25 = vpop.sfrf %996 }
 0x4d3   :  { %p1363_p5 = scmp.ne.s32.totalorder %s997_s25, 0 }
 0x4d5   :  { %1001 = shalt.err (%p1363_p5)  }
 0x4d6   :  { %1003 = vsyncmov [#allocation2 + $0xf] }
 0x4d9   :  { %s1004_s8 = vpop.sfrf %1003 }
 0x4da   :  { %p1364_p6 = scmp.ne.s32.totalorder %s1004_s8, 0 }
 0x4dc   :  { %1008 = shalt.err (%p1364_p6)  }
 0x4dd   :  { %1010 = vsyncmov [#allocation2 + $0x10] }
 0x4e0   :  { %s1011_s1 = vpop.sfrf %1010 }
 0x4e1   :  { %p1365_p7 = scmp.ne.s32.totalorder %s1011_s1, 0 }
 0x4e3   :  { %1015 = shalt.err (%p1365_p7)  }
 0x4e4   :  { %1017 = vsyncmov [#allocation2 + $0x11] }
 0x4e7   :  { %s1018_s26 = vpop.sfrf %1017 }
 0x4e8   :  { %p1366_p8 = scmp.ne.s32.totalorder %s1018_s26, 0 }
 0x4ea   :  { %1022 = shalt.err (%p1366_p8)  }
 0x4eb   :  { %1024 = vsyncmov [#allocation2 + $0x12] }
 0x4ee   :  { %s1025_s5 = vpop.sfrf %1024 }
 0x4ef   :  { %p1367_p10 = scmp.ne.s32.totalorder %s1025_s5, 0 }
 0x4f1   :  { %1029 = shalt.err (%p1367_p10)  }
 0x4f2   :  { %1031 = vsyncmov [#allocation2 + $0x13] }
 0x4f5   :  { %s1032_s13 = vpop.sfrf %1031 }
 0x4f6   :  { %p1368_p9 = scmp.ne.s32.totalorder %s1032_s13, 0 }
 0x4f8   :  { %1036 = shalt.err (%p1368_p9)  }
 0x4f9   :  { %1038 = vsyncmov [#allocation2 + $0x14] }
 0x4fc   :  { %s1039_s14 = vpop.sfrf %1038 }
 0x4fd   :  { %p1369_p11 = scmp.ne.s32.totalorder %s1039_s14, 0 }
 0x4ff   :  { %1043 = shalt.err (%p1369_p11)  }
 0x500   :  { %1045 = vsyncmov [#allocation2 + $0x15] }
 0x503   :  { %s1046_s30 = vpop.sfrf %1045 }
 0x504   :  { %p1370_p12 = scmp.ne.s32.totalorder %s1046_s30, 0 }
 0x506   :  { %1050 = shalt.err (%p1370_p12)  }
 0x507   :  { %1052 = vsyncmov [#allocation2 + $0x16] }
 0x50a   :  { %s1053_s19 = vpop.sfrf %1052 }
 0x50b   :  { %p1371_p13 = scmp.ne.s32.totalorder %s1053_s19, 0 }
 0x50d   :  { %1057 = shalt.err (%p1371_p13)  }
 0x50e   :  { %1059 = vsyncmov [#allocation2 + $0x17] }
 0x511   :  { %s1060_s0 = vpop.sfrf %1059 }
 0x512   :  { %p1372_p0 = scmp.ne.s32.totalorder %s1060_s0, 0 }
 0x514   :  { %1064 = shalt.err (%p1372_p0)  }
 0x515   :  { %1066 = vsyncmov [#allocation2 + $0x18] }
 0x518   :  { %s1067_s23 = vpop.sfrf %1066 }
 0x519   :  { %p1373_p1 = scmp.ne.s32.totalorder %s1067_s23, 0 }
 0x51b   :  { %1071 = shalt.err (%p1373_p1)  }
 0x51c   :  { %1073 = vsyncmov [#allocation2 + $0x19] }
 0x51f   :  { %s1074_s2 = vpop.sfrf %1073 }
 0x520   :  { %p1374_p3 = scmp.ne.s32.totalorder %s1074_s2, 0 }
 0x522   :  { %1078 = shalt.err (%p1374_p3)  }
 0x523   :  { %1080 = vsyncmov [#allocation2 + $0x1a] }
 0x526   :  { %s1081_s28 = vpop.sfrf %1080 }
 0x527   :  { %p1375_p2 = scmp.ne.s32.totalorder %s1081_s28, 0 }
 0x529   :  { %1085 = shalt.err (%p1375_p2)  }
 0x52a   :  { %1087 = vsyncmov [#allocation2 + $0x1b] }
 0x52d   :  { %s1088_s4 = vpop.sfrf %1087 }
 0x52e   :  { %p1376_p4 = scmp.ne.s32.totalorder %s1088_s4, 0 }
 0x530   :  { %1092 = shalt.err (%p1376_p4)  }
 0x531   :  { %1094 = vsyncmov [#allocation2 + $0x1c] }
 0x534   :  { %s1095_s6 = vpop.sfrf %1094 }
 0x535   :  { %p1377_p5 = scmp.ne.s32.totalorder %s1095_s6, 0 }
 0x537   :  { %1099 = shalt.err (%p1377_p5)  }
 0x538   :  { %1101 = vsyncmov [#allocation2 + $0x1d] }
 0x53b   :  { %s1102_s7 = vpop.sfrf %1101 }
 0x53c   :  { %p1378_p6 = scmp.ne.s32.totalorder %s1102_s7, 0 }
 0x53e   :  { %1106 = shalt.err (%p1378_p6)  }
 0x53f   :  { %1108 = vsyncmov [#allocation2 + $0x1e] }
 0x542   :  { %s1109_s20 = vpop.sfrf %1108 }
 0x543   :  { %p1379_p7 = scmp.ne.s32.totalorder %s1109_s20, 0 }
 0x545   :  { %1113 = shalt.err (%p1379_p7)  }
 0x546   :  { %1115 = vsyncmov [#allocation2 + $0x1f] }
 0x549   :  { %s1116_s15 = vpop.sfrf %1115 }
 0x54a   :  { %p1380_p8 = scmp.ne.s32.totalorder %s1116_s15, 0 }
 0x54c   :  { %1120 = shalt.err (%p1380_p8)  }

</bundles_post_ra>
